<compile_context>
chip_gen: v5e
topology: v5e:2x2
jax: 0.10.0
libtpu: 0.0.40
codegen_flags: <defaults>
</compile_context>

<pallas_src>
import jax
import jax.numpy as jnp
from jax.experimental import pallas as pl
from jax.experimental.pallas import tpu as pltpu

LATENT_DIM = 32          # logical latent dim (args.latent_dim in the reference)
K_PAD = 128              # latent dim padded to one full lane group
H1 = 512
H2 = 256
OUT = 1
TILE_B = 256             # batch tile: multiple of 256 (v6e/v7x MXU) and 128 (v5e)


def _leaky_relu(x, slope=0.2):
    return jnp.where(x > 0, x, slope * x)


def discriminator_kernel(z_ref, w1_ref, b1_ref, w2_ref, b2_ref, w3_ref, b3_ref,
                         out_ref):
    # Layer 1: bf16 x bf16 -> f32 accumulation on the MXU; epilogue in f32.
    h1 = jnp.dot(z_ref[...], w1_ref[...], preferred_element_type=jnp.float32)
    h1 = _leaky_relu(h1 + b1_ref[...])

    # Layer 2: cast activations to bf16 only for the matmul operands.
    h2 = jnp.dot(h1.astype(jnp.bfloat16), w2_ref[...],
                 preferred_element_type=jnp.float32)
    h2 = _leaky_relu(h2 + b2_ref[...])

    # Layer 3 (256 -> 1): skip the lane-starved N=1 MXU pass; do a VPU multiply
    # against the weight row plus a cross-lane (XLU) reduction instead.
    logits = jnp.sum(h2 * w3_ref[...], axis=-1, keepdims=True) + b3_ref[0, 0]

    # Sigmoid: exp on the EUP, division via approx reciprocal (also EUP slot).
    out_ref[...] = pl.reciprocal(1.0 + jnp.exp(-logits),
                                 approx=True).astype(out_ref.dtype)


@jax.jit
def discriminator_forward(z, params):
    """z: [B, LATENT_DIM] float32. params: w1 [32,512], b1 [1,512], w2 [512,256],
    b2 [1,256], w3 [256,1], b3 [1,1] (weights stored as [in, out]).
    Returns validity [B, 1] float32."""
    B, latent = z.shape

    # --- wrapper-side layout prep (outside the kernel) ---------------------
    n_tiles = pl.cdiv(B, TILE_B)
    B_pad = n_tiles * TILE_B

    # z: zero-pad batch to a TILE_B multiple and latent to 128 lanes; bf16.
    z_p = jnp.zeros((B_pad, K_PAD), jnp.bfloat16)
    z_p = z_p.at[:B, :latent].set(z.astype(jnp.bfloat16))

    # Weights: bf16 MXU operands; w1 zero-padded along K to 128.
    w1 = jnp.zeros((K_PAD, H1), jnp.bfloat16)
    w1 = w1.at[:latent, :].set(params["w1"].astype(jnp.bfloat16))
    w2 = params["w2"].astype(jnp.bfloat16)

    b1 = params["b1"].astype(jnp.float32)               # [1, 512]
    b2 = params["b2"].astype(jnp.float32)               # [1, 256]
    w3_row = params["w3"].astype(jnp.float32).reshape(1, H2)   # [1, 256]
    b3 = params["b3"].astype(jnp.float32).reshape(1, 1)        # [1, 1] -> SMEM

    out_padded = pl.pallas_call(
        discriminator_kernel,
        out_shape=jax.ShapeDtypeStruct((B_pad, OUT), jnp.float32),
        grid=(n_tiles,),
        in_specs=[
            # batch-tiled activations
            pl.BlockSpec((TILE_B, K_PAD), lambda i: (i, 0)),
            # resident weights / biases: constant block index -> fetched once
            pl.BlockSpec((K_PAD, H1), lambda i: (0, 0)),
            pl.BlockSpec((1, H1), lambda i: (0, 0)),
            pl.BlockSpec((H1, H2), lambda i: (0, 0)),
            pl.BlockSpec((1, H2), lambda i: (0, 0)),
            pl.BlockSpec((1, H2), lambda i: (0, 0)),
            # scalar bias lives in SMEM (avoids a padded (8,128) VMEM tile)
            pl.BlockSpec(memory_space=pltpu.MemorySpace.SMEM),
        ],
        out_specs=pl.BlockSpec((TILE_B, OUT), lambda i: (i, 0)),
        compiler_params=pltpu.CompilerParams(
            dimension_semantics=("parallel",),        # megacore batch sharding (v7x)
            vmem_limit_bytes=32 * 1024 * 1024,        # safe on v5e/v6e/v7x budgets
        ),
    )(z_p, w1, b1, w2, b2, w3_row, b3)

    return out_padded[:B]


def init_params(key):
    """Deterministic init matching PyTorch Linear shapes (stored transposed)."""
    def linear_init(k, fan_in, fan_out):
        kw, kb = jax.random.split(k)
        bound = 1.0 / jnp.sqrt(fan_in)
        w = jax.random.uniform(kw, (fan_in, fan_out), jnp.float32, -bound, bound)
        b = jax.random.uniform(kb, (1, fan_out), jnp.float32, -bound, bound)
        return w, b

    k1, k2, k3 = jax.random.split(key, 3)
    w1, b1 = linear_init(k1, LATENT_DIM, H1)
    w2, b2 = linear_init(k2, H1, H2)
    w3, b3 = linear_init(k3, H2, OUT)
    return dict(w1=w1, b1=b1, w2=w2, b2=b2, w3=w3, b3=b3)


def reference_forward(z, p):
    h1 = _leaky_relu(z @ p["w1"] + p["b1"])
    h2 = _leaky_relu(h1 @ p["w2"] + p["b2"])
    return jax.nn.sigmoid(h2 @ p["w3"] + p["b3"])


if __name__ == "__main__":
    key = jax.random.PRNGKey(0)
    kz, kp = jax.random.split(key)

    batch = 8
    z = jax.random.normal(kz, (batch, LATENT_DIM), jnp.float32)
    params = init_params(kp)

    validity = discriminator_forward(z, params)
    jax.block_until_ready(validity)

    # Sanity check against a pure-JAX f32 reference (tolerance loosened for the
    # bf16 MXU operands + approx reciprocal in the kernel).
    ref = reference_forward(z, params)
    assert validity.shape == (batch, OUT)
    assert jnp.max(jnp.abs(validity - ref)) < 2e-2, jnp.max(jnp.abs(validity - ref))

    print("KERNEL_OK")
</pallas_src>

<mosaic_0001>
module attributes {stable_mosaic.version = 11 : i64} {
  func.func @discriminator_kernel(%arg0: i32, %arg1: memref<256x128xbf16, #tpu.memory_space<vmem>>, %arg2: memref<128x512xbf16, #tpu.memory_space<vmem>>, %arg3: memref<1x512xf32, #tpu.memory_space<vmem>>, %arg4: memref<512x256xbf16, #tpu.memory_space<vmem>>, %arg5: memref<1x256xf32, #tpu.memory_space<vmem>>, %arg6: memref<1x256xf32, #tpu.memory_space<vmem>>, %arg7: memref<1x1xf32, #tpu.memory_space<smem>>, %arg8: memref<256x1xf32, #tpu.memory_space<vmem>>) attributes {dimension_semantics = [#tpu.dimension_semantics<parallel>], iteration_bounds = array<i64: 1>, scalar_prefetch = 0 : i64, scratch_operands = 0 : i64, tpu.core_type = #tpu.core_type<tc>, window_params = [{transform_indices = @transform_0, window_bounds = array<i64: 256, 128>}, {pipeline_mode = #tpu.pipeline_mode<synchronous>, transform_indices = @transform_1, window_bounds = array<i64: 128, 512>}, {pipeline_mode = #tpu.pipeline_mode<synchronous>, transform_indices = @transform_2, window_bounds = array<i64: 1, 512>}, {pipeline_mode = #tpu.pipeline_mode<synchronous>, transform_indices = @transform_3, window_bounds = array<i64: 512, 256>}, {pipeline_mode = #tpu.pipeline_mode<synchronous>, transform_indices = @transform_4, window_bounds = array<i64: 1, 256>}, {pipeline_mode = #tpu.pipeline_mode<synchronous>, transform_indices = @transform_5, window_bounds = array<i64: 1, 256>}, {transform_indices = @transform_6, window_bounds = array<i64: 1, 1>}, {transform_indices = @transform_7, window_bounds = array<i64: 256, 1>}]} {
    %c0 = arith.constant 0 : index
    %c0_0 = arith.constant 0 : index
    %0 = vector.load %arg1[%c0, %c0_0] : memref<256x128xbf16, #tpu.memory_space<vmem>>, vector<256x128xbf16>
    %c0_1 = arith.constant 0 : index
    %c0_2 = arith.constant 0 : index
    %1 = vector.load %arg2[%c0_1, %c0_2] : memref<128x512xbf16, #tpu.memory_space<vmem>>, vector<128x512xbf16>
    %cst = arith.constant dense<0.000000e+00> : vector<256x512xf32>
    %2 = tpu.matmul %0, %1, %cst {dimension_numbers = #tpu.dot_dimension_numbers<[1], [0], [0], [1], [0, 0, 1, 1], [], []>} : vector<256x128xbf16>, vector<128x512xbf16>, vector<256x512xf32> -> vector<256x512xf32>
    %c0_3 = arith.constant 0 : index
    %c0_4 = arith.constant 0 : index
    %3 = vector.load %arg3[%c0_3, %c0_4] : memref<1x512xf32, #tpu.memory_space<vmem>>, vector<1x512xf32>
    %4 = vector.broadcast %3 : vector<1x512xf32> to vector<256x512xf32>
    %5 = arith.addf %2, %4 : vector<256x512xf32>
    %cst_5 = arith.constant 0.000000e+00 : f32
    %6 = vector.broadcast %cst_5 : f32 to vector<256x512xf32>
    %7 = arith.cmpf ogt, %5, %6 : vector<256x512xf32>
    %cst_6 = arith.constant 2.000000e-01 : f32
    %8 = vector.broadcast %cst_6 : f32 to vector<256x512xf32>
    %9 = arith.mulf %8, %5 : vector<256x512xf32>
    %10 = arith.select %7, %5, %9 : vector<256x512xi1>, vector<256x512xf32>
    %11 = arith.truncf %10 : vector<256x512xf32> to vector<256x512xbf16>
    %c0_7 = arith.constant 0 : index
    %c0_8 = arith.constant 0 : index
    %12 = vector.load %arg4[%c0_7, %c0_8] : memref<512x256xbf16, #tpu.memory_space<vmem>>, vector<512x256xbf16>
    %cst_9 = arith.constant dense<0.000000e+00> : vector<256x256xf32>
    %13 = tpu.matmul %11, %12, %cst_9 {dimension_numbers = #tpu.dot_dimension_numbers<[1], [0], [0], [1], [0, 0, 1, 1], [], []>} : vector<256x512xbf16>, vector<512x256xbf16>, vector<256x256xf32> -> vector<256x256xf32>
    %c0_10 = arith.constant 0 : index
    %c0_11 = arith.constant 0 : index
    %14 = vector.load %arg5[%c0_10, %c0_11] : memref<1x256xf32, #tpu.memory_space<vmem>>, vector<1x256xf32>
    %15 = vector.broadcast %14 : vector<1x256xf32> to vector<256x256xf32>
    %16 = arith.addf %13, %15 : vector<256x256xf32>
    %cst_12 = arith.constant 0.000000e+00 : f32
    %17 = vector.broadcast %cst_12 : f32 to vector<256x256xf32>
    %18 = arith.cmpf ogt, %16, %17 : vector<256x256xf32>
    %cst_13 = arith.constant 2.000000e-01 : f32
    %19 = vector.broadcast %cst_13 : f32 to vector<256x256xf32>
    %20 = arith.mulf %19, %16 : vector<256x256xf32>
    %21 = arith.select %18, %16, %20 : vector<256x256xi1>, vector<256x256xf32>
    %c0_14 = arith.constant 0 : index
    %c0_15 = arith.constant 0 : index
    %22 = vector.load %arg6[%c0_14, %c0_15] : memref<1x256xf32, #tpu.memory_space<vmem>>, vector<1x256xf32>
    %23 = vector.broadcast %22 : vector<1x256xf32> to vector<256x256xf32>
    %24 = arith.mulf %21, %23 : vector<256x256xf32>
    %cst_16 = arith.constant dense<0.000000e+00> : vector<256xf32>
    %25 = vector.multi_reduction <add>, %24, %cst_16 [1] : vector<256x256xf32> to vector<256xf32>
    %26 = vector.shape_cast %25 : vector<256xf32> to vector<256x1xf32>
    %c0_17 = arith.constant 0 : index
    %c0_18 = arith.constant 0 : index
    %27 = memref.load %arg7[%c0_17, %c0_18] : memref<1x1xf32, #tpu.memory_space<smem>>
    %28 = vector.broadcast %27 : f32 to vector<256x1xf32>
    %29 = arith.addf %26, %28 : vector<256x1xf32>
    %cst_19 = arith.constant 0.000000e+00 : f32
    %30 = vector.broadcast %cst_19 : f32 to vector<256x1xf32>
    %31 = arith.subf %30, %29 : vector<256x1xf32>
    %32 = math.exp %31 : vector<256x1xf32>
    %cst_20 = arith.constant 1.000000e+00 : f32
    %33 = vector.broadcast %cst_20 : f32 to vector<256x1xf32>
    %34 = arith.addf %33, %32 : vector<256x1xf32>
    %35 = tpu.reciprocal %34 {approx = true} : vector<256x1xf32> -> vector<256x1xf32>
    %c0_21 = arith.constant 0 : index
    %c0_22 = arith.constant 0 : index
    %36 = vector.load %arg8[%c0_21, %c0_22] : memref<256x1xf32, #tpu.memory_space<vmem>>, vector<256x1xf32>
    tpu.vector_store %arg8[%c0_21, %c0_22], %35 {strides = array<i32>} : memref<256x1xf32, #tpu.memory_space<vmem>>, vector<256x1xf32>,
    return
  }
  func.func @transform_0(%arg0: i32) -> (i32, i32) {
    %c0_i32 = arith.constant 0 : i32
    %c0_i32_0 = arith.constant 0 : i32
    return %arg0, %c0_i32 : i32, i32
  }
  func.func @transform_1(%arg0: i32) -> (i32, i32) {
    %c0_i32 = arith.constant 0 : i32
    %c0_i32_0 = arith.constant 0 : i32
    %c0_i32_1 = arith.constant 0 : i32
    return %c0_i32, %c0_i32_0 : i32, i32
  }
  func.func @transform_2(%arg0: i32) -> (i32, i32) {
    %c0_i32 = arith.constant 0 : i32
    %c0_i32_0 = arith.constant 0 : i32
    %c0_i32_1 = arith.constant 0 : i32
    return %c0_i32, %c0_i32_0 : i32, i32
  }
  func.func @transform_3(%arg0: i32) -> (i32, i32) {
    %c0_i32 = arith.constant 0 : i32
    %c0_i32_0 = arith.constant 0 : i32
    %c0_i32_1 = arith.constant 0 : i32
    return %c0_i32, %c0_i32_0 : i32, i32
  }
  func.func @transform_4(%arg0: i32) -> (i32, i32) {
    %c0_i32 = arith.constant 0 : i32
    %c0_i32_0 = arith.constant 0 : i32
    %c0_i32_1 = arith.constant 0 : i32
    return %c0_i32, %c0_i32_0 : i32, i32
  }
  func.func @transform_5(%arg0: i32) -> (i32, i32) {
    %c0_i32 = arith.constant 0 : i32
    %c0_i32_0 = arith.constant 0 : i32
    %c0_i32_1 = arith.constant 0 : i32
    return %c0_i32, %c0_i32_0 : i32, i32
  }
  func.func @transform_6(%arg0: i32) -> (i32, i32) {
    %c0_i32 = arith.constant 0 : i32
    %c0_i32_0 = arith.constant 0 : i32
    %c0_i32_1 = arith.constant 0 : i32
    return %c0_i32, %c0_i32_0 : i32, i32
  }
  func.func @transform_7(%arg0: i32) -> (i32, i32) {
    %c0_i32 = arith.constant 0 : i32
    %c0_i32_0 = arith.constant 0 : i32
    return %arg0, %c0_i32 : i32, i32
  }
}

</mosaic_0001>

<bundles_post_ra>
// kernel: discriminator_forward.1
= control target key start
LH: loop header
LB: loop body
LE: loop exit
PB: predicated region body
PF: predicated region fallthrough
CT: control target
= control target key end

     0   :  { %s5078_s1 = inlined_call_operand.vmem [shape: bf16[128,512], index: 1, kind: input, shape index: {}]   ;;  %s5079_s3 = inlined_call_operand.vmem [shape: bf16[512,256], index: 3, kind: input, shape index: {}]   ;;  %s5080_s0 = inlined_call_operand.vmem [shape: bf16[256,128], index: 0, kind: input, shape index: {}]   ;;  %s5081_s2 = inlined_call_operand.vmem [shape: f32[1,512], index: 2, kind: input, shape index: {}]   ;;  %s5082_s4 = inlined_call_operand.vmem [shape: f32[1,256], index: 4, kind: input, shape index: {}]   ;;  %s5083_s5 = inlined_call_operand.vmem [shape: f32[1,256], index: 5, kind: input, shape index: {}]   ;;  %s5084_s6 = inlined_call_operand.<no memory space> [shape: f32[1,1], index: 6, kind: input, shape index: {}]   ;;  %s5085_s7 = inlined_call_operand.vmem [shape: f32[256,1], index: 7, kind: output, shape index: {}]  }
   0x1   :  { %v3030_v0 = vld [vmem:[%s5078_s1 + $0xe0] sm:$0xf]  ;;  %v3346_v1 = vld [vmem:[%s5078_s1 + $0xec] sm:$0xf0]  ;;  %v3344_v2 = vld [vmem:[%s5078_s1 + $0xe4] sm:$0xf] }
   0x2   :  { %v3031_v3 = vor.u32 %v3346_v1, %v3030_v0  ;;  %v3032_v4 = vld [vmem:[%s5078_s1 + $0xf0] sm:$0xf0]  ;;  %v3038_v5 = vld [vmem:[%s5078_s1 + $0xe8] sm:$0xf]  ;;  %v3347_v6 = vld [vmem:[%s5078_s1 + $0xf4] sm:$0xf0] }
   0x3   :  { %v3035_v7 = vor.u32 %v3344_v2, %v3032_v4  ;;  %v3039_v8 = vor.u32 %v3347_v6, %v3038_v5  ;;  %v3345_v9 = vld [vmem:[%s5078_s1 + $0xec] sm:$0xf]  ;;  %v3040_v10 = vld [vmem:[%s5078_s1 + $0xf8] sm:$0xf0]  ;;  %v3014_v11 = vld [vmem:[%s5078_s1 + $0xc0] sm:$0xf] }
   0x4   :  { %357 = vmatpush.bf16.msra.mxu0 %v3031_v3  ;;  %v3043_v12 = vor.u32 %v3345_v9, %v3040_v10  ;;  %v3342_v13 = vld [vmem:[%s5078_s1 + $0xcc] sm:$0xf0]  ;;  %v3340_v14 = vld [vmem:[%s5078_s1 + $0xc4] sm:$0xf]  ;;  %v3016_v15 = vld [vmem:[%s5078_s1 + $0xd0] sm:$0xf0] }
   0x5   :  { %446 = vmatpush.bf16.msra.mxu1 %v3035_v7  ;;  %535 = vmatpush.bf16.msra.mxu2 %v3039_v8  ;;  %v3015_v16 = vor.u32 %v3342_v13, %v3014_v11  ;;  %v3019_v17 = vor.u32 %v3340_v14, %v3016_v15  ;;  %v3022_v18 = vld [vmem:[%s5078_s1 + $0xc8] sm:$0xf]  ;;  %v3343_v19 = vld [vmem:[%s5078_s1 + $0xd4] sm:$0xf0]  ;;  %v3341_v20 = vld [vmem:[%s5078_s1 + $0xcc] sm:$0xf] }
   0x6   :  { %624 = vmatpush.bf16.msra.mxu3 %v3043_v12  ;;  %v3023_v21 = vor.u32 %v3343_v19, %v3022_v18  ;;  %v3024_v22 = vld [vmem:[%s5078_s1 + $0xd8] sm:$0xf0]  ;;  %v2998_v23 = vld [vmem:[%s5078_s1 + $0xa0] sm:$0xf]  ;;  %v3338_v24 = vld [vmem:[%s5078_s1 + $0xac] sm:$0xf0] }
   0x7   :  { %v3027_v25 = vor.u32 %v3341_v20, %v3024_v22  ;;  %v3336_v26 = vld [vmem:[%s5078_s1 + $0xa4] sm:$0xf]  ;;  %v3000_v27 = vld [vmem:[%s5078_s1 + $0xb0] sm:$0xf0]  ;;  %v3006_v28 = vld [vmem:[%s5078_s1 + $0xa8] sm:$0xf]  ;;  %v2999_v29 = vor.u32 %v3338_v24, %v2998_v23 }
   0x8   :  { %358 = vmatpush.bf16.msra.mxu0 %v3015_v16  ;;  %v3339_v30 = vld [vmem:[%s5078_s1 + $0xb4] sm:$0xf0]  ;;  %v3337_v31 = vld [vmem:[%s5078_s1 + $0xac] sm:$0xf]  ;;  %v3008_v32 = vld [vmem:[%s5078_s1 + $0xb8] sm:$0xf0]  ;;  %v3003_v33 = vor.u32 %v3336_v26, %v3000_v27 }
   0x9   :  { %447 = vmatpush.bf16.msra.mxu1 %v3019_v17  ;;  %536 = vmatpush.bf16.msra.mxu2 %v3023_v21  ;;  %v3007_v34 = vor.u32 %v3339_v30, %v3006_v28  ;;  %v2982_v35 = vld [vmem:[%s5078_s1 + $0x80] sm:$0xf]  ;;  %v3334_v36 = vld [vmem:[%s5078_s1 + $0x8c] sm:$0xf0]  ;;  %v3332_v37 = vld [vmem:[%s5078_s1 + $0x84] sm:$0xf]  ;;  %v3011_v38 = vor.u32 %v3337_v31, %v3008_v32 }
   0xa   :  { %625 = vmatpush.bf16.msra.mxu3 %v3027_v25  ;;  %v2984_v39 = vld [vmem:[%s5078_s1 + $0x90] sm:$0xf0]  ;;  %v2990_v40 = vld [vmem:[%s5078_s1 + $0x88] sm:$0xf]  ;;  %v3335_v41 = vld [vmem:[%s5078_s1 + $0x94] sm:$0xf0]  ;;  %v2983_v44 = vor.u32 %v3334_v36, %v2982_v35 }
   0xb   :  { %v3333_v42 = vld [vmem:[%s5078_s1 + $0x8c] sm:$0xf]  ;;  %v2992_v43 = vld [vmem:[%s5078_s1 + $0x98] sm:$0xf0]  ;;  %v2987_v45 = vor.u32 %v3332_v37, %v2984_v39  ;;  %v2991_v46 = vor.u32 %v3335_v41, %v2990_v40  ;;  %v2966_v47 = vld [vmem:[%s5078_s1 + $0x60] sm:$0xf] }
   0xc   :  { %359 = vmatpush.bf16.msra.mxu0 %v2999_v29  ;;  %v3330_v48 = vld [vmem:[%s5078_s1 + $0x6c] sm:$0xf0]  ;;  %v3328_v49 = vld [vmem:[%s5078_s1 + $0x64] sm:$0xf]  ;;  %v2995_v50 = vor.u32 %v3333_v42, %v2992_v43  ;;  %v2968_v51 = vld [vmem:[%s5078_s1 + $0x70] sm:$0xf0] }
   0xd   :  { %448 = vmatpush.bf16.msra.mxu1 %v3003_v33  ;;  %537 = vmatpush.bf16.msra.mxu2 %v3007_v34  ;;  %v2974_v52 = vld [vmem:[%s5078_s1 + $0x68] sm:$0xf]  ;;  %v3331_v53 = vld [vmem:[%s5078_s1 + $0x74] sm:$0xf0]  ;;  %v3329_v54 = vld [vmem:[%s5078_s1 + $0x6c] sm:$0xf]  ;;  %v2967_v56 = vor.u32 %v3330_v48, %v2966_v47  ;;  %v2971_v57 = vor.u32 %v3328_v49, %v2968_v51 }
   0xe   :  { %626 = vmatpush.bf16.msra.mxu3 %v3011_v38  ;;  %v2976_v55 = vld [vmem:[%s5078_s1 + $0x78] sm:$0xf0]  ;;  %v2975_v58 = vor.u32 %v3331_v53, %v2974_v52  ;;  %v2950_v59 = vld [vmem:[%s5078_s1 + $0x40] sm:$0xf]  ;;  %v3326_v60 = vld [vmem:[%s5078_s1 + $0x4c] sm:$0xf0] }
   0xf   :  { %v3324_v61 = vld [vmem:[%s5078_s1 + $0x44] sm:$0xf]  ;;  %v2979_v62 = vor.u32 %v3329_v54, %v2976_v55  ;;  %v2952_v63 = vld [vmem:[%s5078_s1 + $0x50] sm:$0xf0]  ;;  %v2958_v0 = vld [vmem:[%s5078_s1 + $0x48] sm:$0xf]  ;;  %v2951_v4 = vor.u32 %v3326_v60, %v2950_v59 }
  0x10   :  { %360 = vmatpush.bf16.msra.mxu0 %v2983_v44  ;;  %v3327_v1 = vld [vmem:[%s5078_s1 + $0x54] sm:$0xf0]  ;;  %v3325_v2 = vld [vmem:[%s5078_s1 + $0x4c] sm:$0xf]  ;;  %v2960_v3 = vld [vmem:[%s5078_s1 + $0x58] sm:$0xf0]  ;;  %v2955_v5 = vor.u32 %v3324_v61, %v2952_v63 }
  0x11   :  { %449 = vmatpush.bf16.msra.mxu1 %v2987_v45  ;;  %538 = vmatpush.bf16.msra.mxu2 %v2991_v46  ;;  %v2959_v6 = vor.u32 %v3327_v1, %v2958_v0  ;;  %v2934_v7 = vld [vmem:[%s5078_s1 + $0x20] sm:$0xf]  ;;  %v3322_v8 = vld [vmem:[%s5078_s1 + $0x2c] sm:$0xf0]  ;;  %v3320_v9 = vld [vmem:[%s5078_s1 + $0x24] sm:$0xf]  ;;  %v2963_v10 = vor.u32 %v3325_v2, %v2960_v3 }
  0x12   :  { %627 = vmatpush.bf16.msra.mxu3 %v2995_v50  ;;  %v2936_v11 = vld [vmem:[%s5078_s1 + $0x30] sm:$0xf0]  ;;  %v2942_v12 = vld [vmem:[%s5078_s1 + $0x28] sm:$0xf]  ;;  %v3323_v13 = vld [vmem:[%s5078_s1 + $0x34] sm:$0xf0]  ;;  %v2935_v16 = vor.u32 %v3322_v8, %v2934_v7 }
  0x13   :  { %v3321_v14 = vld [vmem:[%s5078_s1 + $0x2c] sm:$0xf]  ;;  %v2944_v15 = vld [vmem:[%s5078_s1 + $0x38] sm:$0xf0]  ;;  %v2918_v17 = vld [vmem:[%s5078_s1] sm:$0xf]  ;;  %v2939_v18 = vor.u32 %v3320_v9, %v2936_v11  ;;  %v2943_v19 = vor.u32 %v3323_v13, %v2942_v12 }
  0x14   :  { %361 = vmatpush.bf16.msra.mxu0 %v2967_v56  ;;  %v3318_v20 = vld [vmem:[%s5078_s1 + $0xc] sm:$0xf0]  ;;  %v3316_v21 = vld [vmem:[%s5078_s1 + $0x4] sm:$0xf]  ;;  %v2920_v22 = vld [vmem:[%s5078_s1 + $0x10] sm:$0xf0]  ;;  %v2947_v23 = vor.u32 %v3321_v14, %v2944_v15 }
  0x15   :  { %450 = vmatpush.bf16.msra.mxu1 %v2971_v57  ;;  %539 = vmatpush.bf16.msra.mxu2 %v2975_v58  ;;  %v2926_v24 = vld [vmem:[%s5078_s1 + $0x8] sm:$0xf]  ;;  %v3319_v25 = vld [vmem:[%s5078_s1 + $0x14] sm:$0xf0]  ;;  %v3317_v26 = vld [vmem:[%s5078_s1 + $0xc] sm:$0xf]  ;;  %v2919_v30 = vor.u32 %v3318_v20, %v2918_v17  ;;  %v2923_v33 = vor.u32 %v3316_v21, %v2920_v22 }
  0x16   :  { %628 = vmatpush.bf16.msra.mxu3 %v2979_v62  ;;  %v2928_v27 = vld [vmem:[%s5078_s1 + $0x18] sm:$0xf0]  ;;  %v3230_v28 = vld [vmem:[%s5079_s3 + $0x170] sm:$0xf]  ;;  %v3395_v29 = vld [vmem:[%s5079_s3 + $0x174] sm:$0xf0]  ;;  %v2927_v34 = vor.u32 %v3319_v25, %v2926_v24 }
  0x17   :  { %v3294_v31 = vld [vmem:[%s5079_s3 + $0x1f0] sm:$0xf]  ;;  %v3411_v32 = vld [vmem:[%s5079_s3 + $0x1f4] sm:$0xf0]  ;;  %v2931_v35 = vor.u32 %v3317_v26, %v2928_v27  ;;  %v3231_v36 = vor.u32 %v3395_v29, %v3230_v28  ;;  %v3300_v39 = vld [vmem:[%s5080_s0] sm:$0xff] }
  0x18   :  { %362 = vmatpush.bf16.msra.mxu0 %v2951_v4  ;;  %v3102_v37 = vld [vmem:[%s5079_s3 + $0x70] sm:$0xf]  ;;  %v3363_v38 = vld [vmem:[%s5079_s3 + $0x74] sm:$0xf0]  ;;  %v3295_v40 = vor.u32 %v3411_v32, %v3294_v31  ;;  %v3222_v45 = vld [vmem:[%s5079_s3 + $0x160] sm:$0xf] }
  0x19   :  { %451 = vmatpush.bf16.msra.mxu1 %v2955_v5  ;;  %540 = vmatpush.bf16.msra.mxu2 %v2959_v6  ;;  %v3166_v41 = vld [vmem:[%s5079_s3 + $0xf0] sm:$0xf]  ;;  %v3379_v42 = vld [vmem:[%s5079_s3 + $0xf4] sm:$0xf0]  ;;  %v3103_v43 = vor.u32 %v3363_v38, %v3102_v37  ;;  %v3393_v46 = vld [vmem:[%s5079_s3 + $0x164] sm:$0xf0] }
  0x1a   :  { %629 = vmatpush.bf16.msra.mxu3 %v2963_v10  ;;  %v3167_v44 = vor.u32 %v3379_v42, %v3166_v41  ;;  %v3094_v47 = vld [vmem:[%s5079_s3 + $0x60] sm:$0xf]  ;;  %v3223_v48 = vor.u32 %v3393_v46, %v3222_v45  ;;  %v3361_v49 = vld [vmem:[%s5079_s3 + $0x64] sm:$0xf0]  ;;  %v3302_v58 = vld [vmem:[%s5080_s0 + $0x10] sm:$0xff] }
  0x1b   :  { %v3286_v50 = vld [vmem:[%s5079_s3 + $0x1e0] sm:$0xf]  ;;  %v3409_v51 = vld [vmem:[%s5079_s3 + $0x1e4] sm:$0xf0]  ;;  %v3095_v52 = vor.u32 %v3361_v49, %v3094_v47  ;;  %v3214_v59 = vld [vmem:[%s5079_s3 + $0x150] sm:$0xf] }
  0x1c   :  { %363 = vmatpush.bf16.msra.mxu0 %v2935_v16  ;;  %v3287_v53 = vor.u32 %v3409_v51, %v3286_v50  ;;  %v3158_v54 = vld [vmem:[%s5079_s3 + $0xe0] sm:$0xf]  ;;  %v3377_v55 = vld [vmem:[%s5079_s3 + $0xe4] sm:$0xf0]  ;;  %v3391_v60 = vld [vmem:[%s5079_s3 + $0x154] sm:$0xf0] }
  0x1d   :  { %452 = vmatpush.bf16.msra.mxu1 %v2939_v18  ;;  %541 = vmatpush.bf16.msra.mxu2 %v2943_v19  ;;  %v3159_v56 = vor.u32 %v3377_v55, %v3158_v54  ;;  %v3301_v57 = vld [vmem:[%s5080_s0 + $0x8] sm:$0xff]  ;;  %v3086_v61 = vld [vmem:[%s5079_s3 + $0x50] sm:$0xf]  ;;  %v3215_v62 = vor.u32 %v3391_v60, %v3214_v59  ;;  %v3359_v63 = vld [vmem:[%s5079_s3 + $0x54] sm:$0xf0] }
  0x1e   :  { %630 = vmatpush.bf16.msra.mxu3 %v2947_v23  ;;  %v3278_v0 = vld [vmem:[%s5079_s3 + $0x1d0] sm:$0xf]  ;;  %v3407_v1 = vld [vmem:[%s5079_s3 + $0x1d4] sm:$0xf0]  ;;  %v3087_v2 = vor.u32 %v3359_v63, %v3086_v61  ;;  %v3304_v8 = vld [vmem:[%s5080_s0 + $0x20] sm:$0xff] }
  0x1f   :  { %v3279_v3 = vor.u32 %v3407_v1, %v3278_v0  ;;  %v3150_v4 = vld [vmem:[%s5079_s3 + $0xd0] sm:$0xf]  ;;  %v3375_v5 = vld [vmem:[%s5079_s3 + $0xd4] sm:$0xf0]  ;;  %v3206_v9 = vld [vmem:[%s5079_s3 + $0x140] sm:$0xf] }
  0x20   :  { %364 = vmatpush.bf16.msra.mxu0 %v2919_v30  ;;  %v3151_v6 = vor.u32 %v3375_v5, %v3150_v4  ;;  %v3303_v7 = vld [vmem:[%s5080_s0 + $0x18] sm:$0xff]  ;;  %v3389_v10 = vld [vmem:[%s5079_s3 + $0x144] sm:$0xf0]  ;;  %v3078_v11 = vld [vmem:[%s5079_s3 + $0x40] sm:$0xf] }
  0x21   :  { %453 = vmatpush.bf16.msra.mxu1 %v2923_v33  ;;  %542 = vmatpush.bf16.msra.mxu2 %v2927_v34  ;;  %v3207_v12 = vor.u32 %v3389_v10, %v3206_v9  ;;  %v3357_v13 = vld [vmem:[%s5079_s3 + $0x44] sm:$0xf0]  ;;  %v3270_v14 = vld [vmem:[%s5079_s3 + $0x1c0] sm:$0xf]  ;;  %v3306_v22 = vld [vmem:[%s5080_s0 + $0x30] sm:$0xff] }
  0x22   :  { %631 = vmatpush.bf16.msra.mxu3 %v2931_v35  ;;  %v3405_v15 = vld [vmem:[%s5079_s3 + $0x1c4] sm:$0xf0]  ;;  %v3079_v16 = vor.u32 %v3357_v13, %v3078_v11  ;;  %v3142_v18 = vld [vmem:[%s5079_s3 + $0xc0] sm:$0xf]  ;;  %v3198_v23 = vld [vmem:[%s5079_s3 + $0x130] sm:$0xf] }
  0x23   :  { %365 = vmatmul.bf16.vlgmr.msra.gmra.mxu0 %v3300_v39  ;;  %v3271_v17 = vor.u32 %v3405_v15, %v3270_v14  ;;  %v3373_v19 = vld [vmem:[%s5079_s3 + $0xc4] sm:$0xf0]  ;;  %v3387_v24 = vld [vmem:[%s5079_s3 + $0x134] sm:$0xf0]  ;;  %v3070_v25 = vld [vmem:[%s5079_s3 + $0x30] sm:$0xf] }
  0x24   :  { %454 = vmatmul.bf16.vlgmr.msra.gmra.mxu1 %v3300_v39  ;;  %543 = vmatmul.bf16.vlgmr.msra.gmra.mxu2 %v3300_v39  ;;  %v3143_v20 = vor.u32 %v3373_v19, %v3142_v18  ;;  %v3305_v21 = vld [vmem:[%s5080_s0 + $0x28] sm:$0xff]  ;;  %v3199_v26 = vor.u32 %v3387_v24, %v3198_v23  ;;  %v3355_v27 = vld [vmem:[%s5079_s3 + $0x34] sm:$0xf0]  ;;  %v3262_v28 = vld [vmem:[%s5079_s3 + $0x1b0] sm:$0xf] }
  0x25   :  { %1729 = vmatpush.bf16.msrb.mxu2 %v3231_v36  ;;  %632 = vmatmul.bf16.vlgmr.msra.gmra.mxu3 %v3300_v39  ;;  %v3403_v29 = vld [vmem:[%s5079_s3 + $0x1b4] sm:$0xf0]  ;;  %v3071_v30 = vor.u32 %v3355_v27, %v3070_v25  ;;  %v3134_v32 = vld [vmem:[%s5079_s3 + $0xb0] sm:$0xf]  ;;  %v91_v36 = vld [vmem:[%s5081_s2] sm:$0xf] }
  0x26   :  { %1818 = vmatpush.bf16.msrb.mxu3 %v3295_v40  ;;  %1551 = vmatpush.bf16.msrb.mxu0 %v3103_v43  ;;  %v3263_v31 = vor.u32 %v3403_v29, %v3262_v28  ;;  %v3371_v33 = vld [vmem:[%s5079_s3 + $0xb4] sm:$0xf0]  ;;  %v3308_v37 = vld [vmem:[%s5080_s0 + $0x40] sm:$0xff]  ;;  %v3922_v39 = vperm.slane %v91_v36, 0  ;;  %v3924_v41 = vperm.slane %v91_v36, 1  ;;  %v3946_v54 = vperm.slane %v91_v36, 2 }
  0x27   :  { %1640 = vmatpush.bf16.msrb.mxu1 %v3167_v44  ;;  %v3135_v34 = vor.u32 %v3371_v33, %v3134_v32  ;;  %v3307_v35 = vld [vmem:[%s5080_s0 + $0x38] sm:$0xff]  ;;  %v3190_v43 = vld [vmem:[%s5079_s3 + $0x120] sm:$0xf]  ;;  %v3385_v44 = vld [vmem:[%s5079_s3 + $0x124] sm:$0xf0] }
  0x28   :  { %v3062_v45 = vld [vmem:[%s5079_s3 + $0x20] sm:$0xf]  ;;  %v3191_v47 = vor.u32 %v3385_v44, %v3190_v43  ;;  %v3401_v50 = vld [vmem:[%s5079_s3 + $0x1a4] sm:$0xf0] }
  0x29   :  { %1730 = vmatpush.bf16.msrb.mxu2 %v3223_v48  ;;  %v3353_v48 = vld [vmem:[%s5079_s3 + $0x24] sm:$0xf0]  ;;  %v3254_v49 = vld [vmem:[%s5079_s3 + $0x1a0] sm:$0xf] }
  0x2a   :  { %1552 = vmatpush.bf16.msrb.mxu0 %v3095_v52  ;;  %1819 = vmatpush.bf16.msrb.mxu3 %v3287_v53  ;;  %v3063_v52 = vor.u32 %v3353_v48, %v3062_v45  ;;  %v3255_v53 = vor.u32 %v3401_v50, %v3254_v49  ;;  %v3309_v13 = vld [vmem:[%s5080_s0 + $0x48] sm:$0xff] }
  0x2b   :  { %1641 = vmatpush.bf16.msrb.mxu1 %v3159_v56 }
  0x2d   :  { %1731 = vmatpush.bf16.msrb.mxu2 %v3215_v62 }
  0x2e   :  { %1553 = vmatpush.bf16.msrb.mxu0 %v3087_v2  ;;  %1820 = vmatpush.bf16.msrb.mxu3 %v3279_v3  ;;  %v3126_v2 = vld [vmem:[%s5079_s3 + $0xa0] sm:$0xf] }
  0x2f   :  { %1642 = vmatpush.bf16.msrb.mxu1 %v3151_v6  ;;  %v3369_v6 = vld [vmem:[%s5079_s3 + $0xa4] sm:$0xf0] }
  0x30   :  { %v3127_v10 = vor.u32 %v3369_v6, %v3126_v2 }
  0x31   :  { %1732 = vmatpush.bf16.msrb.mxu2 %v3207_v12 }
  0x32   :  { %1554 = vmatpush.bf16.msrb.mxu0 %v3079_v16  ;;  %1821 = vmatpush.bf16.msrb.mxu3 %v3271_v17 }
  0x33   :  { %370 = vmatmul.bf16.gmra.mxu0 %v3301_v57  ;;  %1643 = vmatpush.bf16.msrb.mxu1 %v3143_v20 }
  0x34   :  { %459 = vmatmul.bf16.gmra.mxu1 %v3301_v57  ;;  %548 = vmatmul.bf16.gmra.mxu2 %v3301_v57 }
  0x35   :  { %637 = vmatmul.bf16.gmra.mxu3 %v3301_v57  ;;  %1733 = vmatpush.bf16.msrb.mxu2 %v3199_v26 }
  0x36   :  { %1555 = vmatpush.bf16.msrb.mxu0 %v3071_v30  ;;  %1822 = vmatpush.bf16.msrb.mxu3 %v3263_v31 }
  0x37   :  { %1644 = vmatpush.bf16.msrb.mxu1 %v3135_v34 }
  0x39   :  { %1734 = vmatpush.bf16.msrb.mxu2 %v3191_v47 }
  0x3a   :  { %1556 = vmatpush.bf16.msrb.mxu0 %v3063_v52  ;;  %1823 = vmatpush.bf16.msrb.mxu3 %v3255_v53 }
  0x3b   :  { %1645 = vmatpush.bf16.msrb.mxu1 %v3127_v10 }
  0x43   :  { %375 = vmatmul.bf16.gmra.mxu0 %v3302_v58 }
  0x44   :  { %464 = vmatmul.bf16.gmra.mxu1 %v3302_v58  ;;  %553 = vmatmul.bf16.gmra.mxu2 %v3302_v58 }
  0x45   :  { %642 = vmatmul.bf16.gmra.mxu3 %v3302_v58  ;;  %v3948_v58 = vperm.slane %v91_v36, 3 }
  0x53   :  { %380 = vmatmul.bf16.gmra.mxu0 %v3303_v7 }
  0x54   :  { %469 = vmatmul.bf16.gmra.mxu1 %v3303_v7  ;;  %558 = vmatmul.bf16.gmra.mxu2 %v3303_v7 }
  0x55   :  { %647 = vmatmul.bf16.gmra.mxu3 %v3303_v7 }
  0x63   :  { %385 = vmatmul.bf16.gmra.mxu0 %v3304_v8 }
  0x64   :  { %474 = vmatmul.bf16.gmra.mxu1 %v3304_v8  ;;  %563 = vmatmul.bf16.gmra.mxu2 %v3304_v8 }
  0x65   :  { %652 = vmatmul.bf16.gmra.mxu3 %v3304_v8 }
  0x73   :  { %390 = vmatmul.bf16.gmra.mxu0 %v3305_v21 }
  0x74   :  { %479 = vmatmul.bf16.gmra.mxu1 %v3305_v21  ;;  %568 = vmatmul.bf16.gmra.mxu2 %v3305_v21 }
  0x75   :  { %657 = vmatmul.bf16.gmra.mxu3 %v3305_v21 }
  0x83   :  { %395 = vmatmul.bf16.gmra.mxu0 %v3306_v22 }
  0x84   :  { %484 = vmatmul.bf16.gmra.mxu1 %v3306_v22  ;;  %573 = vmatmul.bf16.gmra.mxu2 %v3306_v22 }
  0x85   :  { %662 = vmatmul.bf16.gmra.mxu3 %v3306_v22 }
  0x93   :  { %400 = vmatmul.bf16.gmra.mxu0 %v3307_v35 }
  0x94   :  { %489 = vmatmul.bf16.gmra.mxu1 %v3307_v35  ;;  %578 = vmatmul.bf16.gmra.mxu2 %v3307_v35 }
  0x95   :  { %667 = vmatmul.bf16.gmra.mxu3 %v3307_v35 }
  0xa0   :  { %v366_v38 = vpop.f32.mrf.mxu0 }
  0xa1   :  { %v455_v40 = vpop.f32.mrf.mxu1  ;;  %v367_v42 = vadd.f32 %v366_v38, %v3922_v39 }
  0xa2   :  { %v456_v46 = vadd.f32 %v455_v40, %v3924_v41 }
  0xa3   :  { %405 = vmatmul.bf16.gmra.mxu0 %v3308_v37  ;;  %v841_v57 = vmul.f32 0.2, %v367_v42  ;;  %vm713_vm0 = vcmp.gt.f32.partialorder %v367_v42, 0.0 }
  0xa4   :  { %494 = vmatmul.bf16.gmra.mxu1 %v3308_v37  ;;  %583 = vmatmul.bf16.gmra.mxu2 %v3308_v37  ;;  %v842_v61 = vmul.f32 0.2, %v456_v46  ;;  %vm714_vm1 = vcmp.gt.f32.partialorder %v456_v46, 0.0 }
  0xa5   :  { %672 = vmatmul.bf16.gmra.mxu3 %v3308_v37  ;;  %v969_v3 = vsel %vm713_vm0, %v367_v42, %v841_v57 }
  0xa6   :  { %v970_v7 = vsel %vm714_vm1, %v456_v46, %v842_v61 }
  0xa7   :  { %v544_v51 = vpop.f32.mrf.mxu2 }
  0xa8   :  { %v633_v55 = vpop.f32.mrf.mxu3  ;;  %v368_v56 = vpop.f32.mrf.mxu0  ;;  %v545_v0 = vadd.f32 %v544_v51, %v3946_v54  ;;  %v3310_v51 = vld [vmem:[%s5080_s0 + $0x50] sm:$0xff] }
  0xa9   :  { %v369_v59 = vadd.f32 %v368_v56, %v3922_v39  ;;  %v457_v60 = vpop.f32.mrf.mxu1  ;;  %v634_v4 = vadd.f32 %v633_v55, %v3948_v58 }
  0xaa   :  { %v458_v62 = vadd.f32 %v457_v60, %v3924_v41  ;;  %v843_v14 = vmul.f32 0.2, %v545_v0  ;;  %vm715_vm4 = vcmp.gt.f32.partialorder %v545_v0, 0.0 }
  0xab   :  { %vm717_vm2 = vcmp.gt.f32.partialorder %v369_v59, 0.0  ;;  %v845_v63 = vmul.f32 0.2, %v369_v59  ;;  %v844_v18 = vmul.f32 0.2, %v634_v4  ;;  %vm716_vm5 = vcmp.gt.f32.partialorder %v634_v4, 0.0 }
  0xac   :  { %vm718_vm3 = vcmp.gt.f32.partialorder %v458_v62, 0.0  ;;  %v846_v1 = vmul.f32 0.2, %v458_v62  ;;  %v971_v23 = vsel %vm715_vm4, %v545_v0, %v843_v14  ;;  %v3246_v14 = vld [vmem:[%s5079_s3 + $0x190] sm:$0xf] }
  0xad   :  { %v973_v5 = vsel %vm717_vm2, %v369_v59, %v845_v63  ;;  %v972_v25 = vsel %vm716_vm5, %v634_v4, %v844_v18  ;;  %v3383_v4 = vld [vmem:[%s5079_s3 + $0x114] sm:$0xf0] }
  0xae   :  { %v3960_v8 = vpack.c.bf16 %v973_v5, %v969_v3  ;;  %v974_v9 = vsel %vm718_vm3, %v458_v62, %v846_v1  ;;  %v3182_v3 = vld [vmem:[%s5079_s3 + $0x110] sm:$0xf] }
  0xaf   :  { %v3962_v11 = vpack.c.bf16 %v974_v9, %v970_v7  ;;  %v546_v12 = vpop.f32.mrf.mxu2  ;;  %v3054_v5 = vld [vmem:[%s5079_s3 + $0x10] sm:$0xf] }
  0xb0   :  { %v547_v15 = vadd.f32 %v546_v12, %v3946_v54  ;;  %v635_v16 = vpop.f32.mrf.mxu3  ;;  %v371_v17 = vpop.f32.mrf.mxu0  ;;  %v3183_v12 = vor.u32 %v3383_v4, %v3182_v3 }
  0xb1   :  { %v636_v19 = vadd.f32 %v635_v16, %v3948_v58  ;;  %v460_v20 = vpop.f32.mrf.mxu1  ;;  %v372_v28 = vadd.f32 %v371_v17, %v3922_v39 }
  0xb2   :  { %vm719_vm6 = vcmp.gt.f32.partialorder %v547_v15, 0.0  ;;  %v847_v21 = vmul.f32 0.2, %v547_v15  ;;  %v461_v30 = vadd.f32 %v460_v20, %v3924_v41  ;;  %1735 = vmatpush.bf16.msrb.mxu2 %v3183_v12 }
  0xb3   :  { %vm720_vm7 = vcmp.gt.f32.partialorder %v636_v19, 0.0  ;;  %v848_v22 = vmul.f32 0.2, %v636_v19  ;;  %410 = vmatmul.bf16.gmra.mxu0 %v3309_v13  ;;  %v849_v34 = vmul.f32 0.2, %v372_v28  ;;  %vm721_vm8 = vcmp.gt.f32.partialorder %v372_v28, 0.0 }
  0xb4   :  { %v975_v24 = vsel %vm719_vm6, %v547_v15, %v847_v21  ;;  %499 = vmatmul.bf16.gmra.mxu1 %v3309_v13  ;;  %588 = vmatmul.bf16.gmra.mxu2 %v3309_v13  ;;  %v850_v37 = vmul.f32 0.2, %v461_v30  ;;  %vm722_vm9 = vcmp.gt.f32.partialorder %v461_v30, 0.0  ;;  %v3399_v15 = vld [vmem:[%s5079_s3 + $0x194] sm:$0xf0] }
  0xb5   :  { %v3969_v26 = vpack.c.bf16 %v975_v24, %v971_v23  ;;  %v976_v27 = vsel %vm720_vm7, %v636_v19, %v848_v22  ;;  %677 = vmatmul.bf16.gmra.mxu3 %v3309_v13  ;;  %v977_v45 = vsel %vm721_vm8, %v372_v28, %v849_v34  ;;  %v3351_v13 = vld [vmem:[%s5079_s3 + $0x14] sm:$0xf0]  ;;  %v3247_v19 = vor.u32 %v3399_v15, %v3246_v14 }
  0xb6   :  { %v3972_v29 = vpack.c.bf16 %v976_v27, %v972_v25  ;;  %v978_v48 = vsel %vm722_vm9, %v461_v30, %v850_v37  ;;  %v3055_v18 = vor.u32 %v3351_v13, %v3054_v5  ;;  %v3367_v34 = vld [vmem:[%s5079_s3 + $0x94] sm:$0xf0] }
  0xb7   :  { %v549_v31 = vpop.f32.mrf.mxu2  ;;  %1824 = vmatpush.bf16.msrb.mxu3 %v3247_v19 }
  0xb8   :  { %v638_v32 = vpop.f32.mrf.mxu3  ;;  %v373_v33 = vpop.f32.mrf.mxu0  ;;  %v550_v42 = vadd.f32 %v549_v31, %v3946_v54  ;;  %1557 = vmatpush.bf16.msrb.mxu0 %v3055_v18 }
  0xb9   :  { %v374_v35 = vadd.f32 %v373_v33, %v3922_v39  ;;  %v462_v36 = vpop.f32.mrf.mxu1  ;;  %v639_v44 = vadd.f32 %v638_v32, %v3948_v58  ;;  %v3118_v32 = vld [vmem:[%s5079_s3 + $0x90] sm:$0xf] }
  0xba   :  { %v463_v38 = vadd.f32 %v462_v36, %v3924_v41  ;;  %v851_v53 = vmul.f32 0.2, %v550_v42  ;;  %vm723_vm12 = vcmp.gt.f32.partialorder %v550_v42, 0.0  ;;  %v3119_v37 = vor.u32 %v3367_v34, %v3118_v32 }
  0xbb   :  { %vm725_vm10 = vcmp.gt.f32.partialorder %v374_v35, 0.0  ;;  %v853_v40 = vmul.f32 0.2, %v374_v35  ;;  %v852_v59 = vmul.f32 0.2, %v639_v44  ;;  %vm724_vm13 = vcmp.gt.f32.partialorder %v639_v44, 0.0 }
  0xbc   :  { %vm726_vm11 = vcmp.gt.f32.partialorder %v463_v38, 0.0  ;;  %v854_v43 = vmul.f32 0.2, %v463_v38  ;;  %v979_v0 = vsel %vm723_vm12, %v550_v42, %v851_v53  ;;  %1646 = vmatpush.bf16.msrb.mxu1 %v3119_v37 }
  0xbd   :  { %v981_v46 = vsel %vm725_vm10, %v374_v35, %v853_v40  ;;  %v980_v7 = vsel %vm724_vm13, %v639_v44, %v852_v59  ;;  %v3311_v44 = vld [vmem:[%s5080_s0 + $0x58] sm:$0xff] }
  0xbe   :  { %v3979_v47 = vpack.c.bf16 %v981_v46, %v977_v45  ;;  %v982_v49 = vsel %vm726_vm11, %v463_v38, %v854_v43 }
  0xbf   :  { %v551_v50 = vpop.f32.mrf.mxu2  ;;  %v3984_v52 = vpack.c.bf16 %v982_v49, %v978_v48 }
  0xc0   :  { %v552_v55 = vadd.f32 %v551_v50, %v3946_v54  ;;  %v640_v56 = vpop.f32.mrf.mxu3  ;;  %v376_v57 = vpop.f32.mrf.mxu0 }
  0xc1   :  { %v641_v60 = vadd.f32 %v640_v56, %v3948_v58  ;;  %v465_v61 = vpop.f32.mrf.mxu1  ;;  %v377_v2 = vadd.f32 %v376_v57, %v3922_v39 }
  0xc2   :  { %vm727_vm14 = vcmp.gt.f32.partialorder %v552_v55, 0.0  ;;  %v855_v62 = vmul.f32 0.2, %v552_v55  ;;  %v466_v10 = vadd.f32 %v465_v61, %v3924_v41 }
  0xc3   :  { %vm728_vm15 = vcmp.gt.f32.partialorder %v641_v60, 0.0  ;;  %v856_v63 = vmul.f32 0.2, %v641_v60  ;;  %415 = vmatmul.bf16.gmra.mxu0 %v3310_v51  ;;  %v857_v22 = vmul.f32 0.2, %v377_v2  ;;  %vm729_vm0 = vcmp.gt.f32.partialorder %v377_v2, 0.0 }
  0xc4   :  { %504 = vmatmul.bf16.gmra.mxu1 %v3310_v51  ;;  %593 = vmatmul.bf16.gmra.mxu2 %v3310_v51  ;;  %v983_v1 = vsel %vm727_vm14, %v552_v55, %v855_v62  ;;  %v858_v25 = vmul.f32 0.2, %v466_v10  ;;  %vm730_vm1 = vcmp.gt.f32.partialorder %v466_v10, 0.0 }
  0xc5   :  { %682 = vmatmul.bf16.gmra.mxu3 %v3310_v51  ;;  %v3998_v6 = vpack.c.bf16 %v983_v1, %v979_v0  ;;  %v984_v9 = vsel %vm728_vm15, %v641_v60, %v856_v63  ;;  %v985_v35 = vsel %vm729_vm0, %v377_v2, %v857_v22 }
  0xc6   :  { %v4011_v16 = vpack.c.bf16 %v984_v9, %v980_v7  ;;  %v986_v40 = vsel %vm730_vm1, %v466_v10, %v858_v25  ;;  %v3312_v25 = vld [vmem:[%s5080_s0 + $0x60] sm:$0xff] }
  0xc7   :  { %5128 = vst [vmem:[#allocation3_spill] sm:$0xff] %v3998_v6  ;;  %v554_v17 = vpop.f32.mrf.mxu2 }
  0xc8   :  { %5129 = vst [vmem:[#allocation4_spill] sm:$0xff] %v4011_v16  ;;  %v643_v20 = vpop.f32.mrf.mxu3  ;;  %v378_v21 = vpop.f32.mrf.mxu0  ;;  %v555_v30 = vadd.f32 %v554_v17, %v3946_v54 }
  0xc9   :  { %v379_v23 = vadd.f32 %v378_v21, %v3922_v39  ;;  %v467_v24 = vpop.f32.mrf.mxu1  ;;  %v644_v33 = vadd.f32 %v643_v20, %v3948_v58 }
  0xca   :  { %v468_v27 = vadd.f32 %v467_v24, %v3924_v41  ;;  %v859_v46 = vmul.f32 0.2, %v555_v30  ;;  %vm731_vm4 = vcmp.gt.f32.partialorder %v555_v30, 0.0 }
  0xcb   :  { %vm733_vm2 = vcmp.gt.f32.partialorder %v379_v23, 0.0  ;;  %v861_v28 = vmul.f32 0.2, %v379_v23  ;;  %v860_v51 = vmul.f32 0.2, %v644_v33  ;;  %vm732_vm5 = vcmp.gt.f32.partialorder %v644_v33, 0.0 }
  0xcc   :  { %vm734_vm3 = vcmp.gt.f32.partialorder %v468_v27, 0.0  ;;  %v862_v31 = vmul.f32 0.2, %v468_v27  ;;  %v987_v59 = vsel %vm731_vm4, %v555_v30, %v859_v46  ;;  %v3381_v46 = vld [vmem:[%s5079_s3 + $0x104] sm:$0xf0] }
  0xcd   :  { %v989_v36 = vsel %vm733_vm2, %v379_v23, %v861_v28  ;;  %v988_v63 = vsel %vm732_vm5, %v644_v33, %v860_v51 }
  0xce   :  { %v4023_v38 = vpack.c.bf16 %v989_v36, %v985_v35  ;;  %v990_v42 = vsel %vm734_vm3, %v468_v27, %v862_v31 }
  0xcf   :  { %v556_v43 = vpop.f32.mrf.mxu2  ;;  %v4028_v45 = vpack.c.bf16 %v990_v42, %v986_v40 }
  0xd0   :  { %5130 = vst [vmem:[#allocation5_spill] sm:$0xff] %v4023_v38  ;;  %v557_v48 = vadd.f32 %v556_v43, %v3946_v54  ;;  %v645_v49 = vpop.f32.mrf.mxu3  ;;  %v381_v50 = vpop.f32.mrf.mxu0 }
  0xd1   :  { %5131 = vst [vmem:[#allocation6_spill] sm:$0xff] %v4028_v45  ;;  %v646_v53 = vadd.f32 %v645_v49, %v3948_v58  ;;  %v470_v55 = vpop.f32.mrf.mxu1  ;;  %v382_v61 = vadd.f32 %v381_v50, %v3922_v39 }
  0xd2   :  { %vm735_vm6 = vcmp.gt.f32.partialorder %v557_v48, 0.0  ;;  %v863_v56 = vmul.f32 0.2, %v557_v48  ;;  %v471_v1 = vadd.f32 %v470_v55, %v3924_v41 }
  0xd3   :  { %vm736_vm7 = vcmp.gt.f32.partialorder %v646_v53, 0.0  ;;  %v864_v57 = vmul.f32 0.2, %v646_v53  ;;  %420 = vmatmul.bf16.gmra.mxu0 %v3311_v44  ;;  %v865_v7 = vmul.f32 0.2, %v382_v61  ;;  %vm737_vm8 = vcmp.gt.f32.partialorder %v382_v61, 0.0 }
  0xd4   :  { %509 = vmatmul.bf16.gmra.mxu1 %v3311_v44  ;;  %598 = vmatmul.bf16.gmra.mxu2 %v3311_v44  ;;  %v991_v60 = vsel %vm735_vm6, %v557_v48, %v863_v56  ;;  %v866_v12 = vmul.f32 0.2, %v471_v1  ;;  %vm738_vm9 = vcmp.gt.f32.partialorder %v471_v1, 0.0  ;;  %v3046_v48 = vld [vmem:[%s5079_s3] sm:$0xf] }
  0xd5   :  { %687 = vmatmul.bf16.gmra.mxu3 %v3311_v44  ;;  %v4033_v62 = vpack.c.bf16 %v991_v60, %v987_v59  ;;  %v992_v0 = vsel %vm736_vm7, %v646_v53, %v864_v57  ;;  %v993_v19 = vsel %vm737_vm8, %v382_v61, %v865_v7  ;;  %v3174_v44 = vld [vmem:[%s5079_s3 + $0x100] sm:$0xf]  ;;  %v3349_v56 = vld [vmem:[%s5079_s3 + $0x4] sm:$0xf0] }
  0xd6   :  { %v4036_v2 = vpack.c.bf16 %v992_v0, %v988_v63  ;;  %v994_v22 = vsel %vm738_vm9, %v471_v1, %v866_v12  ;;  %v3175_v55 = vor.u32 %v3381_v46, %v3174_v44  ;;  %v3238_v57 = vld [vmem:[%s5079_s3 + $0x180] sm:$0xf]  ;;  %v3397_v59 = vld [vmem:[%s5079_s3 + $0x184] sm:$0xf0]  ;;  %v3047_v63 = vor.u32 %v3349_v56, %v3046_v48 }
  0xd7   :  { %5132 = vst [vmem:[#allocation7_spill] sm:$0xff] %v4033_v62  ;;  %v559_v3 = vpop.f32.mrf.mxu2  ;;  %v3239_v0 = vor.u32 %v3397_v59, %v3238_v57 }
  0xd8   :  { %5133 = vst [vmem:[#allocation8_spill] sm:$0xff] %v4036_v2  ;;  %v648_v4 = vpop.f32.mrf.mxu3  ;;  %v383_v5 = vpop.f32.mrf.mxu0  ;;  %v560_v15 = vadd.f32 %v559_v3, %v3946_v54  ;;  %1736 = vmatpush.bf16.msrb.mxu2 %v3175_v55  ;;  %1558 = vmatpush.bf16.msrb.mxu0 %v3047_v63 }
  0xd9   :  { %v384_v9 = vadd.f32 %v383_v5, %v3922_v39  ;;  %v472_v10 = vpop.f32.mrf.mxu1  ;;  %v649_v18 = vadd.f32 %v648_v4, %v3948_v58  ;;  %1825 = vmatpush.bf16.msrb.mxu3 %v3239_v0 }
  0xda   :  { %v473_v13 = vadd.f32 %v472_v10, %v3924_v41  ;;  %v867_v28 = vmul.f32 0.2, %v560_v15  ;;  %vm739_vm12 = vcmp.gt.f32.partialorder %v560_v15, 0.0 }
  0xdb   :  { %vm741_vm10 = vcmp.gt.f32.partialorder %v384_v9, 0.0  ;;  %v869_v14 = vmul.f32 0.2, %v384_v9  ;;  %v868_v33 = vmul.f32 0.2, %v649_v18  ;;  %vm740_vm13 = vcmp.gt.f32.partialorder %v649_v18, 0.0 }
  0xdc   :  { %vm742_vm11 = vcmp.gt.f32.partialorder %v473_v13, 0.0  ;;  %v870_v17 = vmul.f32 0.2, %v473_v13  ;;  %v995_v40 = vsel %vm739_vm12, %v560_v15, %v867_v28  ;;  %v3110_v15 = vld [vmem:[%s5079_s3 + $0x80] sm:$0xf] }
  0xdd   :  { %v997_v20 = vsel %vm741_vm10, %v384_v9, %v869_v14  ;;  %v996_v50 = vsel %vm740_vm13, %v649_v18, %v868_v33  ;;  %v3365_v18 = vld [vmem:[%s5079_s3 + $0x84] sm:$0xf0] }
  0xde   :  { %v4042_v21 = vpack.c.bf16 %v997_v20, %v993_v19  ;;  %v998_v23 = vsel %vm742_vm11, %v473_v13, %v870_v17 }
  0xdf   :  { %v561_v24 = vpop.f32.mrf.mxu2  ;;  %v4047_v27 = vpack.c.bf16 %v998_v23, %v994_v22  ;;  %v3111_v22 = vor.u32 %v3365_v18, %v3110_v15 }
  0xe0   :  { %5134 = vst [vmem:[#allocation9_spill] sm:$0xff] %v4042_v21  ;;  %v562_v30 = vadd.f32 %v561_v24, %v3946_v54  ;;  %v650_v31 = vpop.f32.mrf.mxu3  ;;  %v386_v32 = vpop.f32.mrf.mxu0 }
  0xe1   :  { %5135 = vst [vmem:[#allocation10_spill] sm:$0xff] %v4047_v27  ;;  %v651_v34 = vadd.f32 %v650_v31, %v3948_v58  ;;  %v475_v35 = vpop.f32.mrf.mxu1  ;;  %v387_v43 = vadd.f32 %v386_v32, %v3922_v39  ;;  %1647 = vmatpush.bf16.msrb.mxu1 %v3111_v22 }
  0xe2   :  { %vm743_vm14 = vcmp.gt.f32.partialorder %v562_v30, 0.0  ;;  %v871_v36 = vmul.f32 0.2, %v562_v30  ;;  %v476_v53 = vadd.f32 %v475_v35, %v3924_v41 }
  0xe3   :  { %vm744_vm15 = vcmp.gt.f32.partialorder %v651_v34, 0.0  ;;  %v872_v37 = vmul.f32 0.2, %v651_v34  ;;  %425 = vmatmul.bf16.gmra.mxu0 %v3312_v25  ;;  %v873_v4 = vmul.f32 0.2, %v387_v43  ;;  %vm745_vm0 = vcmp.gt.f32.partialorder %v387_v43, 0.0 }
  0xe4   :  { %514 = vmatmul.bf16.gmra.mxu1 %v3312_v25  ;;  %603 = vmatmul.bf16.gmra.mxu2 %v3312_v25  ;;  %v999_v42 = vsel %vm743_vm14, %v562_v30, %v871_v36  ;;  %v874_v9 = vmul.f32 0.2, %v476_v53  ;;  %vm746_vm1 = vcmp.gt.f32.partialorder %v476_v53, 0.0  ;;  %v3313_v30 = vld [vmem:[%s5080_s0 + $0x68] sm:$0xff] }
  0xe5   :  { %692 = vmatmul.bf16.gmra.mxu3 %v3312_v25  ;;  %v4061_v49 = vpack.c.bf16 %v999_v42, %v995_v40  ;;  %v1000_v51 = vsel %vm744_vm15, %v651_v34, %v872_v37  ;;  %v1001_v19 = vsel %vm745_vm0, %v387_v43, %v873_v4 }
  0xe6   :  { %v4074_v60 = vpack.c.bf16 %v1000_v51, %v996_v50  ;;  %v1002_v24 = vsel %vm746_vm1, %v476_v53, %v874_v9 }
  0xe7   :  { %5136 = vst [vmem:[#allocation11_spill] sm:$0xff] %v4061_v49  ;;  %v564_v61 = vpop.f32.mrf.mxu2 }
  0xe8   :  { %5137 = vst [vmem:[#allocation12_spill] sm:$0xff] %v4074_v60  ;;  %v653_v1 = vpop.f32.mrf.mxu3  ;;  %v388_v3 = vpop.f32.mrf.mxu0  ;;  %v565_v13 = vadd.f32 %v564_v61, %v3946_v54 }
  0xe9   :  { %v389_v5 = vadd.f32 %v388_v3, %v3922_v39  ;;  %v477_v7 = vpop.f32.mrf.mxu1  ;;  %v654_v17 = vadd.f32 %v653_v1, %v3948_v58 }
  0xea   :  { %v478_v10 = vadd.f32 %v477_v7, %v3924_v41  ;;  %v875_v32 = vmul.f32 0.2, %v565_v13  ;;  %vm747_vm4 = vcmp.gt.f32.partialorder %v565_v13, 0.0 }
  0xeb   :  { %vm749_vm2 = vcmp.gt.f32.partialorder %v389_v5, 0.0  ;;  %v877_v12 = vmul.f32 0.2, %v389_v5  ;;  %v876_v36 = vmul.f32 0.2, %v654_v17  ;;  %vm748_vm5 = vcmp.gt.f32.partialorder %v654_v17, 0.0 }
  0xec   :  { %vm750_vm3 = vcmp.gt.f32.partialorder %v478_v10, 0.0  ;;  %v878_v14 = vmul.f32 0.2, %v478_v10  ;;  %v1003_v44 = vsel %vm747_vm4, %v565_v13, %v875_v32 }
  0xed   :  { %v1005_v20 = vsel %vm749_vm2, %v389_v5, %v877_v12  ;;  %v1004_v51 = vsel %vm748_vm5, %v654_v17, %v876_v36 }
  0xee   :  { %v4086_v23 = vpack.c.bf16 %v1005_v20, %v1001_v19  ;;  %v1006_v25 = vsel %vm750_vm3, %v478_v10, %v878_v14  ;;  %v3314_v19 = vld [vmem:[%s5080_s0 + $0x70] sm:$0xff] }
  0xef   :  { %v566_v28 = vpop.f32.mrf.mxu2  ;;  %v4091_v31 = vpack.c.bf16 %v1006_v25, %v1002_v24 }
  0xf0   :  { %5138 = vst [vmem:[#allocation13_spill] sm:$0xff] %v4086_v23  ;;  %v567_v33 = vadd.f32 %v566_v28, %v3946_v54  ;;  %v655_v34 = vpop.f32.mrf.mxu3  ;;  %v391_v35 = vpop.f32.mrf.mxu0 }
  0xf1   :  { %5139 = vst [vmem:[#allocation14_spill] sm:$0xff] %v4091_v31  ;;  %v656_v37 = vadd.f32 %v655_v34, %v3948_v58  ;;  %v480_v40 = vpop.f32.mrf.mxu1  ;;  %v392_v48 = vadd.f32 %v391_v35, %v3922_v39 }
  0xf2   :  { %vm751_vm6 = vcmp.gt.f32.partialorder %v567_v33, 0.0  ;;  %v879_v42 = vmul.f32 0.2, %v567_v33  ;;  %v481_v55 = vadd.f32 %v480_v40, %v3924_v41 }
  0xf3   :  { %vm752_vm7 = vcmp.gt.f32.partialorder %v656_v37, 0.0  ;;  %v880_v43 = vmul.f32 0.2, %v656_v37  ;;  %430 = vmatmul.bf16.gmra.mxu0 %v3313_v30  ;;  %v881_v63 = vmul.f32 0.2, %v392_v48  ;;  %vm753_vm8 = vcmp.gt.f32.partialorder %v392_v48, 0.0 }
  0xf4   :  { %519 = vmatmul.bf16.gmra.mxu1 %v3313_v30  ;;  %608 = vmatmul.bf16.gmra.mxu2 %v3313_v30  ;;  %v1007_v46 = vsel %vm751_vm6, %v567_v33, %v879_v42  ;;  %v882_v3 = vmul.f32 0.2, %v481_v55  ;;  %vm754_vm9 = vcmp.gt.f32.partialorder %v481_v55, 0.0  ;;  %v3394_v42 = vld [vmem:[%s5079_s3 + $0x174] sm:$0xf] }
  0xf5   :  { %697 = vmatmul.bf16.gmra.mxu3 %v3313_v30  ;;  %v4096_v50 = vpack.c.bf16 %v1007_v46, %v1003_v44  ;;  %v1008_v53 = vsel %vm752_vm7, %v656_v37, %v880_v43  ;;  %v1009_v12 = vsel %vm753_vm8, %v392_v48, %v881_v63  ;;  %v3232_v43 = vld [vmem:[%s5079_s3 + $0x178] sm:$0xf0]  ;;  %v3362_v44 = vld [vmem:[%s5079_s3 + $0x74] sm:$0xf] }
  0xf6   :  { %v4099_v56 = vpack.c.bf16 %v1008_v53, %v1004_v51  ;;  %v1010_v15 = vsel %vm754_vm9, %v481_v55, %v882_v3  ;;  %v3235_v55 = vor.u32 %v3394_v42, %v3232_v43 }
  0xf7   :  { %5140 = vst [vmem:[#allocation15_spill] sm:$0xff] %v4096_v50  ;;  %v569_v57 = vpop.f32.mrf.mxu2 }
  0xf8   :  { %5141 = vst [vmem:[#allocation16_spill] sm:$0xff] %v4099_v56  ;;  %v658_v59 = vpop.f32.mrf.mxu3  ;;  %v393_v61 = vpop.f32.mrf.mxu0  ;;  %v570_v7 = vadd.f32 %v569_v57, %v3946_v54  ;;  %v3104_v57 = vld [vmem:[%s5079_s3 + $0x78] sm:$0xf0]  ;;  %2085 = vmatpush.bf16.msra.mxu2 %v3235_v55 }
  0xf9   :  { %v394_v0 = vadd.f32 %v393_v61, %v3922_v39  ;;  %v482_v1 = vpop.f32.mrf.mxu1  ;;  %v659_v10 = vadd.f32 %v658_v59, %v3948_v58  ;;  %v3410_v59 = vld [vmem:[%s5079_s3 + $0x1f4] sm:$0xf]  ;;  %v3296_v61 = vld [vmem:[%s5079_s3 + $0x1f8] sm:$0xf0] }
  0xfa   :  { %v483_v4 = vadd.f32 %v482_v1, %v3924_v41  ;;  %v883_v22 = vmul.f32 0.2, %v570_v7  ;;  %vm755_vm12 = vcmp.gt.f32.partialorder %v570_v7, 0.0  ;;  %v3107_v1 = vor.u32 %v3362_v44, %v3104_v57 }
  0xfb   :  { %vm757_vm10 = vcmp.gt.f32.partialorder %v394_v0, 0.0  ;;  %v885_v5 = vmul.f32 0.2, %v394_v0  ;;  %v884_v30 = vmul.f32 0.2, %v659_v10  ;;  %vm756_vm13 = vcmp.gt.f32.partialorder %v659_v10, 0.0 }
  0xfc   :  { %vm758_vm11 = vcmp.gt.f32.partialorder %v483_v4, 0.0  ;;  %v886_v9 = vmul.f32 0.2, %v483_v4  ;;  %v1011_v36 = vsel %vm755_vm12, %v570_v7, %v883_v22  ;;  %v3299_v3 = vor.u32 %v3410_v59, %v3296_v61  ;;  %1907 = vmatpush.bf16.msra.mxu0 %v3107_v1 }
  0xfd   :  { %v1013_v13 = vsel %vm757_vm10, %v394_v0, %v885_v5  ;;  %v1012_v48 = vsel %vm756_vm13, %v659_v10, %v884_v30 }
  0xfe   :  { %v4105_v14 = vpack.c.bf16 %v1013_v13, %v1009_v12  ;;  %v1014_v17 = vsel %vm758_vm11, %v483_v4, %v886_v9  ;;  %2174 = vmatpush.bf16.msra.mxu3 %v3299_v3 }
  0xff   :  { %v571_v18 = vpop.f32.mrf.mxu2  ;;  %v4110_v20 = vpack.c.bf16 %v1014_v17, %v1010_v15 }
 0x100   :  { %5142 = vst [vmem:[#allocation17_spill] sm:$0xff] %v4105_v14  ;;  %v572_v24 = vadd.f32 %v571_v18, %v3946_v54  ;;  %v660_v25 = vpop.f32.mrf.mxu3  ;;  %v396_v28 = vpop.f32.mrf.mxu0 }
 0x101   :  { %5143 = vst [vmem:[#allocation18_spill] sm:$0xff] %v4110_v20  ;;  %v661_v32 = vadd.f32 %v660_v25, %v3948_v58  ;;  %v485_v33 = vpop.f32.mrf.mxu1  ;;  %v397_v40 = vadd.f32 %v396_v28, %v3922_v39 }
 0x102   :  { %vm759_vm14 = vcmp.gt.f32.partialorder %v572_v24, 0.0  ;;  %v887_v34 = vmul.f32 0.2, %v572_v24  ;;  %v486_v53 = vadd.f32 %v485_v33, %v3924_v41 }
 0x103   :  { %vm760_vm15 = vcmp.gt.f32.partialorder %v661_v32, 0.0  ;;  %v888_v35 = vmul.f32 0.2, %v661_v32  ;;  %435 = vmatmul.bf16.gmra.mxu0 %v3314_v19  ;;  %v889_v7 = vmul.f32 0.2, %v397_v40  ;;  %vm761_vm0 = vcmp.gt.f32.partialorder %v397_v40, 0.0 }
 0x104   :  { %524 = vmatmul.bf16.gmra.mxu1 %v3314_v19  ;;  %613 = vmatmul.bf16.gmra.mxu2 %v3314_v19  ;;  %v1015_v37 = vsel %vm759_vm14, %v572_v24, %v887_v34  ;;  %v890_v12 = vmul.f32 0.2, %v486_v53  ;;  %vm762_vm1 = vcmp.gt.f32.partialorder %v486_v53, 0.0  ;;  %v3168_v24 = vld [vmem:[%s5079_s3 + $0xf8] sm:$0xf0] }
 0x105   :  { %702 = vmatmul.bf16.gmra.mxu3 %v3314_v19  ;;  %v4124_v46 = vpack.c.bf16 %v1015_v37, %v1011_v36  ;;  %v1016_v51 = vsel %vm760_vm15, %v661_v32, %v888_v35  ;;  %v3378_v19 = vld [vmem:[%s5079_s3 + $0xf4] sm:$0xf]  ;;  %v1017_v25 = vsel %vm761_vm0, %v397_v40, %v889_v7  ;;  %v3315_v36 = vld [vmem:[%s5080_s0 + $0x78] sm:$0xff] }
 0x106   :  { %v4137_v63 = vpack.c.bf16 %v1016_v51, %v1012_v48  ;;  %v3171_v30 = vor.u32 %v3378_v19, %v3168_v24  ;;  %v1018_v33 = vsel %vm762_vm1, %v486_v53, %v890_v12 }
 0x107   :  { %5144 = vst [vmem:[#allocation19_spill] sm:$0xff] %v4124_v46  ;;  %v574_v0 = vpop.f32.mrf.mxu2 }
 0x108   :  { %5145 = vst [vmem:[#allocation20_spill] sm:$0xff] %v4137_v63  ;;  %v663_v4 = vpop.f32.mrf.mxu3  ;;  %v398_v5 = vpop.f32.mrf.mxu0  ;;  %v575_v17 = vadd.f32 %v574_v0, %v3946_v54  ;;  %1996 = vmatpush.bf16.msra.mxu1 %v3171_v30 }
 0x109   :  { %v399_v9 = vadd.f32 %v398_v5, %v3922_v39  ;;  %v487_v10 = vpop.f32.mrf.mxu1  ;;  %v664_v22 = vadd.f32 %v663_v4, %v3948_v58 }
 0x10a   :  { %v488_v13 = vadd.f32 %v487_v10, %v3924_v41  ;;  %v891_v42 = vmul.f32 0.2, %v575_v17  ;;  %vm763_vm4 = vcmp.gt.f32.partialorder %v575_v17, 0.0 }
 0x10b   :  { %vm765_vm2 = vcmp.gt.f32.partialorder %v399_v9, 0.0  ;;  %v893_v15 = vmul.f32 0.2, %v399_v9  ;;  %v892_v40 = vmul.f32 0.2, %v664_v22  ;;  %vm764_vm5 = vcmp.gt.f32.partialorder %v664_v22, 0.0 }
 0x10c   :  { %vm766_vm3 = vcmp.gt.f32.partialorder %v488_v13, 0.0  ;;  %v894_v18 = vmul.f32 0.2, %v488_v13  ;;  %v1019_v59 = vsel %vm763_vm4, %v575_v17, %v891_v42 }
 0x10d   :  { %v1021_v28 = vsel %vm765_vm2, %v399_v9, %v893_v15  ;;  %v1020_v3 = vsel %vm764_vm5, %v664_v22, %v892_v40 }
 0x10e   :  { %v4149_v32 = vpack.c.bf16 %v1021_v28, %v1017_v25  ;;  %v1022_v34 = vsel %vm766_vm3, %v488_v13, %v894_v18 }
 0x10f   :  { %v576_v35 = vpop.f32.mrf.mxu2  ;;  %v4154_v37 = vpack.c.bf16 %v1022_v34, %v1018_v33 }
 0x110   :  { %5146 = vst [vmem:[#allocation21_spill] sm:$0xff] %v4149_v32  ;;  %v577_v43 = vadd.f32 %v576_v35, %v3946_v54  ;;  %v665_v44 = vpop.f32.mrf.mxu3  ;;  %v401_v48 = vpop.f32.mrf.mxu0 }
 0x111   :  { %5147 = vst [vmem:[#allocation22_spill] sm:$0xff] %v4154_v37  ;;  %v666_v51 = vadd.f32 %v665_v44, %v3948_v58  ;;  %v490_v55 = vpop.f32.mrf.mxu1  ;;  %v402_v0 = vadd.f32 %v401_v48, %v3922_v39 }
 0x112   :  { %vm767_vm6 = vcmp.gt.f32.partialorder %v577_v43, 0.0  ;;  %v895_v53 = vmul.f32 0.2, %v577_v43  ;;  %v491_v5 = vadd.f32 %v490_v55, %v3924_v41 }
 0x113   :  { %vm768_vm7 = vcmp.gt.f32.partialorder %v666_v51, 0.0  ;;  %v896_v57 = vmul.f32 0.2, %v666_v51  ;;  %440 = vmatmul.bf16.gmra.mxu0 %v3315_v36  ;;  %v897_v13 = vmul.f32 0.2, %v402_v0  ;;  %vm769_vm8 = vcmp.gt.f32.partialorder %v402_v0, 0.0 }
 0x114   :  { %529 = vmatmul.bf16.gmra.mxu1 %v3315_v36  ;;  %618 = vmatmul.bf16.gmra.mxu2 %v3315_v36  ;;  %v1023_v61 = vsel %vm767_vm6, %v577_v43, %v895_v53  ;;  %v898_v17 = vmul.f32 0.2, %v491_v5  ;;  %vm770_vm9 = vcmp.gt.f32.partialorder %v491_v5, 0.0 }
 0x115   :  { %707 = vmatmul.bf16.gmra.mxu3 %v3315_v36  ;;  %v4159_v1 = vpack.c.bf16 %v1023_v61, %v1019_v59  ;;  %v1024_v4 = vsel %vm768_vm7, %v666_v51, %v896_v57  ;;  %v1025_v30 = vsel %vm769_vm8, %v402_v0, %v897_v13 }
 0x116   :  { %v4162_v7 = vpack.c.bf16 %v1024_v4, %v1020_v3  ;;  %v1026_v35 = vsel %vm770_vm9, %v491_v5, %v898_v17  ;;  %v3392_v5 = vld [vmem:[%s5079_s3 + $0x164] sm:$0xf] }
 0x117   :  { %5148 = vst [vmem:[#allocation23_spill] sm:$0xff] %v4159_v1  ;;  %v579_v9 = vpop.f32.mrf.mxu2 }
 0x118   :  { %5149 = vst [vmem:[#allocation24_spill] sm:$0xff] %v4162_v7  ;;  %v668_v10 = vpop.f32.mrf.mxu3  ;;  %v403_v12 = vpop.f32.mrf.mxu0  ;;  %v580_v22 = vadd.f32 %v579_v9, %v3946_v54  ;;  %v3224_v9 = vld [vmem:[%s5079_s3 + $0x168] sm:$0xf0] }
 0x119   :  { %v404_v15 = vadd.f32 %v403_v12, %v3922_v39  ;;  %v492_v18 = vpop.f32.mrf.mxu1  ;;  %v669_v28 = vadd.f32 %v668_v10, %v3948_v58  ;;  %v3360_v10 = vld [vmem:[%s5079_s3 + $0x64] sm:$0xf]  ;;  %v3227_v17 = vor.u32 %v3392_v5, %v3224_v9 }
 0x11a   :  { %v493_v19 = vadd.f32 %v492_v18, %v3924_v41  ;;  %v899_v44 = vmul.f32 0.2, %v580_v22  ;;  %vm771_vm12 = vcmp.gt.f32.partialorder %v580_v22, 0.0 }
 0x11b   :  { %vm773_vm10 = vcmp.gt.f32.partialorder %v404_v15, 0.0  ;;  %v901_v24 = vmul.f32 0.2, %v404_v15  ;;  %v900_v55 = vmul.f32 0.2, %v669_v28  ;;  %vm772_vm13 = vcmp.gt.f32.partialorder %v669_v28, 0.0  ;;  %2086 = vmatpush.bf16.msra.mxu2 %v3227_v17 }
 0x11c   :  { %vm774_vm11 = vcmp.gt.f32.partialorder %v493_v19, 0.0  ;;  %v902_v25 = vmul.f32 0.2, %v493_v19  ;;  %v1027_v0 = vsel %vm771_vm12, %v580_v22, %v899_v44  ;;  %v3288_v22 = vld [vmem:[%s5079_s3 + $0x1e8] sm:$0xf0] }
 0x11d   :  { %v1029_v33 = vsel %vm773_vm10, %v404_v15, %v901_v24  ;;  %v1028_v13 = vsel %vm772_vm13, %v669_v28, %v900_v55  ;;  %v3408_v24 = vld [vmem:[%s5079_s3 + $0x1e4] sm:$0xf] }
 0x11e   :  { %v4168_v34 = vpack.c.bf16 %v1029_v33, %v1025_v30  ;;  %v1030_v36 = vsel %vm774_vm11, %v493_v19, %v902_v25  ;;  %v3096_v19 = vld [vmem:[%s5079_s3 + $0x68] sm:$0xf0]  ;;  %v3291_v33 = vor.u32 %v3408_v24, %v3288_v22 }
 0x11f   :  { %v581_v42 = vpop.f32.mrf.mxu2  ;;  %v4170_v43 = vpack.c.bf16 %v1030_v36, %v1026_v35  ;;  %v3099_v28 = vor.u32 %v3360_v10, %v3096_v19 }
 0x120   :  { %v582_v48 = vadd.f32 %v581_v42, %v3946_v54  ;;  %v670_v40 = vpop.f32.mrf.mxu3  ;;  %v406_v51 = vpop.f32.mrf.mxu0  ;;  %2175 = vmatpush.bf16.msra.mxu3 %v3291_v33 }
 0x121   :  { %v671_v53 = vadd.f32 %v670_v40, %v3948_v58  ;;  %v495_v57 = vpop.f32.mrf.mxu1  ;;  %v407_v4 = vadd.f32 %v406_v51, %v3922_v39  ;;  %1908 = vmatpush.bf16.msra.mxu0 %v3099_v28 }
 0x122   :  { %vm775_vm14 = vcmp.gt.f32.partialorder %v582_v48, 0.0  ;;  %v903_v59 = vmul.f32 0.2, %v582_v48  ;;  %v496_v18 = vadd.f32 %v495_v57, %v3924_v41 }
 0x123   :  { %vm776_vm15 = vcmp.gt.f32.partialorder %v671_v53, 0.0  ;;  %v904_v61 = vmul.f32 0.2, %v671_v53  ;;  %1559 = vmatmul.bf16.vlgmr.msrb.gmra.mxu0 %v3960_v8  ;;  %v905_v42 = vmul.f32 0.2, %v407_v4  ;;  %vm777_vm0 = vcmp.gt.f32.partialorder %v407_v4, 0.0 }
 0x124   :  { %1648 = vmatmul.bf16.vlgmr.msrb.gmra.mxu1 %v3962_v11  ;;  %1737 = vmatmul.bf16.vlgmr.msrb.gmra.mxu2 %v3969_v26  ;;  %v1031_v3 = vsel %vm775_vm14, %v582_v48, %v903_v59  ;;  %v906_v40 = vmul.f32 0.2, %v496_v18  ;;  %vm778_vm1 = vcmp.gt.f32.partialorder %v496_v18, 0.0  ;;  %v3376_v59 = vld [vmem:[%s5079_s3 + $0xe4] sm:$0xf] }
 0x125   :  { %1826 = vmatmul.bf16.vlgmr.msrb.gmra.mxu3 %v3972_v29  ;;  %v4188_v12 = vpack.c.bf16 %v1031_v3, %v1027_v0  ;;  %v1032_v15 = vsel %vm776_vm15, %v671_v53, %v904_v61  ;;  %v3160_v0 = vld [vmem:[%s5079_s3 + $0xe8] sm:$0xf0]  ;;  %v1033_v3 = vsel %vm777_vm0, %v407_v4, %v905_v42 }
 0x126   :  { %v4201_v25 = vpack.c.bf16 %v1032_v15, %v1028_v13  ;;  %v3163_v9 = vor.u32 %v3376_v59, %v3160_v0  ;;  %v1034_v13 = vsel %vm778_vm1, %v496_v18, %v906_v40 }
 0x127   :  { %v584_v30 = vpop.f32.mrf.mxu2 }
 0x128   :  { %5150 = vst [vmem:[#allocation25_spill] sm:$0xff] %v4201_v25  ;;  %v673_v35 = vpop.f32.mrf.mxu3  ;;  %v408_v36 = vpop.f32.mrf.mxu0  ;;  %v585_v53 = vadd.f32 %v584_v30, %v3946_v54  ;;  %1997 = vmatpush.bf16.msra.mxu1 %v3163_v9 }
 0x129   :  { %v409_v44 = vadd.f32 %v408_v36, %v3922_v39  ;;  %v497_v48 = vpop.f32.mrf.mxu1  ;;  %v674_v61 = vadd.f32 %v673_v35, %v3948_v58 }
 0x12a   :  { %v498_v51 = vadd.f32 %v497_v48, %v3924_v41  ;;  %v907_v24 = vmul.f32 0.2, %v585_v53  ;;  %vm779_vm4 = vcmp.gt.f32.partialorder %v585_v53, 0.0 }
 0x12b   :  { %vm781_vm2 = vcmp.gt.f32.partialorder %v409_v44, 0.0  ;;  %v909_v55 = vmul.f32 0.2, %v409_v44  ;;  %v908_v33 = vmul.f32 0.2, %v674_v61  ;;  %vm780_vm5 = vcmp.gt.f32.partialorder %v674_v61, 0.0 }
 0x12c   :  { %vm782_vm3 = vcmp.gt.f32.partialorder %v498_v51, 0.0  ;;  %v910_v57 = vmul.f32 0.2, %v498_v51  ;;  %v1035_v42 = vsel %vm779_vm4, %v585_v53, %v907_v24 }
 0x12d   :  { %v1037_v5 = vsel %vm781_vm2, %v409_v44, %v909_v55 }
 0x12e   :  { %v4213_v10 = vpack.c.bf16 %v1037_v5, %v1033_v3  ;;  %v1038_v15 = vsel %vm782_vm3, %v498_v51, %v910_v57  ;;  %v1036_v51 = vsel %vm780_vm5, %v674_v61, %v908_v33 }
 0x12f   :  { %v586_v17 = vpop.f32.mrf.mxu2  ;;  %v4215_v19 = vpack.c.bf16 %v1038_v15, %v1034_v13 }
 0x130   :  { %v587_v22 = vadd.f32 %v586_v17, %v3946_v54  ;;  %v675_v30 = vpop.f32.mrf.mxu3  ;;  %v411_v28 = vpop.f32.mrf.mxu0 }
 0x131   :  { %v676_v35 = vadd.f32 %v675_v30, %v3948_v58  ;;  %v500_v4 = vpop.f32.mrf.mxu1  ;;  %v412_v48 = vadd.f32 %v411_v28, %v3922_v39 }
 0x132   :  { %vm783_vm6 = vcmp.gt.f32.partialorder %v587_v22, 0.0  ;;  %v911_v36 = vmul.f32 0.2, %v587_v22  ;;  %v501_v57 = vadd.f32 %v500_v4, %v3924_v41 }
 0x133   :  { %vm784_vm7 = vcmp.gt.f32.partialorder %v676_v35, 0.0  ;;  %v912_v18 = vmul.f32 0.2, %v676_v35  ;;  %1564 = vmatmul.bf16.gmra.mxu0 %v3979_v47  ;;  %v913_v9 = vmul.f32 0.2, %v412_v48  ;;  %vm785_vm8 = vcmp.gt.f32.partialorder %v412_v48, 0.0 }
 0x134   :  { %1653 = vmatmul.bf16.gmra.mxu1 %v3984_v52  ;;  %1742 = vmatmul.bf16.gmra.mxu2 %v3998_v6  ;;  %v1039_v44 = vsel %vm783_vm6, %v587_v22, %v911_v36  ;;  %v914_v15 = vmul.f32 0.2, %v501_v57  ;;  %vm786_vm9 = vcmp.gt.f32.partialorder %v501_v57, 0.0 }
 0x135   :  { %1831 = vmatmul.bf16.gmra.mxu3 %v4011_v16  ;;  %v4224_v40 = vpack.c.bf16 %v1039_v44, %v1035_v42  ;;  %v1040_v55 = vsel %vm784_vm7, %v676_v35, %v912_v18  ;;  %v1041_v28 = vsel %vm785_vm8, %v412_v48, %v913_v9 }
 0x136   :  { %v4227_v59 = vpack.c.bf16 %v1040_v55, %v1036_v51  ;;  %v1042_v4 = vsel %vm786_vm9, %v501_v57, %v914_v15  ;;  %v3390_v15 = vld [vmem:[%s5079_s3 + $0x154] sm:$0xf] }
 0x137   :  { %v589_v0 = vpop.f32.mrf.mxu2 }
 0x138   :  { %v678_v3 = vpop.f32.mrf.mxu3  ;;  %v413_v5 = vpop.f32.mrf.mxu0  ;;  %v590_v61 = vadd.f32 %v589_v0, %v3946_v54 }
 0x139   :  { %v414_v13 = vadd.f32 %v413_v5, %v3922_v39  ;;  %v502_v53 = vpop.f32.mrf.mxu1  ;;  %v679_v30 = vadd.f32 %v678_v3, %v3948_v58 }
 0x13a   :  { %v503_v17 = vadd.f32 %v502_v53, %v3924_v41  ;;  %v915_v44 = vmul.f32 0.2, %v590_v61  ;;  %vm787_vm12 = vcmp.gt.f32.partialorder %v590_v61, 0.0 }
 0x13b   :  { %vm789_vm10 = vcmp.gt.f32.partialorder %v414_v13, 0.0  ;;  %v917_v24 = vmul.f32 0.2, %v414_v13  ;;  %v916_v0 = vmul.f32 0.2, %v679_v30  ;;  %vm788_vm13 = vcmp.gt.f32.partialorder %v679_v30, 0.0 }
 0x13c   :  { %vm790_vm11 = vcmp.gt.f32.partialorder %v503_v17, 0.0  ;;  %v918_v22 = vmul.f32 0.2, %v503_v17  ;;  %v1043_v57 = vsel %vm787_vm12, %v590_v61, %v915_v44  ;;  %v3280_v44 = vld [vmem:[%s5079_s3 + $0x1d8] sm:$0xf0] }
 0x13d   :  { %v1045_v33 = vsel %vm789_vm10, %v414_v13, %v917_v24  ;;  %v3358_v24 = vld [vmem:[%s5079_s3 + $0x54] sm:$0xf]  ;;  %v1044_v61 = vsel %vm788_vm13, %v679_v30, %v916_v0 }
 0x13e   :  { %v4233_v35 = vpack.c.bf16 %v1045_v33, %v1041_v28  ;;  %v1046_v36 = vsel %vm790_vm11, %v503_v17, %v918_v22  ;;  %v3216_v17 = vld [vmem:[%s5079_s3 + $0x158] sm:$0xf0] }
 0x13f   :  { %v591_v18 = vpop.f32.mrf.mxu2  ;;  %v4235_v42 = vpack.c.bf16 %v1046_v36, %v1042_v4  ;;  %v3219_v4 = vor.u32 %v3390_v15, %v3216_v17  ;;  %v3088_v36 = vld [vmem:[%s5079_s3 + $0x58] sm:$0xf0] }
 0x140   :  { %v592_v51 = vadd.f32 %v591_v18, %v3946_v54  ;;  %v680_v55 = vpop.f32.mrf.mxu3  ;;  %v416_v5 = vpop.f32.mrf.mxu0  ;;  %v3406_v18 = vld [vmem:[%s5079_s3 + $0x1d4] sm:$0xf]  ;;  %v3091_v30 = vor.u32 %v3358_v24, %v3088_v36 }
 0x141   :  { %v681_v53 = vadd.f32 %v680_v55, %v3948_v58  ;;  %v505_v16 = vpop.f32.mrf.mxu1  ;;  %v417_v13 = vadd.f32 %v416_v5, %v3922_v39  ;;  %v3283_v5 = vor.u32 %v3406_v18, %v3280_v44  ;;  %2087 = vmatpush.bf16.msra.mxu2 %v3219_v4  ;;  %v3152_v4 = vld [vmem:[%s5079_s3 + $0xd8] sm:$0xf0] }
 0x142   :  { %vm791_vm14 = vcmp.gt.f32.partialorder %v592_v51, 0.0  ;;  %v919_v48 = vmul.f32 0.2, %v592_v51  ;;  %v506_v33 = vadd.f32 %v505_v16, %v3924_v41  ;;  %1909 = vmatpush.bf16.msra.mxu0 %v3091_v30 }
 0x143   :  { %vm792_vm15 = vcmp.gt.f32.partialorder %v681_v53, 0.0  ;;  %v920_v3 = vmul.f32 0.2, %v681_v53  ;;  %1569 = vmatmul.bf16.gmra.mxu0 %v4023_v38  ;;  %2176 = vmatpush.bf16.msra.mxu3 %v3283_v5  ;;  %vm793_vm0 = vcmp.gt.f32.partialorder %v417_v13, 0.0 }
 0x144   :  { %1658 = vmatmul.bf16.gmra.mxu1 %v4028_v45  ;;  %1747 = vmatmul.bf16.gmra.mxu2 %v4033_v62  ;;  %v1047_v9 = vsel %vm791_vm14, %v592_v51, %v919_v48  ;;  %vm794_vm1 = vcmp.gt.f32.partialorder %v506_v33, 0.0 }
 0x145   :  { %1836 = vmatmul.bf16.gmra.mxu3 %v4036_v2  ;;  %v4253_v22 = vpack.c.bf16 %v1047_v9, %v1043_v57  ;;  %v1048_v28 = vsel %vm792_vm15, %v681_v53, %v920_v3  ;;  %v921_v53 = vmul.f32 0.2, %v417_v13  ;;  %v922_v57 = vmul.f32 0.2, %v506_v33 }
 0x146   :  { %v4266_v51 = vpack.c.bf16 %v1048_v28, %v1044_v61  ;;  %v3374_v61 = vld [vmem:[%s5079_s3 + $0xd4] sm:$0xf] }
 0x147   :  { %v594_v55 = vpop.f32.mrf.mxu2  ;;  %v1049_v36 = vsel %vm793_vm0, %v417_v13, %v921_v53  ;;  %v3155_v44 = vor.u32 %v3374_v61, %v3152_v4  ;;  %v1050_v5 = vsel %vm794_vm1, %v506_v33, %v922_v57 }
 0x148   :  { %v683_v0 = vpop.f32.mrf.mxu3  ;;  %v418_v16 = vpop.f32.mrf.mxu0  ;;  %v595_v17 = vadd.f32 %v594_v55, %v3946_v54 }
 0x149   :  { %v419_v48 = vadd.f32 %v418_v16, %v3922_v39  ;;  %v507_v3 = vpop.f32.mrf.mxu1  ;;  %v684_v28 = vadd.f32 %v683_v0, %v3948_v58  ;;  %1998 = vmatpush.bf16.msra.mxu1 %v3155_v44 }
 0x14a   :  { %v508_v9 = vadd.f32 %v507_v3, %v3924_v41  ;;  %v923_v2 = vmul.f32 0.2, %v595_v17  ;;  %vm795_vm4 = vcmp.gt.f32.partialorder %v595_v17, 0.0 }
 0x14b   :  { %vm797_vm2 = vcmp.gt.f32.partialorder %v419_v48, 0.0  ;;  %v925_v15 = vmul.f32 0.2, %v419_v48  ;;  %v924_v0 = vmul.f32 0.2, %v684_v28  ;;  %vm796_vm5 = vcmp.gt.f32.partialorder %v684_v28, 0.0 }
 0x14c   :  { %vm798_vm3 = vcmp.gt.f32.partialorder %v508_v9, 0.0  ;;  %v926_v24 = vmul.f32 0.2, %v508_v9 }
 0x14d   :  { %v1053_v18 = vsel %vm797_vm2, %v419_v48, %v925_v15  ;;  %v1051_v48 = vsel %vm795_vm4, %v595_v17, %v923_v2 }
 0x14e   :  { %v4278_v30 = vpack.c.bf16 %v1053_v18, %v1049_v36  ;;  %v1054_v16 = vsel %vm798_vm3, %v508_v9, %v926_v24 }
 0x14f   :  { %v596_v55 = vpop.f32.mrf.mxu2  ;;  %v4280_v3 = vpack.c.bf16 %v1054_v16, %v1050_v5 }
 0x150   :  { %v597_v62 = vadd.f32 %v596_v55, %v3946_v54  ;;  %v685_v45 = vpop.f32.mrf.mxu3  ;;  %v421_v38 = vpop.f32.mrf.mxu0 }
 0x151   :  { %v686_v6 = vadd.f32 %v685_v45, %v3948_v58  ;;  %v510_v13 = vpop.f32.mrf.mxu1  ;;  %v422_v9 = vadd.f32 %v421_v38, %v3922_v39  ;;  %v1052_v45 = vsel %vm796_vm5, %v684_v28, %v924_v0 }
 0x152   :  { %vm799_vm6 = vcmp.gt.f32.partialorder %v597_v62, 0.0  ;;  %v927_v53 = vmul.f32 0.2, %v597_v62  ;;  %v511_v61 = vadd.f32 %v510_v13, %v3924_v41 }
 0x153   :  { %vm800_vm7 = vcmp.gt.f32.partialorder %v686_v6, 0.0  ;;  %v928_v33 = vmul.f32 0.2, %v686_v6  ;;  %1574 = vmatmul.bf16.gmra.mxu0 %v4042_v21  ;;  %v929_v5 = vmul.f32 0.2, %v422_v9  ;;  %vm801_vm8 = vcmp.gt.f32.partialorder %v422_v9, 0.0 }
 0x154   :  { %1663 = vmatmul.bf16.gmra.mxu1 %v4047_v27  ;;  %1752 = vmatmul.bf16.gmra.mxu2 %v4061_v49  ;;  %v1055_v57 = vsel %vm799_vm6, %v597_v62, %v927_v53  ;;  %v930_v62 = vmul.f32 0.2, %v511_v61  ;;  %vm802_vm9 = vcmp.gt.f32.partialorder %v511_v61, 0.0 }
 0x155   :  { %1841 = vmatmul.bf16.gmra.mxu3 %v4074_v60  ;;  %v4289_v15 = vpack.c.bf16 %v1055_v57, %v1051_v48  ;;  %v1056_v24 = vsel %vm800_vm7, %v686_v6, %v928_v33  ;;  %v1057_v0 = vsel %vm801_vm8, %v422_v9, %v929_v5 }
 0x156   :  { %v4292_v4 = vpack.c.bf16 %v1056_v24, %v1052_v45  ;;  %v1058_v33 = vsel %vm802_vm9, %v511_v61, %v930_v62  ;;  %v3388_v62 = vld [vmem:[%s5079_s3 + $0x144] sm:$0xf] }
 0x157   :  { %v599_v36 = vpop.f32.mrf.mxu2 }
 0x158   :  { %v688_v18 = vpop.f32.mrf.mxu3  ;;  %v423_v44 = vpop.f32.mrf.mxu0  ;;  %v600_v6 = vadd.f32 %v599_v36, %v3946_v54 }
 0x159   :  { %v424_v16 = vadd.f32 %v423_v44, %v3922_v39  ;;  %v512_v2 = vpop.f32.mrf.mxu1  ;;  %v689_v55 = vadd.f32 %v688_v18, %v3948_v58 }
 0x15a   :  { %v513_v38 = vadd.f32 %v512_v2, %v3924_v41  ;;  %v931_v24 = vmul.f32 0.2, %v600_v6  ;;  %vm803_vm12 = vcmp.gt.f32.partialorder %v600_v6, 0.0 }
 0x15b   :  { %vm805_vm10 = vcmp.gt.f32.partialorder %v424_v16, 0.0  ;;  %v933_v17 = vmul.f32 0.2, %v424_v16  ;;  %v932_v36 = vmul.f32 0.2, %v689_v55  ;;  %vm804_vm13 = vcmp.gt.f32.partialorder %v689_v55, 0.0 }
 0x15c   :  { %vm806_vm11 = vcmp.gt.f32.partialorder %v513_v38, 0.0  ;;  %v934_v28 = vmul.f32 0.2, %v513_v38  ;;  %v1059_v61 = vsel %vm803_vm12, %v600_v6, %v931_v24 }
 0x15d   :  { %v1061_v13 = vsel %vm805_vm10, %v424_v16, %v933_v17  ;;  %v3356_v17 = vld [vmem:[%s5079_s3 + $0x44] sm:$0xf]  ;;  %v1060_v6 = vsel %vm804_vm13, %v689_v55, %v932_v36 }
 0x15e   :  { %v4298_v53 = vpack.c.bf16 %v1061_v13, %v1057_v0  ;;  %v1062_v48 = vsel %vm806_vm11, %v513_v38, %v934_v28  ;;  %v3208_v38 = vld [vmem:[%s5079_s3 + $0x148] sm:$0xf0] }
 0x15f   :  { %v601_v57 = vpop.f32.mrf.mxu2  ;;  %v4300_v45 = vpack.c.bf16 %v1062_v48, %v1058_v33  ;;  %v3211_v13 = vor.u32 %v3388_v62, %v3208_v38  ;;  %v3080_v33 = vld [vmem:[%s5079_s3 + $0x48] sm:$0xf0]  ;;  %v3404_v48 = vld [vmem:[%s5079_s3 + $0x1c4] sm:$0xf] }
 0x160   :  { %v602_v44 = vadd.f32 %v601_v57, %v3946_v54  ;;  %v690_v2 = vpop.f32.mrf.mxu3  ;;  %v426_v60 = vpop.f32.mrf.mxu0  ;;  %v3272_v57 = vld [vmem:[%s5079_s3 + $0x1c8] sm:$0xf0]  ;;  %v3083_v55 = vor.u32 %v3356_v17, %v3080_v33 }
 0x161   :  { %v691_v49 = vadd.f32 %v690_v2, %v3948_v58  ;;  %v515_v27 = vpop.f32.mrf.mxu1  ;;  %v427_v16 = vadd.f32 %v426_v60, %v3922_v39  ;;  %2088 = vmatpush.bf16.msra.mxu2 %v3211_v13  ;;  %v3144_v13 = vld [vmem:[%s5079_s3 + $0xc8] sm:$0xf0] }
 0x162   :  { %vm807_vm14 = vcmp.gt.f32.partialorder %v602_v44, 0.0  ;;  %v935_v9 = vmul.f32 0.2, %v602_v44  ;;  %v516_v60 = vadd.f32 %v515_v27, %v3924_v41  ;;  %1910 = vmatpush.bf16.msra.mxu0 %v3083_v55 }
 0x163   :  { %vm808_vm15 = vcmp.gt.f32.partialorder %v691_v49, 0.0  ;;  %v936_v18 = vmul.f32 0.2, %v691_v49  ;;  %1579 = vmatmul.bf16.gmra.mxu0 %v4086_v23  ;;  %v937_v36 = vmul.f32 0.2, %v427_v16  ;;  %vm809_vm0 = vcmp.gt.f32.partialorder %v427_v16, 0.0 }
 0x164   :  { %1668 = vmatmul.bf16.gmra.mxu1 %v4091_v31  ;;  %1757 = vmatmul.bf16.gmra.mxu2 %v4096_v50  ;;  %v1063_v5 = vsel %vm807_vm14, %v602_v44, %v935_v9  ;;  %vm810_vm1 = vcmp.gt.f32.partialorder %v516_v60, 0.0 }
 0x165   :  { %1846 = vmatmul.bf16.gmra.mxu3 %v4099_v56  ;;  %v4318_v28 = vpack.c.bf16 %v1063_v5, %v1059_v61  ;;  %v1064_v0 = vsel %vm808_vm15, %v691_v49, %v936_v18  ;;  %v3275_v49 = vor.u32 %v3404_v48, %v3272_v57  ;;  %v938_v61 = vmul.f32 0.2, %v516_v60 }
 0x166   :  { %v4331_v24 = vpack.c.bf16 %v1064_v0, %v1060_v6  ;;  %v3372_v6 = vld [vmem:[%s5079_s3 + $0xc4] sm:$0xf]  ;;  %v1065_v33 = vsel %vm809_vm0, %v427_v16, %v937_v36 }
 0x167   :  { %v604_v44 = vpop.f32.mrf.mxu2  ;;  %2177 = vmatpush.bf16.msra.mxu3 %v3275_v49  ;;  %v3147_v57 = vor.u32 %v3372_v6, %v3144_v13  ;;  %v1066_v49 = vsel %vm810_vm1, %v516_v60, %v938_v61 }
 0x168   :  { %5151 = vst [vmem:[#allocation26_spill] sm:$0xff] %v4331_v24  ;;  %v693_v2 = vpop.f32.mrf.mxu3  ;;  %v428_v27 = vpop.f32.mrf.mxu0  ;;  %v605_v38 = vadd.f32 %v604_v44, %v3946_v54 }
 0x169   :  { %v429_v9 = vadd.f32 %v428_v27, %v3922_v39  ;;  %v517_v18 = vpop.f32.mrf.mxu1  ;;  %v694_v0 = vadd.f32 %v693_v2, %v3948_v58  ;;  %1999 = vmatpush.bf16.msra.mxu1 %v3147_v57 }
 0x16a   :  { %v518_v5 = vadd.f32 %v517_v18, %v3924_v41  ;;  %v939_v56 = vmul.f32 0.2, %v605_v38  ;;  %vm811_vm4 = vcmp.gt.f32.partialorder %v605_v38, 0.0 }
 0x16b   :  { %vm813_vm2 = vcmp.gt.f32.partialorder %v429_v9, 0.0  ;;  %v941_v62 = vmul.f32 0.2, %v429_v9  ;;  %v940_v2 = vmul.f32 0.2, %v694_v0  ;;  %vm812_vm5 = vcmp.gt.f32.partialorder %v694_v0, 0.0 }
 0x16c   :  { %vm814_vm3 = vcmp.gt.f32.partialorder %v518_v5, 0.0  ;;  %v942_v17 = vmul.f32 0.2, %v518_v5 }
 0x16d   :  { %v1069_v48 = vsel %vm813_vm2, %v429_v9, %v941_v62  ;;  %v1067_v9 = vsel %vm811_vm4, %v605_v38, %v939_v56 }
 0x16e   :  { %v4343_v55 = vpack.c.bf16 %v1069_v48, %v1065_v33  ;;  %v1070_v27 = vsel %vm814_vm3, %v518_v5, %v942_v17 }
 0x16f   :  { %v606_v44 = vpop.f32.mrf.mxu2  ;;  %v4345_v18 = vpack.c.bf16 %v1070_v27, %v1066_v49 }
 0x170   :  { %v607_v50 = vadd.f32 %v606_v44, %v3946_v54  ;;  %v695_v31 = vpop.f32.mrf.mxu3  ;;  %v431_v23 = vpop.f32.mrf.mxu0 }
 0x171   :  { %v696_v21 = vadd.f32 %v695_v31, %v3948_v58  ;;  %v520_v16 = vpop.f32.mrf.mxu1  ;;  %v432_v5 = vadd.f32 %v431_v23, %v3922_v39  ;;  %v1068_v31 = vsel %vm812_vm5, %v694_v0, %v940_v2 }
 0x172   :  { %vm815_vm6 = vcmp.gt.f32.partialorder %v607_v50, 0.0  ;;  %v943_v36 = vmul.f32 0.2, %v607_v50  ;;  %v521_v6 = vadd.f32 %v520_v16, %v3924_v41 }
 0x173   :  { %vm816_vm7 = vcmp.gt.f32.partialorder %v696_v21, 0.0  ;;  %v944_v60 = vmul.f32 0.2, %v696_v21  ;;  %1584 = vmatmul.bf16.gmra.mxu0 %v4105_v14  ;;  %v945_v49 = vmul.f32 0.2, %v432_v5  ;;  %vm817_vm8 = vcmp.gt.f32.partialorder %v432_v5, 0.0 }
 0x174   :  { %1673 = vmatmul.bf16.gmra.mxu1 %v4110_v20  ;;  %1762 = vmatmul.bf16.gmra.mxu2 %v4124_v46  ;;  %v1071_v61 = vsel %vm815_vm6, %v607_v50, %v943_v36  ;;  %v946_v50 = vmul.f32 0.2, %v521_v6  ;;  %vm818_vm9 = vcmp.gt.f32.partialorder %v521_v6, 0.0 }
 0x175   :  { %1851 = vmatmul.bf16.gmra.mxu3 %v4137_v63  ;;  %v4354_v62 = vpack.c.bf16 %v1071_v61, %v1067_v9  ;;  %v1072_v17 = vsel %vm816_vm7, %v696_v21, %v944_v60  ;;  %v1073_v2 = vsel %vm817_vm8, %v432_v5, %v945_v49 }
 0x176   :  { %v4357_v13 = vpack.c.bf16 %v1072_v17, %v1068_v31  ;;  %v1074_v60 = vsel %vm818_vm9, %v521_v6, %v946_v50  ;;  %v3386_v50 = vld [vmem:[%s5079_s3 + $0x134] sm:$0xf] }
 0x177   :  { %5152 = vst [vmem:[#allocation27_spill] sm:$0xff] %v4354_v62  ;;  %v609_v33 = vpop.f32.mrf.mxu2 }
 0x178   :  { %5153 = vst [vmem:[#allocation28_spill] sm:$0xff] %v4357_v13  ;;  %v698_v48 = vpop.f32.mrf.mxu3  ;;  %v433_v57 = vpop.f32.mrf.mxu0  ;;  %v610_v21 = vadd.f32 %v609_v33, %v3946_v54 }
 0x179   :  { %v434_v27 = vadd.f32 %v433_v57, %v3922_v39  ;;  %v522_v56 = vpop.f32.mrf.mxu1  ;;  %v699_v44 = vadd.f32 %v698_v48, %v3948_v58 }
 0x17a   :  { %v523_v23 = vadd.f32 %v522_v56, %v3924_v41  ;;  %v947_v17 = vmul.f32 0.2, %v610_v21  ;;  %vm819_vm12 = vcmp.gt.f32.partialorder %v610_v21, 0.0 }
 0x17b   :  { %vm821_vm10 = vcmp.gt.f32.partialorder %v434_v27, 0.0  ;;  %v949_v38 = vmul.f32 0.2, %v434_v27  ;;  %v948_v33 = vmul.f32 0.2, %v699_v44  ;;  %vm820_vm13 = vcmp.gt.f32.partialorder %v699_v44, 0.0 }
 0x17c   :  { %vm822_vm11 = vcmp.gt.f32.partialorder %v523_v23, 0.0  ;;  %v950_v0 = vmul.f32 0.2, %v523_v23  ;;  %v1075_v6 = vsel %vm819_vm12, %v610_v21, %v947_v17 }
 0x17d   :  { %v1077_v16 = vsel %vm821_vm10, %v434_v27, %v949_v38  ;;  %v3354_v38 = vld [vmem:[%s5079_s3 + $0x34] sm:$0xf]  ;;  %v1076_v21 = vsel %vm820_vm13, %v699_v44, %v948_v33 }
 0x17e   :  { %v4363_v36 = vpack.c.bf16 %v1077_v16, %v1073_v2  ;;  %v1078_v9 = vsel %vm822_vm11, %v523_v23, %v950_v0  ;;  %v3200_v23 = vld [vmem:[%s5079_s3 + $0x138] sm:$0xf0] }
 0x17f   :  { %v611_v61 = vpop.f32.mrf.mxu2  ;;  %v4365_v31 = vpack.c.bf16 %v1078_v9, %v1074_v60  ;;  %v3203_v16 = vor.u32 %v3386_v50, %v3200_v23  ;;  %v3072_v60 = vld [vmem:[%s5079_s3 + $0x38] sm:$0xf0]  ;;  %v3402_v9 = vld [vmem:[%s5079_s3 + $0x1b4] sm:$0xf] }
 0x180   :  { %v612_v57 = vadd.f32 %v611_v61, %v3946_v54  ;;  %v700_v56 = vpop.f32.mrf.mxu3  ;;  %v436_v63 = vpop.f32.mrf.mxu0  ;;  %v3264_v61 = vld [vmem:[%s5079_s3 + $0x1b8] sm:$0xf0]  ;;  %v3075_v44 = vor.u32 %v3354_v38, %v3072_v60 }
 0x181   :  { %v701_v46 = vadd.f32 %v700_v56, %v3948_v58  ;;  %v525_v20 = vpop.f32.mrf.mxu1  ;;  %v437_v27 = vadd.f32 %v436_v63, %v3922_v39  ;;  %2089 = vmatpush.bf16.msra.mxu2 %v3203_v16  ;;  %v3136_v16 = vld [vmem:[%s5079_s3 + $0xb8] sm:$0xf0] }
 0x182   :  { %vm823_vm14 = vcmp.gt.f32.partialorder %v612_v57, 0.0  ;;  %v951_v5 = vmul.f32 0.2, %v612_v57  ;;  %v526_v63 = vadd.f32 %v525_v20, %v3924_v41  ;;  %1911 = vmatpush.bf16.msra.mxu0 %v3075_v44 }
 0x183   :  { %vm824_vm15 = vcmp.gt.f32.partialorder %v701_v46, 0.0  ;;  %v952_v48 = vmul.f32 0.2, %v701_v46  ;;  %1589 = vmatmul.bf16.gmra.mxu0 %v4149_v32  ;;  %v953_v33 = vmul.f32 0.2, %v437_v27  ;;  %vm825_vm0 = vcmp.gt.f32.partialorder %v437_v27, 0.0 }
 0x184   :  { %1678 = vmatmul.bf16.gmra.mxu1 %v4154_v37  ;;  %1767 = vmatmul.bf16.gmra.mxu2 %v4159_v1  ;;  %v1079_v49 = vsel %vm823_vm14, %v612_v57, %v951_v5  ;;  %vm826_vm1 = vcmp.gt.f32.partialorder %v526_v63, 0.0 }
 0x185   :  { %1856 = vmatmul.bf16.gmra.mxu3 %v4162_v7  ;;  %v4383_v0 = vpack.c.bf16 %v1079_v49, %v1075_v6  ;;  %v1080_v2 = vsel %vm824_vm15, %v701_v46, %v952_v48  ;;  %v3267_v46 = vor.u32 %v3402_v9, %v3264_v61  ;;  %v954_v6 = vmul.f32 0.2, %v526_v63 }
 0x186   :  { %v4396_v17 = vpack.c.bf16 %v1080_v2, %v1076_v21  ;;  %v3370_v21 = vld [vmem:[%s5079_s3 + $0xb4] sm:$0xf]  ;;  %v1081_v60 = vsel %vm825_vm0, %v437_v27, %v953_v33 }
 0x187   :  { %5154 = vst [vmem:[#allocation29_spill] sm:$0xff] %v4383_v0  ;;  %v614_v57 = vpop.f32.mrf.mxu2  ;;  %2178 = vmatpush.bf16.msra.mxu3 %v3267_v46  ;;  %v3139_v61 = vor.u32 %v3370_v21, %v3136_v16  ;;  %v1082_v46 = vsel %vm826_vm1, %v526_v63, %v954_v6 }
 0x188   :  { %5155 = vst [vmem:[#allocation30_spill] sm:$0xff] %v4396_v17  ;;  %v703_v56 = vpop.f32.mrf.mxu3  ;;  %v438_v20 = vpop.f32.mrf.mxu0  ;;  %v615_v23 = vadd.f32 %v614_v57, %v3946_v54 }
 0x189   :  { %v439_v5 = vadd.f32 %v438_v20, %v3922_v39  ;;  %v527_v48 = vpop.f32.mrf.mxu1  ;;  %v704_v2 = vadd.f32 %v703_v56, %v3948_v58  ;;  %2000 = vmatpush.bf16.msra.mxu1 %v3139_v61 }
 0x18a   :  { %v528_v49 = vadd.f32 %v527_v48, %v3924_v41  ;;  %v955_v7 = vmul.f32 0.2, %v615_v23  ;;  %vm827_vm4 = vcmp.gt.f32.partialorder %v615_v23, 0.0 }
 0x18b   :  { %vm829_vm2 = vcmp.gt.f32.partialorder %v439_v5, 0.0  ;;  %v957_v50 = vmul.f32 0.2, %v439_v5  ;;  %v956_v56 = vmul.f32 0.2, %v704_v2  ;;  %vm828_vm5 = vcmp.gt.f32.partialorder %v704_v2, 0.0 }
 0x18c   :  { %vm830_vm3 = vcmp.gt.f32.partialorder %v528_v49, 0.0  ;;  %v958_v38 = vmul.f32 0.2, %v528_v49 }
 0x18d   :  { %v1085_v9 = vsel %vm829_vm2, %v439_v5, %v957_v50  ;;  %v1083_v5 = vsel %vm827_vm4, %v615_v23, %v955_v7  ;;  %v4429_v23 = vld [vmem:[%s5082_s4] sm:$0x3] }
 0x18e   :  { %v4408_v44 = vpack.c.bf16 %v1085_v9, %v1081_v60  ;;  %v1086_v20 = vsel %vm830_vm3, %v528_v49, %v958_v38  ;;  %5158 = vst [vmem:[#allocation33_spill] sm:$0xff] %v4429_v23 }
 0x18f   :  { %v616_v57 = vpop.f32.mrf.mxu2  ;;  %v4410_v48 = vpack.c.bf16 %v1086_v20, %v1082_v46 }
 0x190   :  { %v617_v1 = vadd.f32 %v616_v57, %v3946_v54  ;;  %v705_v37 = vpop.f32.mrf.mxu3  ;;  %v441_v32 = vpop.f32.mrf.mxu0 }
 0x191   :  { %v706_v14 = vadd.f32 %v705_v37, %v3948_v58  ;;  %v530_v27 = vpop.f32.mrf.mxu1  ;;  %v442_v49 = vadd.f32 %v441_v32, %v3922_v39  ;;  %v1084_v37 = vsel %vm828_vm5, %v704_v2, %v956_v56 }
 0x192   :  { %vm831_vm6 = vcmp.gt.f32.partialorder %v617_v1, 0.0  ;;  %v959_v33 = vmul.f32 0.2, %v617_v1  ;;  %v531_v21 = vadd.f32 %v530_v27, %v3924_v41 }
 0x193   :  { %vm832_vm7 = vcmp.gt.f32.partialorder %v706_v14, 0.0  ;;  %v960_v63 = vmul.f32 0.2, %v706_v14  ;;  %1594 = vmatmul.bf16.gmra.mxu0 %v4168_v34  ;;  %v961_v46 = vmul.f32 0.2, %v442_v49  ;;  %vm833_vm8 = vcmp.gt.f32.partialorder %v442_v49, 0.0 }
 0x194   :  { %1683 = vmatmul.bf16.gmra.mxu1 %v4170_v43  ;;  %1772 = vmatmul.bf16.gmra.mxu2 %v4188_v12  ;;  %v1087_v6 = vsel %vm831_vm6, %v617_v1, %v959_v33  ;;  %v962_v1 = vmul.f32 0.2, %v531_v21  ;;  %vm834_vm9 = vcmp.gt.f32.partialorder %v531_v21, 0.0 }
 0x195   :  { %1861 = vmatmul.bf16.gmra.mxu3 %v4201_v25  ;;  %v4419_v50 = vpack.c.bf16 %v1087_v6, %v1083_v5  ;;  %v1088_v38 = vsel %vm832_vm7, %v706_v14, %v960_v63  ;;  %v1089_v27 = vsel %vm833_vm8, %v442_v49, %v961_v46 }
 0x196   :  { %v4422_v16 = vpack.c.bf16 %v1088_v38, %v1084_v37  ;;  %v1090_v63 = vsel %vm834_vm9, %v531_v21, %v962_v1 }
 0x197   :  { %5156 = vst [vmem:[#allocation31_spill] sm:$0xff] %v4419_v50  ;;  %v619_v60 = vpop.f32.mrf.mxu2 }
 0x198   :  { %5157 = vst [vmem:[#allocation32_spill] sm:$0xff] %v4422_v16  ;;  %v708_v9 = vpop.f32.mrf.mxu3  ;;  %v443_v61 = vpop.f32.mrf.mxu0  ;;  %v620_v2 = vadd.f32 %v619_v60, %v3946_v54 }
 0x199   :  { %v444_v20 = vadd.f32 %v443_v61, %v3922_v39  ;;  %v532_v7 = vpop.f32.mrf.mxu1  ;;  %v709_v56 = vadd.f32 %v708_v9, %v3948_v58  ;;  %v4434_v39 = vperm.slane %v4429_v23, 0 }
 0x19a   :  { %v533_v32 = vadd.f32 %v532_v7, %v3924_v41  ;;  %v963_v38 = vmul.f32 0.2, %v620_v2  ;;  %vm835_vm12 = vcmp.gt.f32.partialorder %v620_v2, 0.0 }
 0x19b   :  { %vm837_vm10 = vcmp.gt.f32.partialorder %v444_v20, 0.0  ;;  %v965_v14 = vmul.f32 0.2, %v444_v20  ;;  %v964_v25 = vmul.f32 0.2, %v709_v56  ;;  %vm836_vm13 = vcmp.gt.f32.partialorder %v709_v56, 0.0 }
 0x19c   :  { %vm838_vm11 = vcmp.gt.f32.partialorder %v533_v32, 0.0  ;;  %v966_v57 = vmul.f32 0.2, %v533_v32 }
 0x19d   :  { %v1093_v33 = vsel %vm837_vm10, %v444_v20, %v965_v14 }
 0x19e   :  { %v4436_v41 = vpack.c.bf16 %v1093_v33, %v1089_v27  ;;  %v1094_v5 = vsel %vm838_vm11, %v533_v32, %v966_v57  ;;  %v3192_v32 = vld [vmem:[%s5079_s3 + $0x128] sm:$0xf0]  ;;  %v1092_v57 = vsel %vm836_vm13, %v709_v56, %v964_v25 }
 0x19f   :  { %v621_v6 = vpop.f32.mrf.mxu2  ;;  %v4438_v37 = vpack.c.bf16 %v1094_v5, %v1090_v63  ;;  %v3064_v33 = vld [vmem:[%s5079_s3 + $0x28] sm:$0xf0]  ;;  %v3400_v63 = vld [vmem:[%s5079_s3 + $0x1a4] sm:$0xf] }
 0x1a0   :  { %v622_v61 = vadd.f32 %v621_v6, %v3946_v54  ;;  %v710_v60 = vpop.f32.mrf.mxu3  ;;  %v1560_v7 = vpop.f32.mrf.mxu0  ;;  %v1091_v54 = vsel %vm835_vm12, %v620_v2, %v963_v38  ;;  %v3256_v5 = vld [vmem:[%s5079_s3 + $0x1a8] sm:$0xf0] }
 0x1a1   :  { %v711_v9 = vadd.f32 %v710_v60, %v3948_v58  ;;  %v1561_v23 = vadd.f32 %v1560_v7, %v4434_v39  ;;  %v1649_v49 = vpop.f32.mrf.mxu1  ;;  %v3384_v58 = vld [vmem:[%s5079_s3 + $0x124] sm:$0xf]  ;;  %v3259_v60 = vor.u32 %v3400_v63, %v3256_v5 }
 0x1a2   :  { %vm839_vm14 = vcmp.gt.f32.partialorder %v622_v61, 0.0  ;;  %v967_v46 = vmul.f32 0.2, %v622_v61  ;;  %v3195_v27 = vor.u32 %v3384_v58, %v3192_v32 }
 0x1a3   :  { %vm840_vm15 = vcmp.gt.f32.partialorder %v711_v9, 0.0  ;;  %v968_v21 = vmul.f32 0.2, %v711_v9  ;;  %v1650_v20 = vadd.f32 %v1649_v49, %v1561_v23  ;;  %1599 = vmatmul.bf16.gmra.mxu0 %v4213_v10  ;;  %v3352_v23 = vld [vmem:[%s5079_s3 + $0x24] sm:$0xf]  ;;  %2179 = vmatpush.bf16.msra.mxu3 %v3259_v60 }
 0x1a4   :  { %1688 = vmatmul.bf16.gmra.mxu1 %v4215_v19  ;;  %1777 = vmatmul.bf16.gmra.mxu2 %v4224_v40  ;;  %v1095_v1 = vsel %vm839_vm14, %v622_v61, %v967_v46  ;;  %v3067_v61 = vor.u32 %v3352_v23, %v3064_v33 }
 0x1a5   :  { %1866 = vmatmul.bf16.gmra.mxu3 %v4227_v59  ;;  %v4456_v14 = vpack.c.bf16 %v1095_v1, %v1091_v54  ;;  %v1096_v2 = vsel %vm840_vm15, %v711_v9, %v968_v21  ;;  %2090 = vmatpush.bf16.msra.mxu2 %v3195_v27  ;;  %v3368_v54 = vld [vmem:[%s5079_s3 + $0xa4] sm:$0xf]  ;;  %v3128_v1 = vld [vmem:[%s5079_s3 + $0xa8] sm:$0xf0] }
 0x1a6   :  { %v4468_v6 = vpack.c.bf16 %v1096_v2, %v1092_v57  ;;  %1912 = vmatpush.bf16.msra.mxu0 %v3067_v61 }
 0x1a7   :  { %5159 = vst [vmem:[#allocation34_spill] sm:$0xff] %v4456_v14  ;;  %v1738_v38 = vpop.f32.mrf.mxu2 }
 0x1a8   :  { %5160 = vst [vmem:[#allocation35_spill] sm:$0xff] %v4468_v6  ;;  %v1739_v25 = vadd.f32 %v1738_v38, %v1650_v20  ;;  %v1827_v56 = vpop.f32.mrf.mxu3  ;;  %v1562_v7 = vpop.f32.mrf.mxu0  ;;  %v3131_v20 = vor.u32 %v3368_v54, %v3128_v1 }
 0x1a9   :  { %v1563_v9 = vadd.f32 %v1562_v7, %v4434_v39  ;;  %v1651_v49 = vpop.f32.mrf.mxu1 }
 0x1aa   :  { %v4471_v46 = vadd.f32 %v1827_v56, %v1739_v25  ;;  %2001 = vmatpush.bf16.msra.mxu1 %v3131_v20 }
 0x1ab   :  { %v1652_v21 = vadd.f32 %v1651_v49, %v1563_v9 }
 0x1ac   :  { %vm2263_vm0 = vcmp.gt.f32.partialorder %v4471_v46, 0.0 }
 0x1af   :  { %v1740_v58 = vpop.f32.mrf.mxu2 }
 0x1b0   :  { %v1741_v32 = vadd.f32 %v1740_v58, %v1652_v21  ;;  %v1829_v23 = vpop.f32.mrf.mxu3  ;;  %v1565_v57 = vpop.f32.mrf.mxu0 }
 0x1b1   :  { %v1566_v2 = vadd.f32 %v1565_v57, %v4434_v39  ;;  %v1654_v27 = vpop.f32.mrf.mxu1  ;;  %v3382_v57 = vld [vmem:[%s5079_s3 + $0x114] sm:$0xf] }
 0x1b2   :  { %v4480_v33 = vadd.f32 %v1829_v23, %v1741_v32 }
 0x1b3   :  { %v1655_v63 = vadd.f32 %v1654_v27, %v1566_v2  ;;  %1604 = vmatmul.bf16.gmra.mxu0 %v4233_v35  ;;  %v3184_v2 = vld [vmem:[%s5079_s3 + $0x118] sm:$0xf0]  ;;  %v3350_v27 = vld [vmem:[%s5079_s3 + $0x14] sm:$0xf] }
 0x1b4   :  { %1693 = vmatmul.bf16.gmra.mxu1 %v4235_v42  ;;  %1782 = vmatmul.bf16.gmra.mxu2 %v4253_v22  ;;  %vm2265_vm2 = vcmp.gt.f32.partialorder %v4480_v33, 0.0 }
 0x1b5   :  { %1871 = vmatmul.bf16.gmra.mxu3 %v4266_v51 }
 0x1b7   :  { %v1743_v5 = vpop.f32.mrf.mxu2 }
 0x1b8   :  { %v1744_v38 = vadd.f32 %v1743_v5, %v1655_v63  ;;  %v1832_v61 = vpop.f32.mrf.mxu3  ;;  %v1567_v60 = vpop.f32.mrf.mxu0  ;;  %v3187_v63 = vor.u32 %v3382_v57, %v3184_v2  ;;  %v3056_v5 = vld [vmem:[%s5079_s3 + $0x18] sm:$0xf0]  ;;  %v3366_v57 = vld [vmem:[%s5079_s3 + $0x94] sm:$0xf] }
 0x1b9   :  { %v1568_v25 = vadd.f32 %v1567_v60, %v4434_v39  ;;  %v1656_v56 = vpop.f32.mrf.mxu1  ;;  %v3120_v2 = vld [vmem:[%s5079_s3 + $0x98] sm:$0xf0] }
 0x1ba   :  { %v4487_v7 = vadd.f32 %v1832_v61, %v1744_v38  ;;  %v3398_v38 = vld [vmem:[%s5079_s3 + $0x194] sm:$0xf]  ;;  %v3248_v61 = vld [vmem:[%s5079_s3 + $0x198] sm:$0xf0]  ;;  %2091 = vmatpush.bf16.msra.mxu2 %v3187_v63 }
 0x1bb   :  { %v1657_v9 = vadd.f32 %v1656_v56, %v1568_v25  ;;  %v3059_v25 = vor.u32 %v3350_v27, %v3056_v5  ;;  %v3251_v56 = vor.u32 %v3398_v38, %v3248_v61 }
 0x1bc   :  { %vm2267_vm4 = vcmp.gt.f32.partialorder %v4487_v7, 0.0 }
 0x1bd   :  { %1913 = vmatpush.bf16.msra.mxu0 %v3059_v25  ;;  %2180 = vmatpush.bf16.msra.mxu3 %v3251_v56 }
 0x1bf   :  { %v1745_v49 = vpop.f32.mrf.mxu2 }
 0x1c0   :  { %v1746_v21 = vadd.f32 %v1745_v49, %v1657_v9  ;;  %v1834_v54 = vpop.f32.mrf.mxu3  ;;  %v1570_v1 = vpop.f32.mrf.mxu0 }
 0x1c1   :  { %v1571_v20 = vadd.f32 %v1570_v1, %v4434_v39  ;;  %v1659_v58 = vpop.f32.mrf.mxu1 }
 0x1c2   :  { %v4490_v32 = vadd.f32 %v1834_v54, %v1746_v21 }
 0x1c3   :  { %v1660_v23 = vadd.f32 %v1659_v58, %v1571_v20  ;;  %1609 = vmatmul.bf16.gmra.mxu0 %v4278_v30 }
 0x1c4   :  { %1698 = vmatmul.bf16.gmra.mxu1 %v4280_v3  ;;  %1787 = vmatmul.bf16.gmra.mxu2 %v4289_v15  ;;  %vm2269_vm6 = vcmp.gt.f32.partialorder %v4490_v32, 0.0 }
 0x1c5   :  { %1876 = vmatmul.bf16.gmra.mxu3 %v4292_v4 }
 0x1c7   :  { %v1748_v60 = vpop.f32.mrf.mxu2 }
 0x1c8   :  { %v1749_v9 = vadd.f32 %v1748_v60, %v1660_v23  ;;  %v1837_v49 = vpop.f32.mrf.mxu3  ;;  %v1572_v21 = vpop.f32.mrf.mxu0  ;;  %v3123_v23 = vor.u32 %v3366_v57, %v3120_v2 }
 0x1c9   :  { %v1573_v54 = vadd.f32 %v1572_v21, %v4434_v39  ;;  %v1661_v1 = vpop.f32.mrf.mxu1 }
 0x1ca   :  { %v4515_v20 = vadd.f32 %v1837_v49, %v1749_v9  ;;  %2002 = vmatpush.bf16.msra.mxu1 %v3123_v23 }
 0x1cb   :  { %v1662_v58 = vadd.f32 %v1661_v1, %v1573_v54 }
 0x1cc   :  { %vm2271_vm8 = vcmp.gt.f32.partialorder %v4515_v20, 0.0 }
 0x1cf   :  { %v1750_v27 = vpop.f32.mrf.mxu2 }
 0x1d0   :  { %v1751_v5 = vadd.f32 %v1750_v27, %v1662_v58  ;;  %v1839_v63 = vpop.f32.mrf.mxu3  ;;  %v1575_v38 = vpop.f32.mrf.mxu0 }
 0x1d1   :  { %v1576_v61 = vadd.f32 %v1575_v38, %v4434_v39  ;;  %v1664_v60 = vpop.f32.mrf.mxu1 }
 0x1d2   :  { %v4524_v25 = vadd.f32 %v1839_v63, %v1751_v5 }
 0x1d3   :  { %v1665_v56 = vadd.f32 %v1664_v60, %v1576_v61  ;;  %1614 = vmatmul.bf16.gmra.mxu0 %v4298_v53 }
 0x1d4   :  { %1703 = vmatmul.bf16.gmra.mxu1 %v4300_v45  ;;  %1792 = vmatmul.bf16.gmra.mxu2 %v4318_v28  ;;  %vm2273_vm10 = vcmp.gt.f32.partialorder %v4524_v25, 0.0 }
 0x1d5   :  { %1881 = vmatmul.bf16.gmra.mxu3 %v4331_v24 }
 0x1d7   :  { %v1753_v9 = vpop.f32.mrf.mxu2 }
 0x1d8   :  { %v1754_v49 = vadd.f32 %v1753_v9, %v1665_v56  ;;  %v1842_v21 = vpop.f32.mrf.mxu3  ;;  %v1577_v54 = vpop.f32.mrf.mxu0  ;;  %v3380_v56 = vld [vmem:[%s5079_s3 + $0x104] sm:$0xf]  ;;  %v3176_v9 = vld [vmem:[%s5079_s3 + $0x108] sm:$0xf0] }
 0x1d9   :  { %v1578_v1 = vadd.f32 %v1577_v54, %v4434_v39  ;;  %v1666_v58 = vpop.f32.mrf.mxu1  ;;  %v3048_v54 = vld [vmem:[%s5079_s3 + $0x8] sm:$0xf0] }
 0x1da   :  { %v4531_v57 = vadd.f32 %v1842_v21, %v1754_v49  ;;  %v3348_v49 = vld [vmem:[%s5079_s3 + $0x4] sm:$0xf]  ;;  %v3179_v21 = vor.u32 %v3380_v56, %v3176_v9 }
 0x1db   :  { %v1667_v2 = vadd.f32 %v1666_v58, %v1578_v1  ;;  %v3396_v1 = vld [vmem:[%s5079_s3 + $0x184] sm:$0xf]  ;;  %v3240_v58 = vld [vmem:[%s5079_s3 + $0x188] sm:$0xf0] }
 0x1dc   :  { %2092 = vmatpush.bf16.msra.mxu2 %v3179_v21  ;;  %vm2275_vm12 = vcmp.gt.f32.partialorder %v4531_v57, 0.0 }
 0x1df   :  { %v1755_v23 = vpop.f32.mrf.mxu2 }
 0x1e0   :  { %v1756_v27 = vadd.f32 %v1755_v23, %v1667_v2  ;;  %v1844_v5 = vpop.f32.mrf.mxu3  ;;  %v1580_v63 = vpop.f32.mrf.mxu0  ;;  %v3051_v23 = vor.u32 %v3348_v49, %v3048_v54  ;;  %v3112_v49 = vld [vmem:[%s5079_s3 + $0x88] sm:$0xf0] }
 0x1e1   :  { %v1581_v38 = vadd.f32 %v1580_v63, %v4434_v39  ;;  %v1669_v61 = vpop.f32.mrf.mxu1 }
 0x1e2   :  { %v4534_v60 = vadd.f32 %v1844_v5, %v1756_v27  ;;  %v3243_v27 = vor.u32 %v3396_v1, %v3240_v58  ;;  %1914 = vmatpush.bf16.msra.mxu0 %v3051_v23 }
 0x1e3   :  { %v1670_v24 = vadd.f32 %v1669_v61, %v1581_v38  ;;  %1619 = vmatmul.bf16.gmra.mxu0 %v4343_v55 }
 0x1e4   :  { %1708 = vmatmul.bf16.gmra.mxu1 %v4345_v18  ;;  %1797 = vmatmul.bf16.gmra.mxu2 %v4354_v62  ;;  %v3364_v62 = vld [vmem:[%s5079_s3 + $0x84] sm:$0xf]  ;;  %vm2277_vm14 = vcmp.gt.f32.partialorder %v4534_v60, 0.0 }
 0x1e5   :  { %1886 = vmatmul.bf16.gmra.mxu3 %v4357_v13 }
 0x1e6   :  { %2181 = vmatpush.bf16.msra.mxu3 %v3243_v27 }
 0x1e7   :  { %v1758_v2 = vpop.f32.mrf.mxu2 }
 0x1e8   :  { %v1759_v5 = vadd.f32 %v1758_v2, %v1670_v24  ;;  %v1847_v63 = vpop.f32.mrf.mxu3  ;;  %v1582_v38 = vpop.f32.mrf.mxu0  ;;  %v3115_v24 = vor.u32 %v3364_v62, %v3112_v49 }
 0x1e9   :  { %v1583_v61 = vadd.f32 %v1582_v38, %v4434_v39  ;;  %v1671_v56 = vpop.f32.mrf.mxu1 }
 0x1ea   :  { %v4559_v9 = vadd.f32 %v1847_v63, %v1759_v5  ;;  %2003 = vmatpush.bf16.msra.mxu1 %v3115_v24 }
 0x1eb   :  { %v1672_v13 = vadd.f32 %v1671_v56, %v1583_v61 }
 0x1ef   :  { %v1760_v54 = vpop.f32.mrf.mxu2 }
 0x1f0   :  { %v1761_v1 = vadd.f32 %v1760_v54, %v1672_v13  ;;  %v1849_v21 = vpop.f32.mrf.mxu3  ;;  %v1585_v58 = vpop.f32.mrf.mxu0 }
 0x1f1   :  { %v1586_v2 = vadd.f32 %v1585_v58, %v4434_v39  ;;  %v1674_v23 = vpop.f32.mrf.mxu1 }
 0x1f2   :  { %v4568_v27 = vadd.f32 %v1849_v21, %v1761_v1 }
 0x1f3   :  { %v1675_v5 = vadd.f32 %v1674_v23, %v1586_v2  ;;  %1624 = vmatmul.bf16.gmra.mxu0 %v4363_v36 }
 0x1f4   :  { %1713 = vmatmul.bf16.gmra.mxu1 %v4365_v31  ;;  %1802 = vmatmul.bf16.gmra.mxu2 %v4383_v0 }
 0x1f5   :  { %1891 = vmatmul.bf16.gmra.mxu3 %v4396_v17 }
 0x1f7   :  { %v1763_v62 = vpop.f32.mrf.mxu2 }
 0x1f8   :  { %v1764_v63 = vadd.f32 %v1763_v62, %v1675_v5  ;;  %v1852_v13 = vpop.f32.mrf.mxu3  ;;  %v1587_v38 = vpop.f32.mrf.mxu0 }
 0x1f9   :  { %v1588_v61 = vadd.f32 %v1587_v38, %v4434_v39  ;;  %v1676_v56 = vpop.f32.mrf.mxu1 }
 0x1fa   :  { %v4575_v49 = vadd.f32 %v1852_v13, %v1764_v63 }
 0x1fb   :  { %v1677_v24 = vadd.f32 %v1676_v56, %v1588_v61 }
 0x1ff   :  { %v1765_v54 = vpop.f32.mrf.mxu2 }
 0x200   :  { %v1766_v1 = vadd.f32 %v1765_v54, %v1677_v24  ;;  %v1854_v21 = vpop.f32.mrf.mxu3  ;;  %v1590_v58 = vpop.f32.mrf.mxu0 }
 0x201   :  { %v1591_v2 = vadd.f32 %v1590_v58, %v4434_v39  ;;  %v1679_v23 = vpop.f32.mrf.mxu1 }
 0x202   :  { %v4578_v0 = vadd.f32 %v1854_v21, %v1766_v1 }
 0x203   :  { %v1680_v17 = vadd.f32 %v1679_v23, %v1591_v2  ;;  %1629 = vmatmul.bf16.gmra.mxu0 %v4408_v44 }
 0x204   :  { %1718 = vmatmul.bf16.gmra.mxu1 %v4410_v48  ;;  %1807 = vmatmul.bf16.gmra.mxu2 %v4419_v50 }
 0x205   :  { %1896 = vmatmul.bf16.gmra.mxu3 %v4422_v16 }
 0x207   :  { %v1768_v5 = vpop.f32.mrf.mxu2 }
 0x208   :  { %v1769_v62 = vadd.f32 %v1768_v5, %v1680_v17  ;;  %v1857_v63 = vpop.f32.mrf.mxu3  ;;  %v1592_v13 = vpop.f32.mrf.mxu0 }
 0x209   :  { %v1593_v38 = vadd.f32 %v1592_v13, %v4434_v39  ;;  %v1681_v61 = vpop.f32.mrf.mxu1 }
 0x20a   :  { %v4585_v56 = vadd.f32 %v1857_v63, %v1769_v62 }
 0x20b   :  { %v1682_v24 = vadd.f32 %v1681_v61, %v1593_v38 }
 0x20f   :  { %v1770_v54 = vpop.f32.mrf.mxu2 }
 0x210   :  { %v1771_v1 = vadd.f32 %v1770_v54, %v1682_v24  ;;  %v1859_v21 = vpop.f32.mrf.mxu3  ;;  %v1595_v58 = vpop.f32.mrf.mxu0 }
 0x211   :  { %v1596_v2 = vadd.f32 %v1595_v58, %v4434_v39  ;;  %v1684_v23 = vpop.f32.mrf.mxu1 }
 0x212   :  { %v4588_v50 = vadd.f32 %v1859_v21, %v1771_v1 }
 0x213   :  { %v1685_v16 = vadd.f32 %v1684_v23, %v1596_v2  ;;  %1634 = vmatmul.bf16.gmra.mxu0 %v4436_v41 }
 0x214   :  { %1723 = vmatmul.bf16.gmra.mxu1 %v4438_v37  ;;  %1812 = vmatmul.bf16.gmra.mxu2 %v4456_v14 }
 0x215   :  { %1901 = vmatmul.bf16.gmra.mxu3 %v4468_v6 }
 0x217   :  { %v1773_v17 = vpop.f32.mrf.mxu2 }
 0x218   :  { %v1774_v5 = vadd.f32 %v1773_v17, %v1685_v16  ;;  %v1862_v62 = vpop.f32.mrf.mxu3  ;;  %v1597_v63 = vpop.f32.mrf.mxu0 }
 0x219   :  { %v1598_v13 = vadd.f32 %v1597_v63, %v4434_v39  ;;  %v1686_v38 = vpop.f32.mrf.mxu1 }
 0x21a   :  { %v4595_v61 = vadd.f32 %v1862_v62, %v1774_v5 }
 0x21b   :  { %v1687_v24 = vadd.f32 %v1686_v38, %v1598_v13 }
 0x21f   :  { %v1775_v54 = vpop.f32.mrf.mxu2 }
 0x220   :  { %v1776_v1 = vadd.f32 %v1775_v54, %v1687_v24  ;;  %v1864_v21 = vpop.f32.mrf.mxu3  ;;  %v1600_v58 = vpop.f32.mrf.mxu0 }
 0x221   :  { %v1601_v2 = vadd.f32 %v1600_v58, %v4434_v39  ;;  %v1689_v23 = vpop.f32.mrf.mxu1 }
 0x222   :  { %v4598_v14 = vadd.f32 %v1864_v21, %v1776_v1 }
 0x223   :  { %v1690_v6 = vadd.f32 %v1689_v23, %v1601_v2  ;;  %1915 = vmatmul.bf16.vlgmr.msra.gmra.mxu0 %v3960_v8  ;;  %v5162_v2 = vld [vmem:[#allocation4_spill] sm:$0xff] }
 0x224   :  { %2004 = vmatmul.bf16.vlgmr.msra.gmra.mxu1 %v3962_v11  ;;  %2093 = vmatmul.bf16.vlgmr.msra.gmra.mxu2 %v3969_v26 }
 0x225   :  { %2182 = vmatmul.bf16.vlgmr.msra.gmra.mxu3 %v3972_v29 }
 0x227   :  { %v1778_v16 = vpop.f32.mrf.mxu2 }
 0x228   :  { %v1779_v17 = vadd.f32 %v1778_v16, %v1690_v6  ;;  %v1867_v5 = vpop.f32.mrf.mxu3  ;;  %v1602_v62 = vpop.f32.mrf.mxu0  ;;  %v5161_v6 = vld [vmem:[#allocation3_spill] sm:$0xff] }
 0x229   :  { %v1603_v63 = vadd.f32 %v1602_v62, %v4434_v39  ;;  %v1691_v13 = vpop.f32.mrf.mxu1 }
 0x22a   :  { %v4605_v38 = vadd.f32 %v1867_v5, %v1779_v17 }
 0x22b   :  { %v1692_v24 = vadd.f32 %v1691_v13, %v1603_v63 }
 0x22f   :  { %v1780_v54 = vpop.f32.mrf.mxu2 }
 0x230   :  { %v1781_v1 = vadd.f32 %v1780_v54, %v1692_v24  ;;  %v1869_v21 = vpop.f32.mrf.mxu3  ;;  %v1605_v8 = vpop.f32.mrf.mxu0 }
 0x231   :  { %v1606_v11 = vadd.f32 %v1605_v8, %v4434_v39  ;;  %v1694_v58 = vpop.f32.mrf.mxu1 }
 0x232   :  { %v4608_v26 = vadd.f32 %v1869_v21, %v1781_v1 }
 0x233   :  { %v1695_v29 = vadd.f32 %v1694_v58, %v1606_v11  ;;  %1920 = vmatmul.bf16.gmra.mxu0 %v3979_v47 }
 0x234   :  { %2009 = vmatmul.bf16.gmra.mxu1 %v3984_v52  ;;  %2098 = vmatmul.bf16.gmra.mxu2 %v5161_v6  ;;  %v5164_v6 = vld [vmem:[#allocation5_spill] sm:$0xff] }
 0x235   :  { %2187 = vmatmul.bf16.gmra.mxu3 %v5162_v2  ;;  %v5166_v2 = vld [vmem:[#allocation7_spill] sm:$0xff] }
 0x237   :  { %v1783_v23 = vpop.f32.mrf.mxu2 }
 0x238   :  { %v1784_v16 = vadd.f32 %v1783_v23, %v1695_v29  ;;  %v1872_v17 = vpop.f32.mrf.mxu3  ;;  %v1607_v5 = vpop.f32.mrf.mxu0  ;;  %v5165_v29 = vld [vmem:[#allocation6_spill] sm:$0xff]  ;;  %v5167_v23 = vld [vmem:[#allocation8_spill] sm:$0xff] }
 0x239   :  { %v1608_v62 = vadd.f32 %v1607_v5, %v4434_v39  ;;  %v1696_v63 = vpop.f32.mrf.mxu1 }
 0x23a   :  { %v4615_v13 = vadd.f32 %v1872_v17, %v1784_v16 }
 0x23b   :  { %v1697_v24 = vadd.f32 %v1696_v63, %v1608_v62 }
 0x23f   :  { %v1785_v54 = vpop.f32.mrf.mxu2 }
 0x240   :  { %v1786_v1 = vadd.f32 %v1785_v54, %v1697_v24  ;;  %v1874_v21 = vpop.f32.mrf.mxu3  ;;  %v1610_v47 = vpop.f32.mrf.mxu0 }
 0x241   :  { %v1611_v52 = vadd.f32 %v1610_v47, %v4434_v39  ;;  %v1699_v8 = vpop.f32.mrf.mxu1 }
 0x242   :  { %v4618_v11 = vadd.f32 %v1874_v21, %v1786_v1 }
 0x243   :  { %v1700_v58 = vadd.f32 %v1699_v8, %v1611_v52  ;;  %1925 = vmatmul.bf16.gmra.mxu0 %v5164_v6 }
 0x244   :  { %5163 = vst [vmem:[#allocation3_spill] sm:$0xff] %v4618_v11  ;;  %2014 = vmatmul.bf16.gmra.mxu1 %v5165_v29  ;;  %2103 = vmatmul.bf16.gmra.mxu2 %v5166_v2  ;;  %v5170_v11 = vld [vmem:[#allocation9_spill] sm:$0xff] }
 0x245   :  { %2192 = vmatmul.bf16.gmra.mxu3 %v5167_v23 }
 0x247   :  { %v1788_v16 = vpop.f32.mrf.mxu2 }
 0x248   :  { %v1789_v17 = vadd.f32 %v1788_v16, %v1700_v58  ;;  %v1877_v5 = vpop.f32.mrf.mxu3  ;;  %v1612_v62 = vpop.f32.mrf.mxu0  ;;  %v5171_v58 = vld [vmem:[#allocation10_spill] sm:$0xff]  ;;  %v5172_v16 = vld [vmem:[#allocation11_spill] sm:$0xff] }
 0x249   :  { %v1613_v63 = vadd.f32 %v1612_v62, %v4434_v39  ;;  %v1701_v24 = vpop.f32.mrf.mxu1  ;;  %v5173_v62 = vld [vmem:[#allocation12_spill] sm:$0xff] }
 0x24a   :  { %v4625_v54 = vadd.f32 %v1877_v5, %v1789_v17 }
 0x24b   :  { %v1702_v1 = vadd.f32 %v1701_v24, %v1613_v63 }
 0x24c   :  { %5168 = vst [vmem:[#allocation4_spill] sm:$0xff] %v4625_v54  ;;  %v5176_v54 = vld [vmem:[#allocation13_spill] sm:$0xff] }
 0x24f   :  { %v1790_v21 = vpop.f32.mrf.mxu2 }
 0x250   :  { %v1791_v47 = vadd.f32 %v1790_v21, %v1702_v1  ;;  %v1879_v52 = vpop.f32.mrf.mxu3  ;;  %v1615_v8 = vpop.f32.mrf.mxu0 }
 0x251   :  { %v1616_v6 = vadd.f32 %v1615_v8, %v4434_v39  ;;  %v1704_v29 = vpop.f32.mrf.mxu1 }
 0x252   :  { %v4628_v2 = vadd.f32 %v1879_v52, %v1791_v47 }
 0x253   :  { %v1705_v23 = vadd.f32 %v1704_v29, %v1616_v6  ;;  %1930 = vmatmul.bf16.gmra.mxu0 %v5170_v11 }
 0x254   :  { %5169 = vst [vmem:[#allocation5_spill] sm:$0xff] %v4628_v2  ;;  %2019 = vmatmul.bf16.gmra.mxu1 %v5171_v58  ;;  %2108 = vmatmul.bf16.gmra.mxu2 %v5172_v16 }
 0x255   :  { %2197 = vmatmul.bf16.gmra.mxu3 %v5173_v62 }
 0x257   :  { %v1793_v17 = vpop.f32.mrf.mxu2 }
 0x258   :  { %v1794_v5 = vadd.f32 %v1793_v17, %v1705_v23  ;;  %v1882_v63 = vpop.f32.mrf.mxu3  ;;  %v1617_v24 = vpop.f32.mrf.mxu0  ;;  %v5177_v23 = vld [vmem:[#allocation14_spill] sm:$0xff]  ;;  %v5178_v17 = vld [vmem:[#allocation15_spill] sm:$0xff] }
 0x259   :  { %v1618_v1 = vadd.f32 %v1617_v24, %v4434_v39  ;;  %v1706_v21 = vpop.f32.mrf.mxu1  ;;  %v5179_v24 = vld [vmem:[#allocation16_spill] sm:$0xff] }
 0x25a   :  { %v4635_v8 = vadd.f32 %v1882_v63, %v1794_v5 }
 0x25b   :  { %v1707_v47 = vadd.f32 %v1706_v21, %v1618_v1 }
 0x25c   :  { %5174 = vst [vmem:[#allocation6_spill] sm:$0xff] %v4635_v8  ;;  %v5182_v8 = vld [vmem:[#allocation17_spill] sm:$0xff] }
 0x25f   :  { %v1795_v52 = vpop.f32.mrf.mxu2 }
 0x260   :  { %v1796_v6 = vadd.f32 %v1795_v52, %v1707_v47  ;;  %v1884_v29 = vpop.f32.mrf.mxu3  ;;  %v1620_v11 = vpop.f32.mrf.mxu0 }
 0x261   :  { %v1621_v58 = vadd.f32 %v1620_v11, %v4434_v39  ;;  %v1709_v2 = vpop.f32.mrf.mxu1 }
 0x262   :  { %v4638_v16 = vadd.f32 %v1884_v29, %v1796_v6 }
 0x263   :  { %v1710_v62 = vadd.f32 %v1709_v2, %v1621_v58  ;;  %1935 = vmatmul.bf16.gmra.mxu0 %v5176_v54 }
 0x264   :  { %5175 = vst [vmem:[#allocation7_spill] sm:$0xff] %v4638_v16  ;;  %2024 = vmatmul.bf16.gmra.mxu1 %v5177_v23  ;;  %2113 = vmatmul.bf16.gmra.mxu2 %v5178_v17 }
 0x265   :  { %2202 = vmatmul.bf16.gmra.mxu3 %v5179_v24 }
 0x267   :  { %v1798_v5 = vpop.f32.mrf.mxu2 }
 0x268   :  { %v1799_v63 = vadd.f32 %v1798_v5, %v1710_v62  ;;  %v1887_v1 = vpop.f32.mrf.mxu3  ;;  %v1622_v21 = vpop.f32.mrf.mxu0  ;;  %v5183_v62 = vld [vmem:[#allocation18_spill] sm:$0xff]  ;;  %v5184_v5 = vld [vmem:[#allocation19_spill] sm:$0xff] }
 0x269   :  { %v1623_v47 = vadd.f32 %v1622_v21, %v4434_v39  ;;  %v1711_v52 = vpop.f32.mrf.mxu1  ;;  %v5185_v21 = vld [vmem:[#allocation20_spill] sm:$0xff] }
 0x26a   :  { %v4645_v11 = vadd.f32 %v1887_v1, %v1799_v63 }
 0x26b   :  { %v1712_v6 = vadd.f32 %v1711_v52, %v1623_v47 }
 0x26c   :  { %5180 = vst [vmem:[#allocation8_spill] sm:$0xff] %v4645_v11  ;;  %v5187_v11 = vld [vmem:[#allocation21_spill] sm:$0xff] }
 0x26f   :  { %v1800_v29 = vpop.f32.mrf.mxu2 }
 0x270   :  { %v1801_v2 = vadd.f32 %v1800_v29, %v1712_v6  ;;  %v1889_v58 = vpop.f32.mrf.mxu3  ;;  %v1625_v54 = vpop.f32.mrf.mxu0 }
 0x271   :  { %v1626_v23 = vadd.f32 %v1625_v54, %v4434_v39  ;;  %v1714_v16 = vpop.f32.mrf.mxu1 }
 0x272   :  { %v4648_v17 = vadd.f32 %v1889_v58, %v1801_v2 }
 0x273   :  { %v1715_v24 = vadd.f32 %v1714_v16, %v1626_v23  ;;  %1940 = vmatmul.bf16.gmra.mxu0 %v5182_v8 }
 0x274   :  { %5181 = vst [vmem:[#allocation9_spill] sm:$0xff] %v4648_v17  ;;  %2029 = vmatmul.bf16.gmra.mxu1 %v5183_v62  ;;  %2118 = vmatmul.bf16.gmra.mxu2 %v5184_v5 }
 0x275   :  { %2207 = vmatmul.bf16.gmra.mxu3 %v5185_v21 }
 0x277   :  { %v1803_v63 = vpop.f32.mrf.mxu2 }
 0x278   :  { %v1804_v1 = vadd.f32 %v1803_v63, %v1715_v24  ;;  %v1892_v47 = vpop.f32.mrf.mxu3  ;;  %v1627_v52 = vpop.f32.mrf.mxu0  ;;  %v5188_v24 = vld [vmem:[#allocation22_spill] sm:$0xff]  ;;  %v5189_v63 = vld [vmem:[#allocation23_spill] sm:$0xff] }
 0x279   :  { %v1628_v6 = vadd.f32 %v1627_v52, %v4434_v39  ;;  %v1716_v29 = vpop.f32.mrf.mxu1  ;;  %v5190_v52 = vld [vmem:[#allocation24_spill] sm:$0xff] }
 0x27a   :  { %v4655_v54 = vadd.f32 %v1892_v47, %v1804_v1 }
 0x27b   :  { %v1717_v2 = vadd.f32 %v1716_v29, %v1628_v6 }
 0x27f   :  { %v1805_v58 = vpop.f32.mrf.mxu2 }
 0x280   :  { %v1806_v16 = vadd.f32 %v1805_v58, %v1717_v2  ;;  %v1894_v23 = vpop.f32.mrf.mxu3  ;;  %v1630_v8 = vpop.f32.mrf.mxu0 }
 0x281   :  { %v1631_v62 = vadd.f32 %v1630_v8, %v4434_v39  ;;  %v1719_v17 = vpop.f32.mrf.mxu1 }
 0x282   :  { %v4658_v5 = vadd.f32 %v1894_v23, %v1806_v16 }
 0x283   :  { %v1720_v21 = vadd.f32 %v1719_v17, %v1631_v62  ;;  %1945 = vmatmul.bf16.gmra.mxu0 %v5187_v11 }
 0x284   :  { %5186 = vst [vmem:[#allocation10_spill] sm:$0xff] %v4658_v5  ;;  %2034 = vmatmul.bf16.gmra.mxu1 %v5188_v24  ;;  %2123 = vmatmul.bf16.gmra.mxu2 %v5189_v63 }
 0x285   :  { %2212 = vmatmul.bf16.gmra.mxu3 %v5190_v52 }
 0x287   :  { %v1808_v1 = vpop.f32.mrf.mxu2 }
 0x288   :  { %v1809_v47 = vadd.f32 %v1808_v1, %v1720_v21  ;;  %v1897_v6 = vpop.f32.mrf.mxu3  ;;  %v1632_v29 = vpop.f32.mrf.mxu0  ;;  %v5191_v21 = vld [vmem:[#allocation25_spill] sm:$0xff] }
 0x289   :  { %v1633_v2 = vadd.f32 %v1632_v29, %v4434_v39  ;;  %v1721_v58 = vpop.f32.mrf.mxu1 }
 0x28a   :  { %v4665_v8 = vadd.f32 %v1897_v6, %v1809_v47 }
 0x28b   :  { %v1722_v16 = vadd.f32 %v1721_v58, %v1633_v2 }
 0x28f   :  { %v1810_v23 = vpop.f32.mrf.mxu2 }
 0x290   :  { %v1811_v17 = vadd.f32 %v1810_v23, %v1722_v16  ;;  %v1899_v62 = vpop.f32.mrf.mxu3  ;;  %v1635_v11 = vpop.f32.mrf.mxu0 }
 0x291   :  { %v1636_v24 = vadd.f32 %v1635_v11, %v4434_v39  ;;  %v1724_v5 = vpop.f32.mrf.mxu1 }
 0x292   :  { %v4668_v63 = vadd.f32 %v1899_v62, %v1811_v17  ;;  %v5192_v17 = vld [vmem:[#allocation33_spill] sm:$0xff] }
 0x293   :  { %v1725_v52 = vadd.f32 %v1724_v5, %v1636_v24  ;;  %1950 = vmatmul.bf16.gmra.mxu0 %v4168_v34  ;;  %v4678_v5 = vperm.slane %v5192_v17, 1 }
 0x294   :  { %2039 = vmatmul.bf16.gmra.mxu1 %v4170_v43  ;;  %2128 = vmatmul.bf16.gmra.mxu2 %v4188_v12 }
 0x295   :  { %2217 = vmatmul.bf16.gmra.mxu3 %v5191_v21 }
 0x297   :  { %v1813_v1 = vpop.f32.mrf.mxu2 }
 0x298   :  { %v1814_v47 = vadd.f32 %v1813_v1, %v1725_v52  ;;  %v1902_v6 = vpop.f32.mrf.mxu3  ;;  %v1637_v29 = vpop.f32.mrf.mxu0  ;;  %v2327_v1 = vmul.f32 0.2, %v4471_v46 }
 0x299   :  { %v1638_v2 = vadd.f32 %v1637_v29, %v4434_v39  ;;  %v1726_v58 = vpop.f32.mrf.mxu1 }
 0x29a   :  { %v4675_v16 = vadd.f32 %v1902_v6, %v1814_v47  ;;  %v2391_v17 = vsel %vm2263_vm0, %v4471_v46, %v2327_v1  ;;  %vm2279_vm0 = vcmp.gt.f32.partialorder %v4559_v9, 0.0 }
 0x29b   :  { %v1727_v23 = vadd.f32 %v1726_v58, %v1638_v2  ;;  %v2455_v2 = vld [vmem:[%s5083_s5] sm:$0x3] }
 0x29f   :  { %v1815_v34 = vpop.f32.mrf.mxu2 }
 0x2a0   :  { %v1816_v62 = vadd.f32 %v1815_v34, %v1727_v23  ;;  %v1904_v43 = vpop.f32.mrf.mxu3  ;;  %v1916_v11 = vpop.f32.mrf.mxu0 }
 0x2a1   :  { %v2005_v12 = vpop.f32.mrf.mxu1  ;;  %v1917_v52 = vadd.f32 %v1916_v11, %v4678_v5 }
 0x2a2   :  { %v4680_v24 = vadd.f32 %v1904_v43, %v1816_v62 }
 0x2a3   :  { %1955 = vmatmul.bf16.gmra.mxu0 %v4213_v10  ;;  %v2006_v39 = vadd.f32 %v2005_v12, %v1917_v52  ;;  %v2329_v52 = vmul.f32 0.2, %v4480_v33 }
 0x2a4   :  { %5193 = vst [vmem:[#allocation11_spill] sm:$0xff] %v4680_v24  ;;  %2044 = vmatmul.bf16.gmra.mxu1 %v4215_v19  ;;  %2133 = vmatmul.bf16.gmra.mxu2 %v4224_v40  ;;  %v4693_v40 = vperm.slane %v2455_v2, 0 }
 0x2a5   :  { %2222 = vmatmul.bf16.gmra.mxu3 %v4227_v59  ;;  %v4695_v59 = vperm.slane %v2455_v2, 1  ;;  %v2393_v1 = vsel %vm2265_vm2, %v4480_v33, %v2329_v52  ;;  %vm2281_vm2 = vcmp.gt.f32.partialorder %v4568_v27, 0.0 }
 0x2a6   :  { %v2461_v11 = vmul.f32 %v4693_v40, %v2391_v17 }
 0x2a7   :  { %v2094_v21 = vpop.f32.mrf.mxu2 }
 0x2a8   :  { %v2095_v47 = vadd.f32 %v2094_v21, %v2006_v39  ;;  %v2183_v6 = vpop.f32.mrf.mxu3  ;;  %v1918_v29 = vpop.f32.mrf.mxu0 }
 0x2a9   :  { %v2007_v10 = vpop.f32.mrf.mxu1  ;;  %v1919_v19 = vadd.f32 %v1918_v29, %v4678_v5 }
 0x2aa   :  { %v2184_v58 = vadd.f32 %v2183_v6, %v2095_v47 }
 0x2ab   :  { %v2008_v34 = vadd.f32 %v2007_v10, %v1919_v19 }
 0x2ac   :  { %vm2264_vm1 = vcmp.gt.f32.partialorder %v2184_v58, 0.0  ;;  %v2328_v23 = vmul.f32 0.2, %v2184_v58 }
 0x2ae   :  { %v2392_v62 = vsel %vm2264_vm1, %v2184_v58, %v2328_v23  ;;  %v2463_v23 = vmul.f32 %v4693_v40, %v2393_v1 }
 0x2af   :  { %v2096_v43 = vpop.f32.mrf.mxu2  ;;  %v2462_v12 = vmul.f32 %v4695_v59, %v2392_v62 }
 0x2b0   :  { %v2097_v39 = vadd.f32 %v2096_v43, %v2008_v34  ;;  %v2185_v21 = vpop.f32.mrf.mxu3  ;;  %v1921_v47 = vpop.f32.mrf.mxu0  ;;  %v2331_v34 = vmul.f32 0.2, %v4487_v7 }
 0x2b1   :  { %v2010_v6 = vpop.f32.mrf.mxu1  ;;  %v2525_v29 = vadd.f32 %v2462_v12, %v2461_v11  ;;  %v1922_v24 = vadd.f32 %v1921_v47, %v4678_v5 }
 0x2b2   :  { %v2186_v2 = vadd.f32 %v2185_v21, %v2097_v39 }
 0x2b3   :  { %2526 = vadd.xlane.f32.xlu0 %v2525_v29  ;;  %1960 = vmatmul.bf16.gmra.mxu0 %v4233_v35  ;;  %v2011_v10 = vadd.f32 %v2010_v6, %v1922_v24  ;;  %v2395_v24 = vsel %vm2267_vm4, %v4487_v7, %v2331_v34  ;;  %v2333_v6 = vmul.f32 0.2, %v4490_v32  ;;  %vm2283_vm4 = vcmp.gt.f32.partialorder %v4575_v49, 0.0 }
 0x2b4   :  { %vm2266_vm3 = vcmp.gt.f32.partialorder %v2186_v2, 0.0  ;;  %v2330_v46 = vmul.f32 0.2, %v2186_v2  ;;  %2049 = vmatmul.bf16.gmra.mxu1 %v4235_v42  ;;  %2138 = vmatmul.bf16.gmra.mxu2 %v4253_v22  ;;  %v2465_v21 = vmul.f32 %v4693_v40, %v2395_v24 }
 0x2b5   :  { %2227 = vmatmul.bf16.gmra.mxu3 %v4266_v51 }
 0x2b6   :  { %v2394_v58 = vsel %vm2266_vm3, %v2186_v2, %v2330_v46 }
 0x2b7   :  { %v2099_v19 = vpop.f32.mrf.mxu2  ;;  %v2464_v17 = vmul.f32 %v4695_v59, %v2394_v58 }
 0x2b8   :  { %v2100_v35 = vadd.f32 %v2099_v19, %v2011_v10  ;;  %v2188_v62 = vpop.f32.mrf.mxu3  ;;  %v1923_v43 = vpop.f32.mrf.mxu0 }
 0x2b9   :  { %v2012_v42 = vpop.f32.mrf.mxu1  ;;  %v2528_v22 = vadd.f32 %v2464_v17, %v2463_v23  ;;  %v1924_v33 = vadd.f32 %v1923_v43, %v4678_v5  ;;  %v2397_v23 = vsel %vm2269_vm6, %v4490_v32, %v2333_v6  ;;  %vm2285_vm6 = vcmp.gt.f32.partialorder %v4578_v0, 0.0 }
 0x2ba   :  { %v2189_v11 = vadd.f32 %v2188_v62, %v2100_v35  ;;  %v2467_v62 = vmul.f32 %v4693_v40, %v2397_v23 }
 0x2bb   :  { %2529 = vadd.xlane.f32.xlu0 %v2528_v22  ;;  %v2013_v12 = vadd.f32 %v2012_v42, %v1924_v33  ;;  %v2335_v42 = vmul.f32 0.2, %v4515_v20 }
 0x2bc   :  { %vm2268_vm5 = vcmp.gt.f32.partialorder %v2189_v11, 0.0  ;;  %v2332_v51 = vmul.f32 0.2, %v2189_v11 }
 0x2be   :  { %v2396_v52 = vsel %vm2268_vm5, %v2189_v11, %v2332_v51  ;;  %v2399_v51 = vsel %vm2271_vm8, %v4515_v20, %v2335_v42  ;;  %vm2287_vm8 = vcmp.gt.f32.partialorder %v4585_v56, 0.0 }
 0x2bf   :  { %v2101_v39 = vpop.f32.mrf.mxu2  ;;  %v2466_v47 = vmul.f32 %v4695_v59, %v2396_v52 }
 0x2c0   :  { %v2102_v29 = vadd.f32 %v2101_v39, %v2013_v12  ;;  %v2190_v2 = vpop.f32.mrf.mxu3  ;;  %v1926_v46 = vpop.f32.mrf.mxu0  ;;  %v2469_v39 = vmul.f32 %v4693_v40, %v2399_v51 }
 0x2c1   :  { %v2015_v1 = vpop.f32.mrf.mxu1  ;;  %v2531_v10 = vadd.f32 %v2466_v47, %v2465_v21  ;;  %v1927_v19 = vadd.f32 %v1926_v46, %v4678_v5  ;;  %v2337_v47 = vmul.f32 0.2, %v4524_v25 }
 0x2c2   :  { %v2191_v58 = vadd.f32 %v2190_v2, %v2102_v29 }
 0x2c3   :  { %2532 = vadd.xlane.f32.xlu1 %v2531_v10  ;;  %1965 = vmatmul.bf16.gmra.mxu0 %v4278_v30  ;;  %v2016_v17 = vadd.f32 %v2015_v1, %v1927_v19  ;;  %v2401_v19 = vsel %vm2273_vm10, %v4524_v25, %v2337_v47  ;;  %vm2289_vm10 = vcmp.gt.f32.partialorder %v4588_v50, 0.0 }
 0x2c4   :  { %vm2270_vm7 = vcmp.gt.f32.partialorder %v2191_v58, 0.0  ;;  %v2334_v7 = vmul.f32 0.2, %v2191_v58  ;;  %2054 = vmatmul.bf16.gmra.mxu1 %v4280_v3  ;;  %2143 = vmatmul.bf16.gmra.mxu2 %v4289_v15 }
 0x2c5   :  { %2232 = vmatmul.bf16.gmra.mxu3 %v4292_v4 }
 0x2c6   :  { %v2398_v34 = vsel %vm2270_vm7, %v2191_v58, %v2334_v7  ;;  %v5194_v7 = vld [vmem:[#allocation26_spill] sm:$0xff] }
 0x2c7   :  { %v2104_v35 = vpop.f32.mrf.mxu2  ;;  %v2468_v43 = vmul.f32 %v4695_v59, %v2398_v34 }
 0x2c8   :  { %v2105_v30 = vadd.f32 %v2104_v35, %v2016_v17  ;;  %v2193_v22 = vpop.f32.mrf.mxu3  ;;  %v1928_v11 = vpop.f32.mrf.mxu0  ;;  %v2471_v35 = vmul.f32 %v4693_v40, %v2401_v19 }
 0x2c9   :  { %v2017_v3 = vpop.f32.mrf.mxu1  ;;  %v2534_v15 = vadd.f32 %v2468_v43, %v2467_v62  ;;  %v1929_v32 = vadd.f32 %v1928_v11, %v4678_v5  ;;  %v2339_v43 = vmul.f32 0.2, %v4531_v57 }
 0x2ca   :  { %v2194_v33 = vadd.f32 %v2193_v22, %v2105_v30 }
 0x2cb   :  { %2535 = vadd.xlane.f32.xlu1 %v2534_v15  ;;  %v2018_v24 = vadd.f32 %v2017_v3, %v1929_v32  ;;  %v2403_v3 = vsel %vm2275_vm12, %v4531_v57, %v2339_v43  ;;  %vm2291_vm12 = vcmp.gt.f32.partialorder %v4595_v61, 0.0 }
 0x2cc   :  { %vm2272_vm9 = vcmp.gt.f32.partialorder %v2194_v33, 0.0  ;;  %v2336_v4 = vmul.f32 0.2, %v2194_v33 }
 0x2ce   :  { %v2400_v12 = vsel %vm2272_vm9, %v2194_v33, %v2336_v4  ;;  %v2473_v4 = vmul.f32 %v4693_v40, %v2403_v3 }
 0x2cf   :  { %v2106_v52 = vpop.f32.mrf.mxu2  ;;  %v2470_v21 = vmul.f32 %v4695_v59, %v2400_v12 }
 0x2d0   :  { %v2107_v6 = vadd.f32 %v2106_v52, %v2018_v24  ;;  %v2195_v29 = vpop.f32.mrf.mxu3  ;;  %v1931_v2 = vpop.f32.mrf.mxu0  ;;  %v2341_v24 = vmul.f32 0.2, %v4534_v60 }
 0x2d1   :  { %v2020_v46 = vpop.f32.mrf.mxu1  ;;  %v2537_v1 = vadd.f32 %v2470_v21, %v2469_v39  ;;  %v1932_v58 = vadd.f32 %v1931_v2, %v4678_v5  ;;  %v5195_v2 = vld [vmem:[#allocation27_spill] sm:$0xff] }
 0x2d2   :  { %v2196_v10 = vadd.f32 %v2195_v29, %v2107_v6 }
 0x2d3   :  { %2538 = vadd.xlane.f32.xlu2 %v2537_v1  ;;  %1970 = vmatmul.bf16.gmra.mxu0 %v4298_v53  ;;  %v2021_v23 = vadd.f32 %v2020_v46, %v1932_v58  ;;  %v2405_v46 = vsel %vm2277_vm14, %v4534_v60, %v2341_v24  ;;  %v5196_v1 = vld [vmem:[#allocation28_spill] sm:$0xff]  ;;  %v5197_v24 = vld [vmem:[#allocation29_spill] sm:$0xff]  ;;  %vm2293_vm14 = vcmp.gt.f32.partialorder %v4598_v14, 0.0 }
 0x2d4   :  { %vm2274_vm11 = vcmp.gt.f32.partialorder %v2196_v10, 0.0  ;;  %v2338_v20 = vmul.f32 0.2, %v2196_v10  ;;  %2059 = vmatmul.bf16.gmra.mxu1 %v4300_v45  ;;  %2148 = vmatmul.bf16.gmra.mxu2 %v4318_v28  ;;  %v2475_v19 = vmul.f32 %v4693_v40, %v2405_v46 }
 0x2d5   :  { %2237 = vmatmul.bf16.gmra.mxu3 %v5194_v7 }
 0x2d6   :  { %v2402_v17 = vsel %vm2274_vm11, %v2196_v10, %v2338_v20 }
 0x2d7   :  { %v2109_v34 = vpop.f32.mrf.mxu2  ;;  %v2472_v62 = vmul.f32 %v4695_v59, %v2402_v17 }
 0x2d8   :  { %v2110_v53 = vadd.f32 %v2109_v34, %v2021_v23  ;;  %v2198_v42 = vpop.f32.mrf.mxu3  ;;  %v1933_v30 = vpop.f32.mrf.mxu0  ;;  %v2343_v23 = vmul.f32 0.2, %v4559_v9 }
 0x2d9   :  { %v2022_v45 = vpop.f32.mrf.mxu1  ;;  %v2540_v28 = vadd.f32 %v2472_v62, %v2471_v35  ;;  %v1934_v25 = vadd.f32 %v1933_v30, %v4678_v5 }
 0x2da   :  { %v2199_v22 = vadd.f32 %v2198_v42, %v2110_v53  ;;  %v2407_v53 = vsel %vm2279_vm0, %v4559_v9, %v2343_v23  ;;  %vm2295_vm0 = vcmp.gt.f32.partialorder %v4605_v38, 0.0 }
 0x2db   :  { %2541 = vadd.xlane.f32.xlu2 %v2540_v28  ;;  %v2023_v15 = vadd.f32 %v2022_v45, %v1934_v25  ;;  %v2477_v28 = vmul.f32 %v4693_v40, %v2407_v53  ;;  %v2345_v25 = vmul.f32 0.2, %v4568_v27 }
 0x2dc   :  { %vm2276_vm13 = vcmp.gt.f32.partialorder %v2199_v22, 0.0  ;;  %v2340_v11 = vmul.f32 0.2, %v2199_v22 }
 0x2de   :  { %v2404_v33 = vsel %vm2276_vm13, %v2199_v22, %v2340_v11 }
 0x2df   :  { %v2111_v32 = vpop.f32.mrf.mxu2  ;;  %v2474_v51 = vmul.f32 %v4695_v59, %v2404_v33 }
 0x2e0   :  { %v2112_v12 = vadd.f32 %v2111_v32, %v2023_v15  ;;  %v2200_v52 = vpop.f32.mrf.mxu3  ;;  %v1936_v39 = vpop.f32.mrf.mxu0 }
 0x2e1   :  { %v2025_v21 = vpop.f32.mrf.mxu1  ;;  %v2543_v47 = vadd.f32 %v2474_v51, %v2473_v4  ;;  %v1937_v29 = vadd.f32 %v1936_v39, %v4678_v5 }
 0x2e2   :  { %v2201_v6 = vadd.f32 %v2200_v52, %v2112_v12  ;;  %v2409_v12 = vsel %vm2281_vm2, %v4568_v27, %v2345_v25  ;;  %v5198_v52 = vld [vmem:[#allocation30_spill] sm:$0xff]  ;;  %vm2297_vm2 = vcmp.gt.f32.partialorder %v4608_v26, 0.0 }
 0x2e3   :  { %2544 = vadd.xlane.f32.xlu0 %v2543_v47  ;;  %1975 = vmatmul.bf16.gmra.mxu0 %v4343_v55  ;;  %v2026_v10 = vadd.f32 %v2025_v21, %v1937_v29 }
 0x2e4   :  { %vm2278_vm15 = vcmp.gt.f32.partialorder %v2201_v6, 0.0  ;;  %v2342_v57 = vmul.f32 0.2, %v2201_v6  ;;  %2064 = vmatmul.bf16.gmra.mxu1 %v4345_v18  ;;  %2153 = vmatmul.bf16.gmra.mxu2 %v5195_v2 }
 0x2e5   :  { %2242 = vmatmul.bf16.gmra.mxu3 %v5196_v1 }
 0x2e6   :  { %v2406_v58 = vsel %vm2278_vm15, %v2201_v6, %v2342_v57  ;;  %v2479_v6 = vmul.f32 %v4693_v40, %v2409_v12  ;;  %v2347_v57 = vmul.f32 0.2, %v4575_v49 }
 0x2e7   :  { %v2114_v20 = vpop.f32.mrf.mxu2  ;;  %v2476_v7 = vmul.f32 %v4695_v59, %v2406_v58 }
 0x2e8   :  { %v2115_v55 = vadd.f32 %v2114_v20, %v2026_v10  ;;  %v2203_v17 = vpop.f32.mrf.mxu3  ;;  %v1938_v34 = vpop.f32.mrf.mxu0  ;;  %v2411_v20 = vsel %vm2283_vm4, %v4575_v49, %v2347_v57  ;;  %vm2299_vm4 = vcmp.gt.f32.partialorder %v4615_v13, 0.0 }
 0x2e9   :  { %v2027_v18 = vpop.f32.mrf.mxu1  ;;  %v2546_v35 = vadd.f32 %v2476_v7, %v2475_v19  ;;  %v1939_v60 = vadd.f32 %v1938_v34, %v4678_v5  ;;  %v2349_v34 = vmul.f32 0.2, %v4578_v0 }
 0x2ea   :  { %v2204_v62 = vadd.f32 %v2203_v17, %v2115_v55  ;;  %v2481_v55 = vmul.f32 %v4693_v40, %v2411_v20  ;;  %v5202_v20 = vld [vmem:[#allocation35_spill] sm:$0xff] }
 0x2eb   :  { %2547 = vadd.xlane.f32.xlu1 %v2546_v35  ;;  %v2028_v42 = vadd.f32 %v2027_v18, %v1939_v60 }
 0x2ec   :  { %vm2280_vm1 = vcmp.gt.f32.partialorder %v2204_v62, 0.0  ;;  %v2344_v43 = vmul.f32 0.2, %v2204_v62 }
 0x2ee   :  { %v2408_v30 = vsel %vm2280_vm1, %v2204_v62, %v2344_v43 }
 0x2ef   :  { %v2116_v45 = vpop.f32.mrf.mxu2  ;;  %v2478_v22 = vmul.f32 %v4695_v59, %v2408_v30  ;;  %v5199_v30 = vld [vmem:[#allocation31_spill] sm:$0xff] }
 0x2f0   :  { %v2117_v11 = vadd.f32 %v2116_v45, %v2028_v42  ;;  %v2205_v3 = vpop.f32.mrf.mxu3  ;;  %v1941_v15 = vpop.f32.mrf.mxu0  ;;  %v2413_v45 = vsel %vm2285_vm6, %v4578_v0, %v2349_v34  ;;  %v2355_v34 = vmul.f32 0.2, %v4595_v61 }
 0x2f1   :  { %v2030_v33 = vpop.f32.mrf.mxu1  ;;  %v2549_v32 = vadd.f32 %v2478_v22, %v2477_v28  ;;  %v1942_v51 = vadd.f32 %v1941_v15, %v4678_v5  ;;  %v5200_v28 = vld [vmem:[#allocation32_spill] sm:$0xff] }
 0x2f2   :  { %v2206_v4 = vadd.f32 %v2205_v3, %v2117_v11  ;;  %v2483_v3 = vmul.f32 %v4693_v40, %v2413_v45 }
 0x2f3   :  { %2550 = vadd.xlane.f32.xlu2 %v2549_v32  ;;  %1980 = vmatmul.bf16.gmra.mxu0 %v4363_v36  ;;  %v2031_v39 = vadd.f32 %v2030_v33, %v1942_v51  ;;  %v2351_v33 = vmul.f32 0.2, %v4585_v56 }
 0x2f4   :  { %vm2282_vm3 = vcmp.gt.f32.partialorder %v2206_v4, 0.0  ;;  %v2346_v9 = vmul.f32 0.2, %v2206_v4  ;;  %2069 = vmatmul.bf16.gmra.mxu1 %v4365_v31  ;;  %2158 = vmatmul.bf16.gmra.mxu2 %v5197_v24 }
 0x2f5   :  { %2247 = vmatmul.bf16.gmra.mxu3 %v5198_v52  ;;  %v2415_v12 = vsel %vm2287_vm8, %v4585_v56, %v2351_v33 }
 0x2f6   :  { %v2410_v21 = vsel %vm2282_vm3, %v2206_v4, %v2346_v9 }
 0x2f7   :  { %v2119_v47 = vpop.f32.mrf.mxu2  ;;  %v2480_v29 = vmul.f32 %v4695_v59, %v2410_v21 }
 0x2f8   :  { %v2120_v36 = vadd.f32 %v2119_v47, %v2031_v39  ;;  %v2208_v2 = vpop.f32.mrf.mxu3  ;;  %v1943_v46 = vpop.f32.mrf.mxu0  ;;  %v2485_v47 = vmul.f32 %v4693_v40, %v2415_v12 }
 0x2f9   :  { %v2032_v31 = vpop.f32.mrf.mxu1  ;;  %v2552_v1 = vadd.f32 %v2480_v29, %v2479_v6  ;;  %v1944_v27 = vadd.f32 %v1943_v46, %v4678_v5  ;;  %v2353_v29 = vmul.f32 0.2, %v4588_v50 }
 0x2fa   :  { %v2209_v10 = vadd.f32 %v2208_v2, %v2120_v36 }
 0x2fb   :  { %2553 = vadd.xlane.f32.xlu0 %v2552_v1  ;;  %v2033_v19 = vadd.f32 %v2032_v31, %v1944_v27  ;;  %v5201_v27 = vld [vmem:[#allocation34_spill] sm:$0xff] }
 0x2fc   :  { %vm2284_vm5 = vcmp.gt.f32.partialorder %v2209_v10, 0.0  ;;  %v2348_v58 = vmul.f32 0.2, %v2209_v10 }
 0x2fe   :  { %v2412_v7 = vsel %vm2284_vm5, %v2209_v10, %v2348_v58  ;;  %v2417_v58 = vsel %vm2289_vm10, %v4588_v50, %v2353_v29  ;;  %vm2815_vm5 = vcmask 7168  }
 0x2ff   :  { %v2121_v23 = vpop.f32.mrf.mxu2  ;;  %v2482_v17 = vmul.f32 %v4695_v59, %v2412_v7 }
 0x300   :  { %v2122_v18 = vadd.f32 %v2121_v23, %v2033_v19  ;;  %v2210_v35 = vpop.f32.mrf.mxu3  ;;  %v1946_v62 = vpop.f32.mrf.mxu0 }
 0x301   :  { %v2035_v60 = vpop.f32.mrf.mxu1  ;;  %v2555_v43 = vadd.f32 %v2482_v17, %v2481_v55  ;;  %v1947_v42 = vadd.f32 %v1946_v62, %v4678_v5  ;;  %v2487_v55 = vmul.f32 %v4693_v40, %v2417_v58 }
 0x302   :  { %v2211_v53 = vadd.f32 %v2210_v35, %v2122_v18 }
 0x303   :  { %2556 = vadd.xlane.f32.xlu1 %v2555_v43  ;;  %1985 = vmatmul.bf16.gmra.mxu0 %v4408_v44  ;;  %v2036_v22 = vadd.f32 %v2035_v60, %v1947_v42 }
 0x304   :  { %vm2286_vm7 = vcmp.gt.f32.partialorder %v2211_v53, 0.0  ;;  %v2350_v49 = vmul.f32 0.2, %v2211_v53  ;;  %2074 = vmatmul.bf16.gmra.mxu1 %v4410_v48  ;;  %2163 = vmatmul.bf16.gmra.mxu2 %v5199_v30 }
 0x305   :  { %2252 = vmatmul.bf16.gmra.mxu3 %v5200_v28 }
 0x306   :  { %v2414_v25 = vsel %vm2286_vm7, %v2211_v53, %v2350_v49  ;;  %v2419_v53 = vsel %vm2291_vm12, %v4595_v61, %v2355_v34 }
 0x307   :  { %v2124_v11 = vpop.f32.mrf.mxu2  ;;  %v2484_v15 = vmul.f32 %v4695_v59, %v2414_v25  ;;  %v2489_v45 = vmul.f32 %v4693_v40, %v2419_v53 }
 0x308   :  { %v2125_v44 = vadd.f32 %v2124_v11, %v2036_v22  ;;  %v2213_v32 = vpop.f32.mrf.mxu3  ;;  %v1948_v4 = vpop.f32.mrf.mxu0  ;;  %v2357_v22 = vmul.f32 0.2, %v4598_v14 }
 0x309   :  { %v2037_v48 = vpop.f32.mrf.mxu1  ;;  %v2558_v51 = vadd.f32 %v2484_v15, %v2483_v3  ;;  %v1949_v0 = vadd.f32 %v1948_v4, %v4678_v5  ;;  %v4818_v4 = vstv %s5084_s6 }
 0x30a   :  { %v2214_v9 = vadd.f32 %v2213_v32, %v2125_v44 }
 0x30b   :  { %2559 = vadd.xlane.f32.xlu2 %v2558_v51  ;;  %v2038_v52 = vadd.f32 %v2037_v48, %v1949_v0  ;;  %v2421_v48 = vsel %vm2293_vm14, %v4598_v14, %v2357_v22 }
 0x30c   :  { %vm2288_vm9 = vcmp.gt.f32.partialorder %v2214_v9, 0.0  ;;  %v2352_v24 = vmul.f32 0.2, %v2214_v9 }
 0x30e   :  { %v2416_v39 = vsel %vm2288_vm9, %v2214_v9, %v2352_v24 }
 0x30f   :  { %v2126_v21 = vpop.f32.mrf.mxu2  ;;  %v2486_v6 = vmul.f32 %v4695_v59, %v2416_v39 }
 0x310   :  { %v2127_v57 = vadd.f32 %v2126_v21, %v2038_v52  ;;  %v2215_v36 = vpop.f32.mrf.mxu3  ;;  %v1951_v2 = vpop.f32.mrf.mxu0  ;;  %v2491_v52 = vmul.f32 %v4693_v40, %v2421_v48  ;;  %v2359_v21 = vmul.f32 0.2, %v4605_v38 }
 0x311   :  { %v2040_v46 = vpop.f32.mrf.mxu1  ;;  %v2561_v31 = vadd.f32 %v2486_v6, %v2485_v47  ;;  %v1952_v10 = vadd.f32 %v1951_v2, %v4678_v5 }
 0x312   :  { %v2216_v1 = vadd.f32 %v2215_v36, %v2127_v57 }
 0x313   :  { %2562 = vadd.xlane.f32.xlu0 %v2561_v31  ;;  %1990 = vmatmul.bf16.gmra.mxu0 %v4436_v41  ;;  %v2041_v19 = vadd.f32 %v2040_v46, %v1952_v10  ;;  %v2423_v10 = vsel %vm2295_vm0, %v4605_v38, %v2359_v21 }
 0x314   :  { %vm2290_vm11 = vcmp.gt.f32.partialorder %v2216_v1, 0.0  ;;  %v2354_v56 = vmul.f32 0.2, %v2216_v1  ;;  %2079 = vmatmul.bf16.gmra.mxu1 %v4438_v37  ;;  %2168 = vmatmul.bf16.gmra.mxu2 %v5201_v27 }
 0x315   :  { %2257 = vmatmul.bf16.gmra.mxu3 %v5202_v20 }
 0x316   :  { %v2418_v7 = vsel %vm2290_vm11, %v2216_v1, %v2354_v56 }
 0x317   :  { %v2129_v23 = vpop.f32.mrf.mxu2  ;;  %v2488_v17 = vmul.f32 %v4695_v59, %v2418_v7  ;;  %v2493_v7 = vmul.f32 %v4693_v40, %v2423_v10 }
 0x318   :  { %v2130_v41 = vadd.f32 %v2129_v23, %v2041_v19  ;;  %v2218_v18 = vpop.f32.mrf.mxu3  ;;  %v1953_v35 = vpop.f32.mrf.mxu0 }
 0x319   :  { %v2042_v37 = vpop.f32.mrf.mxu1  ;;  %v2564_v62 = vadd.f32 %v2488_v17, %v2487_v55  ;;  %v1954_v50 = vadd.f32 %v1953_v35, %v4678_v5  ;;  %v2361_v55 = vmul.f32 0.2, %v4608_v26 }
 0x31a   :  { %v2219_v60 = vadd.f32 %v2218_v18, %v2130_v41 }
 0x31b   :  { %2565 = vadd.xlane.f32.xlu1 %v2564_v62  ;;  %v2043_v42 = vadd.f32 %v2042_v37, %v1954_v50 }
 0x31c   :  { %vm2292_vm13 = vcmp.gt.f32.partialorder %v2219_v60, 0.0  ;;  %v2356_v43 = vmul.f32 0.2, %v2219_v60 }
 0x31e   :  { %v2420_v49 = vsel %vm2292_vm13, %v2219_v60, %v2356_v43 }
 0x31f   :  { %v2131_v30 = vpop.f32.mrf.mxu2  ;;  %v2490_v28 = vmul.f32 %v4695_v59, %v2420_v49 }
 0x320   :  { %v2132_v25 = vadd.f32 %v2131_v30, %v2043_v42  ;;  %v2220_v11 = vpop.f32.mrf.mxu3  ;;  %v1956_v3 = vpop.f32.mrf.mxu0  ;;  %v2425_v42 = vsel %vm2297_vm2, %v4608_v26, %v2361_v55 }
 0x321   :  { %v2045_v15 = vpop.f32.mrf.mxu1  ;;  %v2567_v33 = vadd.f32 %v2490_v28, %v2489_v45  ;;  %v1957_v32 = vadd.f32 %v1956_v3, %v4678_v5  ;;  %v2363_v3 = vmul.f32 0.2, %v4615_v13 }
 0x322   :  { %v2221_v44 = vadd.f32 %v2220_v11, %v2132_v25  ;;  %v2495_v25 = vmul.f32 %v4693_v40, %v2425_v42 }
 0x323   :  { %2568 = vadd.xlane.f32.xlu2 %v2567_v33  ;;  %v2046_v51 = vadd.f32 %v2045_v15, %v1957_v32 }
 0x324   :  { %vm2294_vm15 = vcmp.gt.f32.partialorder %v2221_v44, 0.0  ;;  %v2358_v61 = vmul.f32 0.2, %v2221_v44 }
 0x326   :  { %v2527_v9 = vpop.xlane.xlu0 %2526  ;;  %v2422_v0 = vsel %vm2294_vm15, %v2221_v44, %v2358_v61 }
 0x327   :  { %v2623_v24 = vadd.f32 %v4818_v4, %v2527_v9  ;;  %v2134_v12 = vpop.f32.mrf.mxu2  ;;  %v2492_v39 = vmul.f32 %v4695_v59, %v2422_v0 }
 0x328   :  { %v2135_v47 = vadd.f32 %v2134_v12, %v2046_v51  ;;  %v2223_v6 = vpop.f32.mrf.mxu3  ;;  %v1958_v29 = vpop.f32.mrf.mxu0 }
 0x329   :  { %v2655_v57 = vsub.f32 0.0, %v2623_v24  ;;  %v2047_v36 = vpop.f32.mrf.mxu1  ;;  %v2570_v14 = vadd.f32 %v2492_v39, %v2491_v52  ;;  %v1959_v46 = vadd.f32 %v1958_v29, %v4678_v5  ;;  %v2427_v39 = vsel %vm2299_vm4, %v4615_v13, %v2363_v3 }
 0x32a   :  { %v2224_v2 = vadd.f32 %v2223_v6, %v2135_v47 }
 0x32b   :  { %v2687_v31 = vmul.f32 1.442695, %v2655_v57  ;;  %2571 = vadd.xlane.f32.xlu0 %v2570_v14  ;;  %v2048_v56 = vadd.f32 %v2047_v36, %v1959_v46  ;;  %v2497_v36 = vmul.f32 %v4693_v40, %v2427_v39 }
 0x32c   :  { %vm2296_vm1 = vcmp.gt.f32.partialorder %v2224_v2, 0.0  ;;  %v2360_v1 = vmul.f32 0.2, %v2224_v2 }
 0x32d   :  { %3412 = vpow2.f32 %v2687_v31 }
 0x32e   :  { %v2530_v27 = vpop.xlane.xlu0 %2529  ;;  %v2424_v58 = vsel %vm2296_vm1, %v2224_v2, %v2360_v1  ;;  %v5203_v2 = vld [vmem:[#allocation3_spill] sm:$0xff] }
 0x32f   :  { %v2624_v20 = vadd.f32 %v4818_v4, %v2530_v27  ;;  %v2136_v19 = vpop.f32.mrf.mxu2  ;;  %v2494_v23 = vmul.f32 %v4695_v59, %v2424_v58  ;;  %v2365_v46 = vmul.f32 0.2, %v5203_v2  ;;  %vm2301_vm7 = vcmp.gt.f32.partialorder %v5203_v2, 0.0 }
 0x330   :  { %v2137_v17 = vadd.f32 %v2136_v19, %v2048_v56  ;;  %v2225_v34 = vpop.f32.mrf.mxu3  ;;  %v1961_v41 = vpop.f32.mrf.mxu0 }
 0x331   :  { %v2656_v18 = vsub.f32 0.0, %v2624_v20  ;;  %v2050_v38 = vpop.f32.mrf.mxu1  ;;  %v2573_v35 = vadd.f32 %v2494_v23, %v2493_v7  ;;  %v1962_v62 = vadd.f32 %v1961_v41, %v4678_v5 }
 0x332   :  { %v2226_v37 = vadd.f32 %v2225_v34, %v2137_v17  ;;  %v2429_v34 = vsel %vm2301_vm7, %v5203_v2, %v2365_v46 }
 0x333   :  { %v3413_v60 = vpop.eup %3412  ;;  %v2689_v50 = vmul.f32 1.442695, %v2656_v18  ;;  %2574 = vadd.xlane.f32.xlu1 %v2573_v35  ;;  %v2051_v49 = vadd.f32 %v2050_v38, %v1962_v62  ;;  %v2499_v62 = vmul.f32 %v4693_v40, %v2429_v34 }
 0x334   :  { %v2751_v43 = vadd.f32 1.0, %v3413_v60  ;;  %vm2298_vm3 = vcmp.gt.f32.partialorder %v2226_v37, 0.0  ;;  %v2362_v53 = vmul.f32 0.2, %v2226_v37 }
 0x335   :  { %3414 = vpow2.f32 %v2689_v50  ;;  %v5204_v50 = vld [vmem:[#allocation4_spill] sm:$0xff] }
 0x336   :  { %3416 = vrcp.f32 %v2751_v43  ;;  %v2533_v30 = vpop.xlane.xlu1 %2532  ;;  %v2426_v45 = vsel %vm2298_vm3, %v2226_v37, %v2362_v53  ;;  %v2367_v43 = vmul.f32 0.2, %v5204_v50  ;;  %vm2303_vm9 = vcmp.gt.f32.partialorder %v5204_v50, 0.0 }
 0x337   :  { %v2625_v28 = vadd.f32 %v4818_v4, %v2533_v30  ;;  %v2139_v22 = vpop.f32.mrf.mxu2  ;;  %v2496_v11 = vmul.f32 %v4695_v59, %v2426_v45 }
 0x338   :  { %v2140_v15 = vadd.f32 %v2139_v22, %v2051_v49  ;;  %v2228_v33 = vpop.f32.mrf.mxu3  ;;  %v1963_v44 = vpop.f32.mrf.mxu0 }
 0x339   :  { %v2657_v26 = vsub.f32 0.0, %v2625_v28  ;;  %v2052_v32 = vpop.f32.mrf.mxu1  ;;  %v2576_v61 = vadd.f32 %v2496_v11, %v2495_v25  ;;  %v1964_v51 = vadd.f32 %v1963_v44, %v4678_v5 }
 0x33a   :  { %v2229_v48 = vadd.f32 %v2228_v33, %v2140_v15 }
 0x33b   :  { %v3415_v9 = vpop.eup %3414  ;;  %v2691_v0 = vmul.f32 1.442695, %v2657_v26  ;;  %2577 = vadd.xlane.f32.xlu2 %v2576_v61  ;;  %v2053_v21 = vadd.f32 %v2052_v32, %v1964_v51  ;;  %v2431_v26 = vsel %vm2303_vm9, %v5204_v50, %v2367_v43 }
 0x33c   :  { %v3417_v24 = vpop.eup %3416  ;;  %v2752_v12 = vadd.f32 1.0, %v3415_v9  ;;  %vm2300_vm6 = vcmp.gt.f32.partialorder %v2229_v48, 0.0  ;;  %v2364_v52 = vmul.f32 0.2, %v2229_v48 }
 0x33d   :  { %2816 = vst.msk [vmem:[%s5085_s7] sm:$0xff] %vm2815_vm5, %v3417_v24  ;;  %3418 = vpow2.f32 %v2691_v0  ;;  %v2501_v0 = vmul.f32 %v4693_v40, %v2431_v26 }
 0x33e   :  { %3420 = vrcp.f32 %v2752_v12  ;;  %v2536_v47 = vpop.xlane.xlu1 %2535  ;;  %v2428_v6 = vsel %vm2300_vm6, %v2229_v48, %v2364_v52  ;;  %v5205_v12 = vld [vmem:[#allocation5_spill] sm:$0xff]  ;;  %vm2315_vm6 = vcmp.gt.f32.partialorder %v4655_v54, 0.0 }
 0x33f   :  { %v2626_v29 = vadd.f32 %v4818_v4, %v2536_v47  ;;  %v2141_v57 = vpop.f32.mrf.mxu2  ;;  %v2498_v14 = vmul.f32 %v4695_v59, %v2428_v6  ;;  %v2369_v52 = vmul.f32 0.2, %v5205_v12  ;;  %vm2305_vm11 = vcmp.gt.f32.partialorder %v5205_v12, 0.0 }
 0x340   :  { %v2142_v13 = vadd.f32 %v2141_v57, %v2053_v21  ;;  %v2230_v31 = vpop.f32.mrf.mxu3  ;;  %v1966_v1 = vpop.f32.mrf.mxu0 }
 0x341   :  { %v2658_v10 = vsub.f32 0.0, %v2626_v29  ;;  %v2055_v56 = vpop.f32.mrf.mxu1  ;;  %v2579_v27 = vadd.f32 %v2498_v14, %v2497_v36  ;;  %v1967_v20 = vadd.f32 %v1966_v1, %v4678_v5 }
 0x342   :  { %v2231_v58 = vadd.f32 %v2230_v31, %v2142_v13 }
 0x343   :  { %v3419_v19 = vpop.eup %3418  ;;  %v2693_v7 = vmul.f32 1.442695, %v2658_v10  ;;  %2580 = vadd.xlane.f32.xlu0 %v2579_v27  ;;  %v2056_v41 = vadd.f32 %v2055_v56, %v1967_v20  ;;  %v2433_v10 = vsel %vm2305_vm11, %v5205_v12, %v2369_v52 }
 0x344   :  { %v3421_v23 = vpop.eup %3420  ;;  %v2753_v55 = vadd.f32 1.0, %v3419_v19  ;;  %vm2302_vm8 = vcmp.gt.f32.partialorder %v2231_v58, 0.0  ;;  %v2366_v17 = vmul.f32 0.2, %v2231_v58 }
 0x345   :  { %2817 = vst.msk [vmem:[%s5085_s7 + $0x8] sm:$0xff] %vm2815_vm5, %v3421_v23  ;;  %3422 = vpow2.f32 %v2693_v7  ;;  %v2503_v7 = vmul.f32 %v4693_v40, %v2433_v10 }
 0x346   :  { %3424 = vrcp.f32 %v2753_v55  ;;  %v2539_v18 = vpop.xlane.xlu2 %2538  ;;  %v2430_v38 = vsel %vm2302_vm8, %v2231_v58, %v2366_v17  ;;  %v5206_v55 = vld [vmem:[#allocation6_spill] sm:$0xff] }
 0x347   :  { %v2627_v35 = vadd.f32 %v4818_v4, %v2539_v18  ;;  %v2144_v37 = vpop.f32.mrf.mxu2  ;;  %v2500_v60 = vmul.f32 %v4695_v59, %v2430_v38  ;;  %v2371_v17 = vmul.f32 0.2, %v5206_v55  ;;  %vm2307_vm13 = vcmp.gt.f32.partialorder %v5206_v55, 0.0 }
 0x348   :  { %v2145_v53 = vadd.f32 %v2144_v37, %v2056_v41  ;;  %v2233_v42 = vpop.f32.mrf.mxu3  ;;  %v1968_v49 = vpop.f32.mrf.mxu0 }
 0x349   :  { %v2659_v30 = vsub.f32 0.0, %v2627_v35  ;;  %v2057_v45 = vpop.f32.mrf.mxu1  ;;  %v2582_v28 = vadd.f32 %v2500_v60, %v2499_v62  ;;  %v1969_v25 = vadd.f32 %v1968_v49, %v4678_v5 }
 0x34a   :  { %v2234_v22 = vadd.f32 %v2233_v42, %v2145_v53 }
 0x34b   :  { %v3423_v11 = vpop.eup %3422  ;;  %v2695_v3 = vmul.f32 1.442695, %v2659_v30  ;;  %2583 = vadd.xlane.f32.xlu1 %v2582_v28  ;;  %v2058_v32 = vadd.f32 %v2057_v45, %v1969_v25  ;;  %v2435_v30 = vsel %vm2307_vm13, %v5206_v55, %v2371_v17 }
 0x34c   :  { %v3425_v15 = vpop.eup %3424  ;;  %v2754_v33 = vadd.f32 1.0, %v3423_v11  ;;  %vm2304_vm10 = vcmp.gt.f32.partialorder %v2234_v22, 0.0  ;;  %v2368_v44 = vmul.f32 0.2, %v2234_v22 }
 0x34d   :  { %2818 = vst.msk [vmem:[%s5085_s7 + $0x10] sm:$0xff] %vm2815_vm5, %v3425_v15  ;;  %3426 = vpow2.f32 %v2695_v3  ;;  %v2505_v3 = vmul.f32 %v4693_v40, %v2435_v30 }
 0x34e   :  { %3428 = vrcp.f32 %v2754_v33  ;;  %v2542_v61 = vpop.xlane.xlu2 %2541  ;;  %v2432_v48 = vsel %vm2304_vm10, %v2234_v22, %v2368_v44  ;;  %v5207_v33 = vld [vmem:[#allocation7_spill] sm:$0xff]  ;;  %vm2319_vm10 = vcmp.gt.f32.partialorder %v4665_v8, 0.0 }
 0x34f   :  { %v2628_v51 = vadd.f32 %v4818_v4, %v2542_v61  ;;  %v2146_v9 = vpop.f32.mrf.mxu2  ;;  %v2502_v24 = vmul.f32 %v4695_v59, %v2432_v48  ;;  %v2373_v44 = vmul.f32 0.2, %v5207_v33  ;;  %vm2309_vm15 = vcmp.gt.f32.partialorder %v5207_v33, 0.0 }
 0x350   :  { %v2147_v39 = vadd.f32 %v2146_v9, %v2058_v32  ;;  %v2235_v21 = vpop.f32.mrf.mxu3  ;;  %v1971_v47 = vpop.f32.mrf.mxu0 }
 0x351   :  { %v2660_v6 = vsub.f32 0.0, %v2628_v51  ;;  %v2060_v29 = vpop.f32.mrf.mxu1  ;;  %v2585_v57 = vadd.f32 %v2502_v24, %v2501_v0  ;;  %v1972_v14 = vadd.f32 %v1971_v47, %v4678_v5 }
 0x352   :  { %v2236_v36 = vadd.f32 %v2235_v21, %v2147_v39 }
 0x353   :  { %v3427_v2 = vpop.eup %3426  ;;  %v2697_v46 = vmul.f32 1.442695, %v2660_v6  ;;  %2586 = vadd.xlane.f32.xlu2 %v2585_v57  ;;  %v2061_v56 = vadd.f32 %v2060_v29, %v1972_v14  ;;  %v2437_v6 = vsel %vm2309_vm15, %v5207_v33, %v2373_v44 }
 0x354   :  { %v3429_v13 = vpop.eup %3428  ;;  %v2755_v31 = vadd.f32 1.0, %v3427_v2  ;;  %vm2306_vm12 = vcmp.gt.f32.partialorder %v2236_v36, 0.0  ;;  %v2370_v1 = vmul.f32 0.2, %v2236_v36 }
 0x355   :  { %2819 = vst.msk [vmem:[%s5085_s7 + $0x18] sm:$0xff] %vm2815_vm5, %v3429_v13  ;;  %3430 = vpow2.f32 %v2697_v46  ;;  %v2507_v46 = vmul.f32 %v4693_v40, %v2437_v6 }
 0x356   :  { %3432 = vrcp.f32 %v2755_v31  ;;  %v2545_v27 = vpop.xlane.xlu0 %2544  ;;  %v2434_v58 = vsel %vm2306_vm12, %v2236_v36, %v2370_v1  ;;  %v5208_v31 = vld [vmem:[#allocation8_spill] sm:$0xff]  ;;  %vm2321_vm12 = vcmp.gt.f32.partialorder %v4668_v63, 0.0 }
 0x357   :  { %v2629_v20 = vadd.f32 %v4818_v4, %v2545_v27  ;;  %v2149_v19 = vpop.f32.mrf.mxu2  ;;  %v2504_v23 = vmul.f32 %v4695_v59, %v2434_v58  ;;  %v2375_v1 = vmul.f32 0.2, %v5208_v31  ;;  %vm2311_vm1 = vcmp.gt.f32.partialorder %v5208_v31, 0.0 }
 0x358   :  { %v2150_v34 = vadd.f32 %v2149_v19, %v2061_v56  ;;  %v2238_v41 = vpop.f32.mrf.mxu3  ;;  %v1973_v18 = vpop.f32.mrf.mxu0 }
 0x359   :  { %v2661_v38 = vsub.f32 0.0, %v2629_v20  ;;  %v2062_v35 = vpop.f32.mrf.mxu1  ;;  %v2588_v37 = vadd.f32 %v2504_v23, %v2503_v7  ;;  %v1974_v60 = vadd.f32 %v1973_v18, %v4678_v5 }
 0x35a   :  { %v2239_v62 = vadd.f32 %v2238_v41, %v2150_v34 }
 0x35b   :  { %v3431_v50 = vpop.eup %3430  ;;  %v2699_v43 = vmul.f32 1.442695, %v2661_v38  ;;  %2589 = vadd.xlane.f32.xlu0 %v2588_v37  ;;  %v2063_v45 = vadd.f32 %v2062_v35, %v1974_v60  ;;  %v2439_v38 = vsel %vm2311_vm1, %v5208_v31, %v2375_v1 }
 0x35c   :  { %v3433_v53 = vpop.eup %3432  ;;  %v2756_v42 = vadd.f32 1.0, %v3431_v50  ;;  %vm2308_vm14 = vcmp.gt.f32.partialorder %v2239_v62, 0.0  ;;  %v2372_v49 = vmul.f32 0.2, %v2239_v62 }
 0x35d   :  { %2820 = vst.msk [vmem:[%s5085_s7 + $0x20] sm:$0xff] %vm2815_vm5, %v3433_v53  ;;  %3434 = vpow2.f32 %v2699_v43  ;;  %v2509_v43 = vmul.f32 %v4693_v40, %v2439_v38 }
 0x35e   :  { %3436 = vrcp.f32 %v2756_v42  ;;  %v2548_v28 = vpop.xlane.xlu1 %2547  ;;  %v2436_v22 = vsel %vm2308_vm14, %v2239_v62, %v2372_v49  ;;  %v5209_v42 = vld [vmem:[#allocation9_spill] sm:$0xff]  ;;  %vm2323_vm14 = vcmp.gt.f32.partialorder %v4675_v16, 0.0 }
 0x35f   :  { %v2630_v25 = vadd.f32 %v4818_v4, %v2548_v28  ;;  %v2151_v11 = vpop.f32.mrf.mxu2  ;;  %v2506_v15 = vmul.f32 %v4695_v59, %v2436_v22  ;;  %v2377_v49 = vmul.f32 0.2, %v5209_v42  ;;  %vm2313_vm3 = vcmp.gt.f32.partialorder %v5209_v42, 0.0 }
 0x360   :  { %v2152_v26 = vadd.f32 %v2151_v11, %v2063_v45  ;;  %v2240_v32 = vpop.f32.mrf.mxu3  ;;  %v1976_v61 = vpop.f32.mrf.mxu0 }
 0x361   :  { %v2662_v48 = vsub.f32 0.0, %v2630_v25  ;;  %v2065_v51 = vpop.f32.mrf.mxu1  ;;  %v2591_v9 = vadd.f32 %v2506_v15, %v2505_v3  ;;  %v1977_v24 = vadd.f32 %v1976_v61, %v4678_v5 }
 0x362   :  { %v2241_v0 = vadd.f32 %v2240_v32, %v2152_v26 }
 0x363   :  { %v3435_v12 = vpop.eup %3434  ;;  %v2701_v52 = vmul.f32 1.442695, %v2662_v48  ;;  %2592 = vadd.xlane.f32.xlu1 %v2591_v9  ;;  %v2066_v29 = vadd.f32 %v2065_v51, %v1977_v24  ;;  %v2441_v48 = vsel %vm2313_vm3, %v5209_v42, %v2377_v49 }
 0x364   :  { %v3437_v39 = vpop.eup %3436  ;;  %v2757_v21 = vadd.f32 1.0, %v3435_v12  ;;  %vm2310_vm0 = vcmp.gt.f32.partialorder %v2241_v0, 0.0  ;;  %v2374_v47 = vmul.f32 0.2, %v2241_v0 }
 0x365   :  { %2821 = vst.msk [vmem:[%s5085_s7 + $0x28] sm:$0xff] %vm2815_vm5, %v3437_v39  ;;  %3438 = vpow2.f32 %v2701_v52  ;;  %v2511_v52 = vmul.f32 %v4693_v40, %v2441_v48 }
 0x366   :  { %3440 = vrcp.f32 %v2757_v21  ;;  %v2551_v57 = vpop.xlane.xlu2 %2550  ;;  %v2438_v36 = vsel %vm2310_vm0, %v2241_v0, %v2374_v47  ;;  %v2379_v21 = vmul.f32 0.2, %v4655_v54 }
 0x367   :  { %v2631_v14 = vadd.f32 %v4818_v4, %v2551_v57  ;;  %v2154_v2 = vpop.f32.mrf.mxu2  ;;  %v2508_v13 = vmul.f32 %v4695_v59, %v2438_v36 }
 0x368   :  { %v2155_v10 = vadd.f32 %v2154_v2, %v2066_v29  ;;  %v2243_v56 = vpop.f32.mrf.mxu3  ;;  %v1978_v27 = vpop.f32.mrf.mxu0 }
 0x369   :  { %v2663_v58 = vsub.f32 0.0, %v2631_v14  ;;  %v2067_v20 = vpop.f32.mrf.mxu1  ;;  %v2594_v19 = vadd.f32 %v2508_v13, %v2507_v46  ;;  %v1979_v23 = vadd.f32 %v1978_v27, %v4678_v5  ;;  %v2443_v27 = vsel %vm2315_vm6, %v4655_v54, %v2379_v21 }
 0x36a   :  { %v2244_v7 = vadd.f32 %v2243_v56, %v2155_v10 }
 0x36b   :  { %v3439_v55 = vpop.eup %3438  ;;  %v2703_v17 = vmul.f32 1.442695, %v2663_v58  ;;  %2595 = vadd.xlane.f32.xlu2 %v2594_v19  ;;  %v2068_v35 = vadd.f32 %v2067_v20, %v1979_v23 }
 0x36c   :  { %v3441_v34 = vpop.eup %3440  ;;  %v2758_v41 = vadd.f32 1.0, %v3439_v55  ;;  %vm2312_vm2 = vcmp.gt.f32.partialorder %v2244_v7, 0.0  ;;  %v2376_v18 = vmul.f32 0.2, %v2244_v7  ;;  %v2513_v55 = vmul.f32 %v4693_v40, %v2443_v27 }
 0x36d   :  { %2822 = vst.msk [vmem:[%s5085_s7 + $0x30] sm:$0xff] %vm2815_vm5, %v3441_v34  ;;  %3442 = vpow2.f32 %v2703_v17  ;;  %v5210_v34 = vld [vmem:[#allocation10_spill] sm:$0xff] }
 0x36e   :  { %3444 = vrcp.f32 %v2758_v41  ;;  %v2554_v37 = vpop.xlane.xlu0 %2553  ;;  %v2440_v62 = vsel %vm2312_vm2, %v2244_v7, %v2376_v18  ;;  %v2381_v41 = vmul.f32 0.2, %v5210_v34  ;;  %vm2317_vm8 = vcmp.gt.f32.partialorder %v5210_v34, 0.0 }
 0x36f   :  { %v2632_v60 = vadd.f32 %v4818_v4, %v2554_v37  ;;  %v2156_v50 = vpop.f32.mrf.mxu2  ;;  %v2510_v53 = vmul.f32 %v4695_v59, %v2440_v62 }
 0x370   :  { %v2157_v30 = vadd.f32 %v2156_v50, %v2068_v35  ;;  %v2245_v45 = vpop.f32.mrf.mxu3  ;;  %v1981_v28 = vpop.f32.mrf.mxu0 }
 0x371   :  { %v2664_v22 = vsub.f32 0.0, %v2632_v60  ;;  %v2070_v25 = vpop.f32.mrf.mxu1  ;;  %v2597_v11 = vadd.f32 %v2510_v53, %v2509_v43  ;;  %v1982_v15 = vadd.f32 %v1981_v28, %v4678_v5 }
 0x372   :  { %v2246_v3 = vadd.f32 %v2245_v45, %v2157_v30  ;;  %v2445_v45 = vsel %vm2317_vm8, %v5210_v34, %v2381_v41 }
 0x373   :  { %v3443_v33 = vpop.eup %3442  ;;  %v2705_v44 = vmul.f32 1.442695, %v2664_v22  ;;  %2598 = vadd.xlane.f32.xlu0 %v2597_v11  ;;  %v2071_v51 = vadd.f32 %v2070_v25, %v1982_v15  ;;  %v2515_v15 = vmul.f32 %v4693_v40, %v2445_v45 }
 0x374   :  { %v3445_v26 = vpop.eup %3444  ;;  %v2759_v32 = vadd.f32 1.0, %v3443_v33  ;;  %vm2314_vm4 = vcmp.gt.f32.partialorder %v2246_v3, 0.0  ;;  %v2378_v61 = vmul.f32 0.2, %v2246_v3 }
 0x375   :  { %2823 = vst.msk [vmem:[%s5085_s7 + $0x38] sm:$0xff] %vm2815_vm5, %v3445_v26  ;;  %3446 = vpow2.f32 %v2705_v44  ;;  %v2383_v44 = vmul.f32 0.2, %v4665_v8 }
 0x376   :  { %3448 = vrcp.f32 %v2759_v32  ;;  %v2557_v9 = vpop.xlane.xlu1 %2556  ;;  %v2442_v0 = vsel %vm2314_vm4, %v2246_v3, %v2378_v61 }
 0x377   :  { %v2633_v24 = vadd.f32 %v4818_v4, %v2557_v9  ;;  %v2159_v12 = vpop.f32.mrf.mxu2  ;;  %v2512_v39 = vmul.f32 %v4695_v59, %v2442_v0 }
 0x378   :  { %v2160_v47 = vadd.f32 %v2159_v12, %v2071_v51  ;;  %v2248_v6 = vpop.f32.mrf.mxu3  ;;  %v1983_v29 = vpop.f32.mrf.mxu0 }
 0x379   :  { %v2665_v57 = vsub.f32 0.0, %v2633_v24  ;;  %v2072_v36 = vpop.f32.mrf.mxu1  ;;  %v2600_v14 = vadd.f32 %v2512_v39, %v2511_v52  ;;  %v1984_v46 = vadd.f32 %v1983_v29, %v4678_v5 }
 0x37a   :  { %v2249_v2 = vadd.f32 %v2248_v6, %v2160_v47  ;;  %v2447_v6 = vsel %vm2319_vm10, %v4665_v8, %v2383_v44 }
 0x37b   :  { %v3447_v13 = vpop.eup %3446  ;;  %v2707_v31 = vmul.f32 1.442695, %v2665_v57  ;;  %2601 = vadd.xlane.f32.xlu1 %v2600_v14  ;;  %v2073_v58 = vadd.f32 %v2072_v36, %v1984_v46  ;;  %v2517_v46 = vmul.f32 %v4693_v40, %v2447_v6 }
 0x37c   :  { %v3449_v1 = vpop.eup %3448  ;;  %v2760_v10 = vadd.f32 1.0, %v3447_v13  ;;  %vm2316_vm7 = vcmp.gt.f32.partialorder %v2249_v2, 0.0  ;;  %v2380_v56 = vmul.f32 0.2, %v2249_v2 }
 0x37d   :  { %2824 = vst.msk [vmem:[%s5085_s7 + $0x40] sm:$0xff] %vm2815_vm5, %v3449_v1  ;;  %3450 = vpow2.f32 %v2707_v31  ;;  %v2385_v31 = vmul.f32 0.2, %v4668_v63 }
 0x37e   :  { %3452 = vrcp.f32 %v2760_v10  ;;  %v2560_v20 = vpop.xlane.xlu2 %2559  ;;  %v2444_v19 = vsel %vm2316_vm7, %v2249_v2, %v2380_v56 }
 0x37f   :  { %v2634_v7 = vadd.f32 %v4818_v4, %v2560_v20  ;;  %v2161_v23 = vpop.f32.mrf.mxu2  ;;  %v2514_v17 = vmul.f32 %v4695_v59, %v2444_v19  ;;  %v2449_v41 = vsel %vm2321_vm12, %v4668_v63, %v2385_v31 }
 0x380   :  { %v2162_v54 = vadd.f32 %v2161_v23, %v2073_v58  ;;  %v2250_v18 = vpop.f32.mrf.mxu3  ;;  %v1986_v38 = vpop.f32.mrf.mxu0 }
 0x381   :  { %v2666_v35 = vsub.f32 0.0, %v2634_v7  ;;  %v2075_v37 = vpop.f32.mrf.mxu1  ;;  %v2603_v62 = vadd.f32 %v2514_v17, %v2513_v55  ;;  %v1987_v50 = vadd.f32 %v1986_v38, %v4678_v5 }
 0x382   :  { %v2251_v60 = vadd.f32 %v2250_v18, %v2162_v54 }
 0x383   :  { %v3451_v43 = vpop.eup %3450  ;;  %v2709_v53 = vmul.f32 1.442695, %v2666_v35  ;;  %2604 = vadd.xlane.f32.xlu2 %v2603_v62  ;;  %v2076_v28 = vadd.f32 %v2075_v37, %v1987_v50  ;;  %v2519_v62 = vmul.f32 %v4693_v40, %v2449_v41  ;;  %v2387_v50 = vmul.f32 0.2, %v4675_v16 }
 0x384   :  { %v3453_v42 = vpop.eup %3452  ;;  %v2761_v49 = vadd.f32 1.0, %v3451_v43  ;;  %vm2318_vm9 = vcmp.gt.f32.partialorder %v2251_v60, 0.0  ;;  %v2382_v30 = vmul.f32 0.2, %v2251_v60 }
 0x385   :  { %2825 = vst.msk [vmem:[%s5085_s7 + $0x48] sm:$0xff] %vm2815_vm5, %v3453_v42  ;;  %3454 = vpow2.f32 %v2709_v53 }
 0x386   :  { %3456 = vrcp.f32 %v2761_v49  ;;  %v2563_v22 = vpop.xlane.xlu0 %2562  ;;  %v2446_v25 = vsel %vm2318_vm9, %v2251_v60, %v2382_v30 }
 0x387   :  { %v2635_v11 = vadd.f32 %v4818_v4, %v2563_v22  ;;  %v2164_v3 = vpop.f32.mrf.mxu2  ;;  %v2516_v33 = vmul.f32 %v4695_v59, %v2446_v25 }
 0x388   :  { %v2165_v26 = vadd.f32 %v2164_v3, %v2076_v28  ;;  %v2253_v32 = vpop.f32.mrf.mxu3  ;;  %v1988_v61 = vpop.f32.mrf.mxu0 }
 0x389   :  { %v2667_v48 = vsub.f32 0.0, %v2635_v11  ;;  %v2077_v51 = vpop.f32.mrf.mxu1  ;;  %v2606_v9 = vadd.f32 %v2516_v33, %v2515_v15  ;;  %v1989_v24 = vadd.f32 %v1988_v61, %v4678_v5  ;;  %v2451_v15 = vsel %vm2323_vm14, %v4675_v16, %v2387_v50 }
 0x38a   :  { %v2254_v0 = vadd.f32 %v2253_v32, %v2165_v26 }
 0x38b   :  { %v3455_v12 = vpop.eup %3454  ;;  %v2711_v52 = vmul.f32 1.442695, %v2667_v48  ;;  %2607 = vadd.xlane.f32.xlu0 %v2606_v9  ;;  %v2078_v29 = vadd.f32 %v2077_v51, %v1989_v24  ;;  %v2521_v48 = vmul.f32 %v4693_v40, %v2451_v15  ;;  %v5211_v9 = vld [vmem:[#allocation11_spill] sm:$0xff] }
 0x38c   :  { %v3457_v39 = vpop.eup %3456  ;;  %v2762_v21 = vadd.f32 1.0, %v3455_v12  ;;  %vm2320_vm11 = vcmp.gt.f32.partialorder %v2254_v0, 0.0  ;;  %v2384_v47 = vmul.f32 0.2, %v2254_v0  ;;  %v2389_v16 = vmul.f32 0.2, %v5211_v9 }
 0x38d   :  { %2826 = vst.msk [vmem:[%s5085_s7 + $0x50] sm:$0xff] %vm2815_vm5, %v3457_v39  ;;  %3458 = vpow2.f32 %v2711_v52  ;;  %vm2325_vm0 = vcmp.gt.f32.partialorder %v5211_v9, 0.0 }
 0x38e   :  { %3460 = vrcp.f32 %v2762_v21  ;;  %v2566_v57 = vpop.xlane.xlu1 %2565  ;;  %v2448_v36 = vsel %vm2320_vm11, %v2254_v0, %v2384_v47 }
 0x38f   :  { %v2636_v14 = vadd.f32 %v4818_v4, %v2566_v57  ;;  %v2166_v2 = vpop.f32.mrf.mxu2  ;;  %v2518_v13 = vmul.f32 %v4695_v59, %v2448_v36  ;;  %v2453_v36 = vsel %vm2325_vm0, %v5211_v9, %v2389_v16 }
 0x390   :  { %v2167_v8 = vadd.f32 %v2166_v2, %v2078_v29  ;;  %v2255_v1 = vpop.f32.mrf.mxu3  ;;  %v1991_v10 = vpop.f32.mrf.mxu0 }
 0x391   :  { %v2668_v56 = vsub.f32 0.0, %v2636_v14  ;;  %v2609_v27 = vadd.f32 %v2518_v13, %v2517_v46  ;;  %v1992_v20 = vadd.f32 %v1991_v10, %v4678_v5  ;;  %v2080_v23 = vpop.f32.mrf.mxu1  ;;  %v2523_v13 = vmul.f32 %v4693_v40, %v2453_v36 }
 0x392   :  { %v2256_v58 = vadd.f32 %v2255_v1, %v2167_v8 }
 0x393   :  { %v3459_v19 = vpop.eup %3458  ;;  %v2713_v7 = vmul.f32 1.442695, %v2668_v56  ;;  %2610 = vadd.xlane.f32.xlu1 %v2609_v27  ;;  %v2081_v54 = vadd.f32 %v2080_v23, %v1992_v20 }
 0x394   :  { %v3461_v55 = vpop.eup %3460  ;;  %v2763_v17 = vadd.f32 1.0, %v3459_v19  ;;  %vm2322_vm13 = vcmp.gt.f32.partialorder %v2256_v58, 0.0  ;;  %v2386_v34 = vmul.f32 0.2, %v2256_v58 }
 0x395   :  { %2827 = vst.msk [vmem:[%s5085_s7 + $0x58] sm:$0xff] %vm2815_vm5, %v3461_v55  ;;  %3462 = vpow2.f32 %v2713_v7 }
 0x396   :  { %3464 = vrcp.f32 %v2763_v17  ;;  %v2569_v18 = vpop.xlane.xlu2 %2568  ;;  %v2450_v38 = vsel %vm2322_vm13, %v2256_v58, %v2386_v34 }
 0x397   :  { %v2637_v35 = vadd.f32 %v4818_v4, %v2569_v18  ;;  %v2169_v37 = vpop.f32.mrf.mxu2  ;;  %v2520_v60 = vmul.f32 %v4695_v59, %v2450_v38 }
 0x398   :  { %v2170_v63 = vadd.f32 %v2169_v37, %v2081_v54  ;;  %v2258_v43 = vpop.f32.mrf.mxu3  ;;  %v1993_v53 = vpop.f32.mrf.mxu0 }
 0x399   :  { %v2669_v42 = vsub.f32 0.0, %v2637_v35  ;;  %v2612_v49 = vadd.f32 %v2520_v60, %v2519_v62  ;;  %v1994_v45 = vadd.f32 %v1993_v53, %v4678_v5  ;;  %v2082_v33 = vpop.f32.mrf.mxu1 }
 0x39a   :  { %v2259_v30 = vadd.f32 %v2258_v43, %v2170_v63 }
 0x39b   :  { %v3463_v28 = vpop.eup %3462  ;;  %v2715_v22 = vmul.f32 1.442695, %v2669_v42  ;;  %2613 = vadd.xlane.f32.xlu2 %v2612_v49  ;;  %v2083_v44 = vadd.f32 %v2082_v33, %v1994_v45 }
 0x39c   :  { %v3465_v25 = vpop.eup %3464  ;;  %v2764_v11 = vadd.f32 1.0, %v3463_v28  ;;  %vm2324_vm15 = vcmp.gt.f32.partialorder %v2259_v30, 0.0  ;;  %v2388_v3 = vmul.f32 0.2, %v2259_v30 }
 0x39d   :  { %2828 = vst.msk [vmem:[%s5085_s7 + $0x60] sm:$0xff] %vm2815_vm5, %v3465_v25  ;;  %3466 = vpow2.f32 %v2715_v22 }
 0x39e   :  { %3468 = vrcp.f32 %v2764_v11  ;;  %v2572_v26 = vpop.xlane.xlu0 %2571  ;;  %v2452_v5 = vsel %vm2324_vm15, %v2259_v30, %v2388_v3 }
 0x39f   :  { %v2638_v32 = vadd.f32 %v4818_v4, %v2572_v26  ;;  %v2171_v61 = vpop.f32.mrf.mxu2  ;;  %v2522_v51 = vmul.f32 %v4695_v59, %v2452_v5 }
 0x3a0   :  { %v2172_v0 = vadd.f32 %v2171_v61, %v2083_v44  ;;  %v2260_v12 = vpop.f32.mrf.mxu3 }
 0x3a1   :  { %v2670_v24 = vsub.f32 0.0, %v2638_v32  ;;  %v2615_v52 = vadd.f32 %v2522_v51, %v2521_v48 }
 0x3a2   :  { %v2261_v39 = vadd.f32 %v2260_v12, %v2172_v0 }
 0x3a3   :  { %v3467_v21 = vpop.eup %3466  ;;  %v2717_v47 = vmul.f32 1.442695, %v2670_v24  ;;  %2616 = vadd.xlane.f32.xlu0 %v2615_v52 }
 0x3a4   :  { %v3469_v6 = vpop.eup %3468  ;;  %v2765_v29 = vadd.f32 1.0, %v3467_v21  ;;  %vm2326_vm1 = vcmp.gt.f32.partialorder %v2261_v39, 0.0  ;;  %v2390_v57 = vmul.f32 0.2, %v2261_v39 }
 0x3a5   :  { %2829 = vst.msk [vmem:[%s5085_s7 + $0x68] sm:$0xff] %vm2815_vm5, %v3469_v6  ;;  %3470 = vpow2.f32 %v2717_v47 }
 0x3a6   :  { %3472 = vrcp.f32 %v2765_v29  ;;  %v2575_v14 = vpop.xlane.xlu1 %2574  ;;  %v2454_v2 = vsel %vm2326_vm1, %v2261_v39, %v2390_v57 }
 0x3a7   :  { %v2639_v46 = vadd.f32 %v4818_v4, %v2575_v14  ;;  %v2524_v31 = vmul.f32 %v4695_v59, %v2454_v2 }
 0x3a9   :  { %v2671_v8 = vsub.f32 0.0, %v2639_v46  ;;  %v2618_v1 = vadd.f32 %v2524_v31, %v2523_v13 }
 0x3ab   :  { %v3471_v10 = vpop.eup %3470  ;;  %v2719_v56 = vmul.f32 1.442695, %v2671_v8  ;;  %2619 = vadd.xlane.f32.xlu1 %v2618_v1 }
 0x3ac   :  { %v3473_v27 = vpop.eup %3472  ;;  %v2766_v58 = vadd.f32 1.0, %v3471_v10 }
 0x3ad   :  { %2830 = vst.msk [vmem:[%s5085_s7 + $0x70] sm:$0xff] %vm2815_vm5, %v3473_v27  ;;  %3474 = vpow2.f32 %v2719_v56 }
 0x3ae   :  { %3476 = vrcp.f32 %v2766_v58  ;;  %v2578_v20 = vpop.xlane.xlu2 %2577 }
 0x3af   :  { %v2640_v19 = vadd.f32 %v4818_v4, %v2578_v20 }
 0x3b1   :  { %v2672_v40 = vsub.f32 0.0, %v2640_v19 }
 0x3b3   :  { %v3475_v7 = vpop.eup %3474  ;;  %v2721_v59 = vmul.f32 1.442695, %v2672_v40 }
 0x3b4   :  { %v3477_v23 = vpop.eup %3476  ;;  %v2767_v55 = vadd.f32 1.0, %v3475_v7 }
 0x3b5   :  { %2831 = vst.msk [vmem:[%s5085_s7 + $0x78] sm:$0xff] %vm2815_vm5, %v3477_v23  ;;  %3478 = vpow2.f32 %v2721_v59 }
 0x3b6   :  { %3480 = vrcp.f32 %v2767_v55  ;;  %v2581_v17 = vpop.xlane.xlu0 %2580 }
 0x3b7   :  { %v2641_v34 = vadd.f32 %v4818_v4, %v2581_v17 }
 0x3b9   :  { %v2673_v41 = vsub.f32 0.0, %v2641_v34 }
 0x3bb   :  { %v3479_v54 = vpop.eup %3478  ;;  %v2723_v18 = vmul.f32 1.442695, %v2673_v41 }
 0x3bc   :  { %v3481_v38 = vpop.eup %3480  ;;  %v2768_v35 = vadd.f32 1.0, %v3479_v54 }
 0x3bd   :  { %2832 = vst.msk [vmem:[%s5085_s7 + $0x80] sm:$0xff] %vm2815_vm5, %v3481_v38  ;;  %3482 = vpow2.f32 %v2723_v18 }
 0x3be   :  { %3484 = vrcp.f32 %v2768_v35  ;;  %v2584_v37 = vpop.xlane.xlu1 %2583 }
 0x3bf   :  { %v2642_v62 = vadd.f32 %v4818_v4, %v2584_v37 }
 0x3c1   :  { %v2674_v60 = vsub.f32 0.0, %v2642_v62 }
 0x3c3   :  { %v3483_v50 = vpop.eup %3482  ;;  %v2725_v63 = vmul.f32 1.442695, %v2674_v60 }
 0x3c4   :  { %v3485_v43 = vpop.eup %3484  ;;  %v2769_v53 = vadd.f32 1.0, %v3483_v50 }
 0x3c5   :  { %2833 = vst.msk [vmem:[%s5085_s7 + $0x88] sm:$0xff] %vm2815_vm5, %v3485_v43  ;;  %3486 = vpow2.f32 %v2725_v63 }
 0x3c6   :  { %3488 = vrcp.f32 %v2769_v53  ;;  %v2587_v42 = vpop.xlane.xlu2 %2586 }
 0x3c7   :  { %v2643_v49 = vadd.f32 %v4818_v4, %v2587_v42 }
 0x3c9   :  { %v2675_v30 = vsub.f32 0.0, %v2643_v49 }
 0x3cb   :  { %v3487_v45 = vpop.eup %3486  ;;  %v2727_v28 = vmul.f32 1.442695, %v2675_v30 }
 0x3cc   :  { %v3489_v22 = vpop.eup %3488  ;;  %v2770_v25 = vadd.f32 1.0, %v3487_v45 }
 0x3cd   :  { %2834 = vst.msk [vmem:[%s5085_s7 + $0x90] sm:$0xff] %vm2815_vm5, %v3489_v22  ;;  %3490 = vpow2.f32 %v2727_v28 }
 0x3ce   :  { %3492 = vrcp.f32 %v2770_v25  ;;  %v2590_v11 = vpop.xlane.xlu0 %2589 }
 0x3cf   :  { %v2644_v3 = vadd.f32 %v4818_v4, %v2590_v11 }
 0x3d1   :  { %v2676_v15 = vsub.f32 0.0, %v2644_v3 }
 0x3d3   :  { %v3491_v33 = vpop.eup %3490  ;;  %v2729_v44 = vmul.f32 1.442695, %v2676_v15 }
 0x3d4   :  { %v3493_v26 = vpop.eup %3492  ;;  %v2771_v5 = vadd.f32 1.0, %v3491_v33 }
 0x3d5   :  { %2835 = vst.msk [vmem:[%s5085_s7 + $0x98] sm:$0xff] %vm2815_vm5, %v3493_v26  ;;  %3494 = vpow2.f32 %v2729_v44 }
 0x3d6   :  { %3496 = vrcp.f32 %v2771_v5  ;;  %v2593_v32 = vpop.xlane.xlu1 %2592 }
 0x3d7   :  { %v2645_v61 = vadd.f32 %v4818_v4, %v2593_v32 }
 0x3d9   :  { %v2677_v48 = vsub.f32 0.0, %v2645_v61 }
 0x3db   :  { %v3495_v51 = vpop.eup %3494  ;;  %v2731_v9 = vmul.f32 1.442695, %v2677_v48 }
 0x3dc   :  { %v3497_v16 = vpop.eup %3496  ;;  %v2772_v0 = vadd.f32 1.0, %v3495_v51 }
 0x3dd   :  { %2836 = vst.msk [vmem:[%s5085_s7 + $0xa0] sm:$0xff] %vm2815_vm5, %v3497_v16  ;;  %3498 = vpow2.f32 %v2731_v9 }
 0x3de   :  { %3500 = vrcp.f32 %v2772_v0  ;;  %v2596_v24 = vpop.xlane.xlu2 %2595 }
 0x3df   :  { %v2646_v12 = vadd.f32 %v4818_v4, %v2596_v24 }
 0x3e1   :  { %v2678_v52 = vsub.f32 0.0, %v2646_v12 }
 0x3e3   :  { %v3499_v39 = vpop.eup %3498  ;;  %v2733_v21 = vmul.f32 1.442695, %v2678_v52 }
 0x3e4   :  { %v3501_v47 = vpop.eup %3500  ;;  %v2773_v6 = vadd.f32 1.0, %v3499_v39 }
 0x3e5   :  { %2837 = vst.msk [vmem:[%s5085_s7 + $0xa8] sm:$0xff] %vm2815_vm5, %v3501_v47  ;;  %3502 = vpow2.f32 %v2733_v21 }
 0x3e6   :  { %3504 = vrcp.f32 %v2773_v6  ;;  %v2599_v29 = vpop.xlane.xlu0 %2598 }
 0x3e7   :  { %v2647_v57 = vadd.f32 %v4818_v4, %v2599_v29 }
 0x3e9   :  { %v2679_v36 = vsub.f32 0.0, %v2647_v57 }
 0x3eb   :  { %v3503_v14 = vpop.eup %3502  ;;  %v2735_v2 = vmul.f32 1.442695, %v2679_v36 }
 0x3ec   :  { %v3505_v46 = vpop.eup %3504  ;;  %v2774_v13 = vadd.f32 1.0, %v3503_v14 }
 0x3ed   :  { %2838 = vst.msk [vmem:[%s5085_s7 + $0xb0] sm:$0xff] %vm2815_vm5, %v3505_v46  ;;  %3506 = vpow2.f32 %v2735_v2 }
 0x3ee   :  { %3508 = vrcp.f32 %v2774_v13  ;;  %v2602_v31 = vpop.xlane.xlu1 %2601 }
 0x3ef   :  { %v2648_v8 = vadd.f32 %v4818_v4, %v2602_v31 }
 0x3f1   :  { %v2680_v1 = vsub.f32 0.0, %v2648_v8 }
 0x3f3   :  { %v3507_v10 = vpop.eup %3506  ;;  %v2737_v56 = vmul.f32 1.442695, %v2680_v1 }
 0x3f4   :  { %v3509_v27 = vpop.eup %3508  ;;  %v2775_v58 = vadd.f32 1.0, %v3507_v10 }
 0x3f5   :  { %2839 = vst.msk [vmem:[%s5085_s7 + $0xb8] sm:$0xff] %vm2815_vm5, %v3509_v27  ;;  %3510 = vpow2.f32 %v2737_v56 }
 0x3f6   :  { %3512 = vrcp.f32 %v2775_v58  ;;  %v2605_v20 = vpop.xlane.xlu2 %2604 }
 0x3f7   :  { %v2649_v19 = vadd.f32 %v4818_v4, %v2605_v20 }
 0x3f9   :  { %v2681_v40 = vsub.f32 0.0, %v2649_v19 }
 0x3fb   :  { %v3511_v7 = vpop.eup %3510  ;;  %v2739_v59 = vmul.f32 1.442695, %v2681_v40 }
 0x3fc   :  { %v3513_v23 = vpop.eup %3512  ;;  %v2776_v55 = vadd.f32 1.0, %v3511_v7 }
 0x3fd   :  { %2840 = vst.msk [vmem:[%s5085_s7 + $0xc0] sm:$0xff] %vm2815_vm5, %v3513_v23  ;;  %3514 = vpow2.f32 %v2739_v59 }
 0x3fe   :  { %3516 = vrcp.f32 %v2776_v55  ;;  %v2608_v17 = vpop.xlane.xlu0 %2607 }
 0x3ff   :  { %v2650_v34 = vadd.f32 %v4818_v4, %v2608_v17 }
 0x401   :  { %v2682_v41 = vsub.f32 0.0, %v2650_v34 }
 0x403   :  { %v3515_v54 = vpop.eup %3514  ;;  %v2741_v18 = vmul.f32 1.442695, %v2682_v41 }
 0x404   :  { %v3517_v38 = vpop.eup %3516  ;;  %v2777_v35 = vadd.f32 1.0, %v3515_v54 }
 0x405   :  { %2841 = vst.msk [vmem:[%s5085_s7 + $0xc8] sm:$0xff] %vm2815_vm5, %v3517_v38  ;;  %3518 = vpow2.f32 %v2741_v18 }
 0x406   :  { %3520 = vrcp.f32 %v2777_v35  ;;  %v2611_v37 = vpop.xlane.xlu1 %2610 }
 0x407   :  { %v2651_v62 = vadd.f32 %v4818_v4, %v2611_v37 }
 0x409   :  { %v2683_v60 = vsub.f32 0.0, %v2651_v62 }
 0x40b   :  { %v3519_v50 = vpop.eup %3518  ;;  %v2743_v63 = vmul.f32 1.442695, %v2683_v60 }
 0x40c   :  { %v3521_v43 = vpop.eup %3520  ;;  %v2778_v53 = vadd.f32 1.0, %v3519_v50 }
 0x40d   :  { %2842 = vst.msk [vmem:[%s5085_s7 + $0xd0] sm:$0xff] %vm2815_vm5, %v3521_v43  ;;  %3522 = vpow2.f32 %v2743_v63 }
 0x40e   :  { %3524 = vrcp.f32 %v2778_v53  ;;  %v2614_v42 = vpop.xlane.xlu2 %2613 }
 0x40f   :  { %v2652_v49 = vadd.f32 %v4818_v4, %v2614_v42 }
 0x411   :  { %v2684_v30 = vsub.f32 0.0, %v2652_v49 }
 0x413   :  { %v3523_v45 = vpop.eup %3522  ;;  %v2745_v28 = vmul.f32 1.442695, %v2684_v30 }
 0x414   :  { %v3525_v22 = vpop.eup %3524  ;;  %v2779_v25 = vadd.f32 1.0, %v3523_v45 }
 0x415   :  { %2843 = vst.msk [vmem:[%s5085_s7 + $0xd8] sm:$0xff] %vm2815_vm5, %v3525_v22  ;;  %3526 = vpow2.f32 %v2745_v28 }
 0x416   :  { %3528 = vrcp.f32 %v2779_v25  ;;  %v2617_v11 = vpop.xlane.xlu0 %2616 }
 0x417   :  { %v2653_v3 = vadd.f32 %v4818_v4, %v2617_v11 }
 0x419   :  { %v2685_v15 = vsub.f32 0.0, %v2653_v3 }
 0x41b   :  { %v3527_v33 = vpop.eup %3526  ;;  %v2747_v44 = vmul.f32 1.442695, %v2685_v15 }
 0x41c   :  { %v3529_v26 = vpop.eup %3528  ;;  %v2780_v5 = vadd.f32 1.0, %v3527_v33 }
 0x41d   :  { %2844 = vst.msk [vmem:[%s5085_s7 + $0xe0] sm:$0xff] %vm2815_vm5, %v3529_v26  ;;  %3530 = vpow2.f32 %v2747_v44 }
 0x41e   :  { %3532 = vrcp.f32 %v2780_v5  ;;  %v2620_v32 = vpop.xlane.xlu1 %2619 }
 0x41f   :  { %v2654_v61 = vadd.f32 %v4818_v4, %v2620_v32 }
 0x421   :  { %v2686_v48 = vsub.f32 0.0, %v2654_v61 }
 0x423   :  { %v3531_v51 = vpop.eup %3530  ;;  %v2749_v9 = vmul.f32 1.442695, %v2686_v48 }
 0x424   :  { %v3533_v16 = vpop.eup %3532  ;;  %v2781_v0 = vadd.f32 1.0, %v3531_v51 }
 0x425   :  { %2845 = vst.msk [vmem:[%s5085_s7 + $0xe8] sm:$0xff] %vm2815_vm5, %v3533_v16  ;;  %3534 = vpow2.f32 %v2749_v9 }
 0x426   :  { %3536 = vrcp.f32 %v2781_v0 }
 0x42b   :  { %v3535_v24 = vpop.eup %3534 }
 0x42c   :  { %v3537_v12 = vpop.eup %3536  ;;  %v2782_v52 = vadd.f32 1.0, %v3535_v24 }
 0x42d   :  { %2846 = vst.msk [vmem:[%s5085_s7 + $0xf0] sm:$0xff] %vm2815_vm5, %v3537_v12 }
 0x42e   :  { %3538 = vrcp.f32 %v2782_v52 }
 0x434   :  { %v3539_v4 = vpop.eup %3538 }
 0x435   :  { %2847 = vst.msk [vmem:[%s5085_s7 + $0xf8] sm:$0xff] %vm2815_vm5, %v3539_v4 }

</bundles_post_ra>
